<compile_context>
chip_gen: v6e
topology: v6e:2x2x1
jax: 0.10.0
libtpu: 0.0.40
codegen_flags: <defaults>
</compile_context>

<pallas_src>
import functools

import numpy as np
import jax
import jax.numpy as jnp
from jax.experimental import pallas as pl
from jax.experimental.pallas import tpu as pltpu

LEAKY_SLOPE = 0.01
LN_EPS = 1e-5


# ----------------------------- Pallas kernel --------------------------------

def _fused_forward_kernel(x_ref, a_ref,
                          w1_ref, b1_ref, w2_ref, b2_ref,
                          w3_ref, b3_ref, w4_ref, b4_ref,
                          whc_ref, wha_ref, bh_ref, g_ref, beta_ref,
                          o_ref):
    """Whole network in one kernel: 4x (dense-conv + LeakyReLU) -> head
    (Linear + LayerNorm + tanh).  Everything lives in VMEM / vregs."""

    def dense_lrelu(h, w_ref, b_ref):
        y = jnp.dot(h, w_ref[...], preferred_element_type=jnp.float32) + b_ref[...]
        return jnp.where(y >= 0, y, LEAKY_SLOPE * y)

    h = x_ref[...]                       # (B, Cin*H*W)  NCHW-flattened input
    h = dense_lrelu(h, w1_ref, b1_ref)   # (B, 16*7*7)
    h = dense_lrelu(h, w2_ref, b2_ref)   # (B, 16*5*5)
    h = dense_lrelu(h, w3_ref, b3_ref)   # (B, 16*3*3)
    h = dense_lrelu(h, w4_ref, b4_ref)   # (B, 128)  (cols >= 16 are exact zeros)

    # Head Linear on [conv features | actions], done as two sublane-aligned
    # matmuls (K = 128 and K = 8) instead of an odd-K concat.
    y = (jnp.dot(h, whc_ref[...], preferred_element_type=jnp.float32)
         + jnp.dot(a_ref[...], wha_ref[...], preferred_element_type=jnp.float32)
         + bh_ref[...])                  # (B, 768)

    # LayerNorm over the feature axis (biased variance, eps inside rsqrt).
    mean = jnp.mean(y, axis=-1, keepdims=True)
    var = jnp.mean((y - mean) ** 2, axis=-1, keepdims=True)
    yn = (y - mean) * jax.lax.rsqrt(var + LN_EPS)
    o_ref[...] = jnp.tanh(yn * g_ref[...] + beta_ref[...])


def fused_forward(x_flat, acts_pad, kp):
    B = x_flat.shape[0]
    out_dim = kp["bh"].shape[-1]
    vmem = functools.partial(pl.BlockSpec, memory_space=pltpu.MemorySpace.VMEM)
    args = (x_flat, acts_pad,
            kp["w1"], kp["b1"], kp["w2"], kp["b2"],
            kp["w3"], kp["b3"], kp["w4"], kp["b4"],
            kp["whc"], kp["wha"], kp["bh"], kp["ln_g"], kp["ln_b"])
    # NOTE: if B ever grows large, add a grid over 128-row tiles of the batch
    # with dimension_semantics=("parallel",) to shard across v7x's two TCs.
    return pl.pallas_call(
        _fused_forward_kernel,
        out_shape=jax.ShapeDtypeStruct((B, out_dim), jnp.float32),
        in_specs=[vmem() for _ in args],
        out_specs=vmem(),
    )(*args)


# --------------------------- jitted forward wrapper --------------------------

@functools.partial(jax.jit, static_argnums=(3,))
def forward(kp, x, acts, target_shape):
    B = x.shape[0]
    x_flat = x.reshape(B, -1)                       # NCHW flatten == torch .view order
    apad = kp["wha"].shape[0] - acts.shape[1]       # pad actions to sublane multiple
    acts_pad = jnp.pad(acts, ((0, 0), (0, apad)))
    y = fused_forward(x_flat, acts_pad, kp)
    return y.reshape(target_shape)


# --------------------- one-time parameter packing (host) ---------------------

def _conv_as_dense(w, stride, H, W):
    """Exact dense-matrix form of Conv2d(VALID, stride) mapping the
    NCHW-flattened input (Cin*H*W,) to the NCHW-flattened output (Cout*OH*OW,).
    Built with exact scatter writes (no floating-point work)."""
    w = np.asarray(w, dtype=np.float32)
    Cout, Cin, k, _ = w.shape
    OH = (H - k) // stride + 1
    OW = (W - k) // stride + 1
    M = np.zeros((Cin * H * W, Cout * OH * OW), np.float32)
    ci = np.arange(Cin)
    co = np.arange(Cout)
    for oh in range(OH):
        for ow in range(OW):
            cols = co * (OH * OW) + oh * OW + ow
            for di in range(k):
                for dj in range(k):
                    rows = ci * (H * W) + (oh * stride + di) * W + (ow * stride + dj)
                    M[np.ix_(rows, cols)] = w[:, :, di, dj].T
    return M, OH, OW


def pack_params(params, act_dim, spatial):
    """Pre-lower conv weights to dense matrices, flatten per-channel biases,
    split + pad the head weight.  Runs once at init."""
    strides = (2, 1, 1, 1)
    H = W = spatial
    dense_ws, dense_bs = [], []
    for (wc, bc), s in zip(params["convs"], strides):
        Md, OH, OW = _conv_as_dense(wc, s, H, W)
        bflat = np.repeat(np.asarray(bc, np.float32), OH * OW)[None, :]
        dense_ws.append(Md)
        dense_bs.append(bflat)
        H, W = OH, OW

    conv_feat = dense_ws[-1].shape[1]                 # flattened conv output size (16)
    c4_pad = -(-conv_feat // 128) * 128               # pad to a full lane group (128)
    w4 = np.zeros((dense_ws[3].shape[0], c4_pad), np.float32)
    w4[:, :conv_feat] = dense_ws[3]
    b4 = np.zeros((1, c4_pad), np.float32)
    b4[:, :conv_feat] = dense_bs[3]

    head_w = np.asarray(params["head_w"], np.float32)  # (conv_feat + act_dim, out_dim)
    out_dim = head_w.shape[1]
    whc = np.zeros((c4_pad, out_dim), np.float32)
    whc[:conv_feat] = head_w[:conv_feat]
    act_pad = -(-act_dim // 8) * 8                     # round act_dim up to sublane mult
    wha = np.zeros((act_pad, out_dim), np.float32)
    wha[:act_dim] = head_w[conv_feat:]

    kp = {
        "w1": dense_ws[0], "b1": dense_bs[0],
        "w2": dense_ws[1], "b2": dense_bs[1],
        "w3": dense_ws[2], "b3": dense_bs[2],
        "w4": w4, "b4": b4,
        "whc": whc, "wha": wha,
        "bh": np.asarray(params["head_b"], np.float32)[None, :],
        "ln_g": np.asarray(params["ln_g"], np.float32)[None, :],
        "ln_b": np.asarray(params["ln_b"], np.float32)[None, :],
    }
    return {k: jnp.asarray(v) for k, v in kp.items()}


# ------------------------------ Parameter init -------------------------------

def init_params(key, act_dim, num_particles):
    num_features = 3
    conv_shapes = [(16, num_features, 3, 3), (16, 16, 3, 3),
                   (16, 16, 3, 3), (16, 16, 3, 3)]
    convs = []
    for shp in conv_shapes:
        key, sub = jax.random.split(key)
        cout, _, k, _ = shp
        fan_out = cout * k * k
        std = np.sqrt(2.0 / fan_out)               # kaiming_normal_, mode='fan_out'
        w = std * jax.random.normal(sub, shp, dtype=jnp.float32)
        b = jnp.zeros((cout,), jnp.float32)
        convs.append((w, b))

    # fc input size after the 4 convs (spatial 16 -> 7 -> 5 -> 3 -> 1, 16 channels)
    s = int(np.sqrt(num_particles))
    s = (s - 3) // 2 + 1
    for _ in range(3):
        s = s - 3 + 1
    fc_in = 16 * s * s + act_dim
    out_dim = num_particles * num_features

    key, sub = jax.random.split(key)
    head_w = 0.01 * jax.random.normal(sub, (fc_in, out_dim), dtype=jnp.float32)
    head_b = jnp.zeros((out_dim,), jnp.float32)
    ln_g = jnp.ones((out_dim,), jnp.float32)
    ln_b = jnp.zeros((out_dim,), jnp.float32)
    return {"convs": convs, "head_w": head_w, "head_b": head_b,
            "ln_g": ln_g, "ln_b": ln_b}


# ------------------------ Pure-JAX reference (check) --------------------------

def ref_forward(params, x, acts, target_shape):
    out = x
    for (w, b), stride in zip(params["convs"], (2, 1, 1, 1)):
        out = jax.lax.conv_general_dilated(
            out, w, (stride, stride), "VALID",
            dimension_numbers=("NCHW", "OIHW", "NCHW"))
        out = out + b.reshape(1, -1, 1, 1)
        out = jnp.where(out >= 0, out, LEAKY_SLOPE * out)
    flat = out.reshape(x.shape[0], -1)
    z = jnp.concatenate([flat, acts], axis=1)
    h = z @ params["head_w"] + params["head_b"]
    mean = h.mean(-1, keepdims=True)
    var = ((h - mean) ** 2).mean(-1, keepdims=True)
    hn = (h - mean) / jnp.sqrt(var + LN_EPS)
    y = jnp.tanh(hn * params["ln_g"] + params["ln_b"])
    return y.reshape(target_shape)


# ------------------------------------ main -----------------------------------

if __name__ == "__main__":
    key = jax.random.PRNGKey(0)
    B, act_dim = 2, 4
    num_particles = 256          # sqrt = 16 -> smallest spatial size the convs allow
    num_features = 3
    S = int(np.sqrt(num_particles))

    kp_, kx, ka = jax.random.split(key, 3)
    params = init_params(kp_, act_dim, num_particles)
    kparams = pack_params(params, act_dim, S)

    x = jax.random.normal(kx, (B, num_features, S, S), dtype=jnp.float32)
    acts = jax.random.normal(ka, (B, act_dim), dtype=jnp.float32)
    target_shape = (B, num_particles, num_features)

    out = forward(kparams, x, acts, target_shape)
    out = jax.block_until_ready(out)

    ref = ref_forward(params, x, acts, target_shape)
    assert out.shape == target_shape
    np.testing.assert_allclose(np.asarray(out), np.asarray(ref), rtol=1e-4, atol=1e-4)

    print("KERNEL_OK")
</pallas_src>

<mosaic_0001>
module attributes {stable_mosaic.version = 11 : i64} {
  func.func @_fused_forward_kernel(%arg0: memref<2x768xf32, #tpu.memory_space<vmem>>, %arg1: memref<2x8xf32, #tpu.memory_space<vmem>>, %arg2: memref<768x784xf32, #tpu.memory_space<vmem>>, %arg3: memref<1x784xf32, #tpu.memory_space<vmem>>, %arg4: memref<784x400xf32, #tpu.memory_space<vmem>>, %arg5: memref<1x400xf32, #tpu.memory_space<vmem>>, %arg6: memref<400x144xf32, #tpu.memory_space<vmem>>, %arg7: memref<1x144xf32, #tpu.memory_space<vmem>>, %arg8: memref<144x128xf32, #tpu.memory_space<vmem>>, %arg9: memref<1x128xf32, #tpu.memory_space<vmem>>, %arg10: memref<128x768xf32, #tpu.memory_space<vmem>>, %arg11: memref<8x768xf32, #tpu.memory_space<vmem>>, %arg12: memref<1x768xf32, #tpu.memory_space<vmem>>, %arg13: memref<1x768xf32, #tpu.memory_space<vmem>>, %arg14: memref<1x768xf32, #tpu.memory_space<vmem>>, %arg15: memref<2x768xf32, #tpu.memory_space<vmem>>) attributes {dimension_semantics = [], scalar_prefetch = 0 : i64, scratch_operands = 0 : i64, tpu.core_type = #tpu.core_type<tc>} {
    %c0 = arith.constant 0 : index
    %c0_0 = arith.constant 0 : index
    %0 = vector.load %arg0[%c0, %c0_0] : memref<2x768xf32, #tpu.memory_space<vmem>>, vector<2x768xf32>
    %c0_1 = arith.constant 0 : index
    %c0_2 = arith.constant 0 : index
    %1 = vector.load %arg2[%c0_1, %c0_2] : memref<768x784xf32, #tpu.memory_space<vmem>>, vector<768x784xf32>
    %cst = arith.constant dense<0.000000e+00> : vector<2x784xf32>
    %2 = tpu.matmul %0, %1, %cst {dimension_numbers = #tpu.dot_dimension_numbers<[1], [0], [0], [1], [0, 0, 1, 1], [], []>} : vector<2x768xf32>, vector<768x784xf32>, vector<2x784xf32> -> vector<2x784xf32>
    %c0_3 = arith.constant 0 : index
    %c0_4 = arith.constant 0 : index
    %3 = vector.load %arg3[%c0_3, %c0_4] : memref<1x784xf32, #tpu.memory_space<vmem>>, vector<1x784xf32>
    %4 = vector.broadcast %3 : vector<1x784xf32> to vector<2x784xf32>
    %5 = arith.addf %2, %4 : vector<2x784xf32>
    %cst_5 = arith.constant 0.000000e+00 : f32
    %6 = vector.broadcast %cst_5 : f32 to vector<2x784xf32>
    %7 = arith.cmpf oge, %5, %6 : vector<2x784xf32>
    %cst_6 = arith.constant 0.00999999977 : f32
    %8 = vector.broadcast %cst_6 : f32 to vector<2x784xf32>
    %9 = arith.mulf %8, %5 : vector<2x784xf32>
    %10 = arith.select %7, %5, %9 : vector<2x784xi1>, vector<2x784xf32>
    %c0_7 = arith.constant 0 : index
    %c0_8 = arith.constant 0 : index
    %11 = vector.load %arg4[%c0_7, %c0_8] : memref<784x400xf32, #tpu.memory_space<vmem>>, vector<784x400xf32>
    %cst_9 = arith.constant dense<0.000000e+00> : vector<2x400xf32>
    %12 = tpu.matmul %10, %11, %cst_9 {dimension_numbers = #tpu.dot_dimension_numbers<[1], [0], [0], [1], [0, 0, 1, 1], [], []>} : vector<2x784xf32>, vector<784x400xf32>, vector<2x400xf32> -> vector<2x400xf32>
    %c0_10 = arith.constant 0 : index
    %c0_11 = arith.constant 0 : index
    %13 = vector.load %arg5[%c0_10, %c0_11] : memref<1x400xf32, #tpu.memory_space<vmem>>, vector<1x400xf32>
    %14 = vector.broadcast %13 : vector<1x400xf32> to vector<2x400xf32>
    %15 = arith.addf %12, %14 : vector<2x400xf32>
    %cst_12 = arith.constant 0.000000e+00 : f32
    %16 = vector.broadcast %cst_12 : f32 to vector<2x400xf32>
    %17 = arith.cmpf oge, %15, %16 : vector<2x400xf32>
    %cst_13 = arith.constant 0.00999999977 : f32
    %18 = vector.broadcast %cst_13 : f32 to vector<2x400xf32>
    %19 = arith.mulf %18, %15 : vector<2x400xf32>
    %20 = arith.select %17, %15, %19 : vector<2x400xi1>, vector<2x400xf32>
    %c0_14 = arith.constant 0 : index
    %c0_15 = arith.constant 0 : index
    %21 = vector.load %arg6[%c0_14, %c0_15] : memref<400x144xf32, #tpu.memory_space<vmem>>, vector<400x144xf32>
    %cst_16 = arith.constant dense<0.000000e+00> : vector<2x144xf32>
    %22 = tpu.matmul %20, %21, %cst_16 {dimension_numbers = #tpu.dot_dimension_numbers<[1], [0], [0], [1], [0, 0, 1, 1], [], []>} : vector<2x400xf32>, vector<400x144xf32>, vector<2x144xf32> -> vector<2x144xf32>
    %c0_17 = arith.constant 0 : index
    %c0_18 = arith.constant 0 : index
    %23 = vector.load %arg7[%c0_17, %c0_18] : memref<1x144xf32, #tpu.memory_space<vmem>>, vector<1x144xf32>
    %24 = vector.broadcast %23 : vector<1x144xf32> to vector<2x144xf32>
    %25 = arith.addf %22, %24 : vector<2x144xf32>
    %cst_19 = arith.constant 0.000000e+00 : f32
    %26 = vector.broadcast %cst_19 : f32 to vector<2x144xf32>
    %27 = arith.cmpf oge, %25, %26 : vector<2x144xf32>
    %cst_20 = arith.constant 0.00999999977 : f32
    %28 = vector.broadcast %cst_20 : f32 to vector<2x144xf32>
    %29 = arith.mulf %28, %25 : vector<2x144xf32>
    %30 = arith.select %27, %25, %29 : vector<2x144xi1>, vector<2x144xf32>
    %c0_21 = arith.constant 0 : index
    %c0_22 = arith.constant 0 : index
    %31 = vector.load %arg8[%c0_21, %c0_22] : memref<144x128xf32, #tpu.memory_space<vmem>>, vector<144x128xf32>
    %cst_23 = arith.constant dense<0.000000e+00> : vector<2x128xf32>
    %32 = tpu.matmul %30, %31, %cst_23 {dimension_numbers = #tpu.dot_dimension_numbers<[1], [0], [0], [1], [0, 0, 1, 1], [], []>} : vector<2x144xf32>, vector<144x128xf32>, vector<2x128xf32> -> vector<2x128xf32>
    %c0_24 = arith.constant 0 : index
    %c0_25 = arith.constant 0 : index
    %33 = vector.load %arg9[%c0_24, %c0_25] : memref<1x128xf32, #tpu.memory_space<vmem>>, vector<1x128xf32>
    %34 = vector.broadcast %33 : vector<1x128xf32> to vector<2x128xf32>
    %35 = arith.addf %32, %34 : vector<2x128xf32>
    %cst_26 = arith.constant 0.000000e+00 : f32
    %36 = vector.broadcast %cst_26 : f32 to vector<2x128xf32>
    %37 = arith.cmpf oge, %35, %36 : vector<2x128xf32>
    %cst_27 = arith.constant 0.00999999977 : f32
    %38 = vector.broadcast %cst_27 : f32 to vector<2x128xf32>
    %39 = arith.mulf %38, %35 : vector<2x128xf32>
    %40 = arith.select %37, %35, %39 : vector<2x128xi1>, vector<2x128xf32>
    %c0_28 = arith.constant 0 : index
    %c0_29 = arith.constant 0 : index
    %41 = vector.load %arg10[%c0_28, %c0_29] : memref<128x768xf32, #tpu.memory_space<vmem>>, vector<128x768xf32>
    %cst_30 = arith.constant dense<0.000000e+00> : vector<2x768xf32>
    %42 = tpu.matmul %40, %41, %cst_30 {dimension_numbers = #tpu.dot_dimension_numbers<[1], [0], [0], [1], [0, 0, 1, 1], [], []>} : vector<2x128xf32>, vector<128x768xf32>, vector<2x768xf32> -> vector<2x768xf32>
    %c0_31 = arith.constant 0 : index
    %c0_32 = arith.constant 0 : index
    %43 = vector.load %arg1[%c0_31, %c0_32] : memref<2x8xf32, #tpu.memory_space<vmem>>, vector<2x8xf32>
    %c0_33 = arith.constant 0 : index
    %c0_34 = arith.constant 0 : index
    %44 = vector.load %arg11[%c0_33, %c0_34] : memref<8x768xf32, #tpu.memory_space<vmem>>, vector<8x768xf32>
    %cst_35 = arith.constant dense<0.000000e+00> : vector<2x768xf32>
    %45 = tpu.matmul %43, %44, %cst_35 {dimension_numbers = #tpu.dot_dimension_numbers<[1], [0], [0], [1], [0, 0, 1, 1], [], []>} : vector<2x8xf32>, vector<8x768xf32>, vector<2x768xf32> -> vector<2x768xf32>
    %46 = arith.addf %42, %45 : vector<2x768xf32>
    %c0_36 = arith.constant 0 : index
    %c0_37 = arith.constant 0 : index
    %47 = vector.load %arg12[%c0_36, %c0_37] : memref<1x768xf32, #tpu.memory_space<vmem>>, vector<1x768xf32>
    %48 = vector.broadcast %47 : vector<1x768xf32> to vector<2x768xf32>
    %49 = arith.addf %46, %48 : vector<2x768xf32>
    %cst_38 = arith.constant dense<0.000000e+00> : vector<2xf32>
    %50 = vector.multi_reduction <add>, %49, %cst_38 [1] : vector<2x768xf32> to vector<2xf32>
    %51 = vector.shape_cast %50 : vector<2xf32> to vector<2x1xf32>
    %cst_39 = arith.constant 7.680000e+02 : f32
    %52 = vector.broadcast %cst_39 : f32 to vector<2x1xf32>
    %53 = arith.divf %51, %52 : vector<2x1xf32>
    %54 = vector.broadcast %53 : vector<2x1xf32> to vector<2x768xf32>
    %55 = arith.subf %49, %54 : vector<2x768xf32>
    %56 = arith.mulf %55, %55 : vector<2x768xf32>
    %cst_40 = arith.constant dense<0.000000e+00> : vector<2xf32>
    %57 = vector.multi_reduction <add>, %56, %cst_40 [1] : vector<2x768xf32> to vector<2xf32>
    %58 = vector.shape_cast %57 : vector<2xf32> to vector<2x1xf32>
    %cst_41 = arith.constant 7.680000e+02 : f32
    %59 = vector.broadcast %cst_41 : f32 to vector<2x1xf32>
    %60 = arith.divf %58, %59 : vector<2x1xf32>
    %61 = vector.broadcast %53 : vector<2x1xf32> to vector<2x768xf32>
    %62 = arith.subf %49, %61 : vector<2x768xf32>
    %cst_42 = arith.constant 9.99999974E-6 : f32
    %63 = vector.broadcast %cst_42 : f32 to vector<2x1xf32>
    %64 = arith.addf %60, %63 : vector<2x1xf32>
    %65 = math.rsqrt %64 : vector<2x1xf32>
    %66 = vector.broadcast %65 : vector<2x1xf32> to vector<2x768xf32>
    %67 = arith.mulf %62, %66 : vector<2x768xf32>
    %c0_43 = arith.constant 0 : index
    %c0_44 = arith.constant 0 : index
    %68 = vector.load %arg13[%c0_43, %c0_44] : memref<1x768xf32, #tpu.memory_space<vmem>>, vector<1x768xf32>
    %69 = vector.broadcast %68 : vector<1x768xf32> to vector<2x768xf32>
    %70 = arith.mulf %67, %69 : vector<2x768xf32>
    %c0_45 = arith.constant 0 : index
    %c0_46 = arith.constant 0 : index
    %71 = vector.load %arg14[%c0_45, %c0_46] : memref<1x768xf32, #tpu.memory_space<vmem>>, vector<1x768xf32>
    %72 = vector.broadcast %71 : vector<1x768xf32> to vector<2x768xf32>
    %73 = arith.addf %70, %72 : vector<2x768xf32>
    %74 = math.tanh %73 : vector<2x768xf32>
    %c0_47 = arith.constant 0 : index
    %c0_48 = arith.constant 0 : index
    %75 = vector.load %arg15[%c0_47, %c0_48] : memref<2x768xf32, #tpu.memory_space<vmem>>, vector<2x768xf32>
    tpu.vector_store %arg15[%c0_47, %c0_48], %74 {strides = array<i32>} : memref<2x768xf32, #tpu.memory_space<vmem>>, vector<2x768xf32>,
    return
  }
}

</mosaic_0001>

<bundles_post_ra>
// kernel: forward.1
= control target key start
LH: loop header
LB: loop body
LE: loop exit
PB: predicated region body
PF: predicated region fallthrough
CT: control target
= control target key end

     0   :  { %vm2078_vm7 = vcmask 130048   ;;  %vm3129_vm12 = vcmask 64512   ;;  %s8084_s2 = inlined_call_operand.vmem [shape: f32[768,784], index: 2, kind: input, shape index: {}]   ;;  %s8085_s0 = inlined_call_operand.vmem [shape: f32[2,768], index: 0, kind: input, shape index: {}]   ;;  %s8086_s3 = inlined_call_operand.vmem [shape: f32[1,784], index: 3, kind: input, shape index: {}]   ;;  %s8087_s4 = inlined_call_operand.vmem [shape: f32[784,400], index: 4, kind: input, shape index: {}]   ;;  %s8088_s6 = inlined_call_operand.vmem [shape: f32[400,144], index: 6, kind: input, shape index: {}]   ;;  %s8089_s5 = inlined_call_operand.vmem [shape: f32[1,400], index: 5, kind: input, shape index: {}]   ;;  %s8090_s8 = inlined_call_operand.vmem [shape: f32[144,128], index: 8, kind: input, shape index: {}]   ;;  %s8091_s11 = inlined_call_operand.vmem [shape: f32[8,768], index: 11, kind: input, shape index: {}]   ;;  %s8092_s1 = inlined_call_operand.vmem [shape: f32[2,8], index: 1, kind: input, shape index: {}]   ;;  %s8093_s10 = inlined_call_operand.vmem [shape: f32[128,768], index: 10, kind: input, shape index: {}]   ;;  %s8094_s7 = inlined_call_operand.vmem [shape: f32[1,144], index: 7, kind: input, shape index: {}]   ;;  %s8095_s9 = inlined_call_operand.vmem [shape: f32[1,128], index: 9, kind: input, shape index: {}]   ;;  %s8096_s12 = inlined_call_operand.vmem [shape: f32[1,768], index: 12, kind: input, shape index: {}]   ;;  %s8097_s13 = inlined_call_operand.vmem [shape: f32[1,768], index: 13, kind: input, shape index: {}]   ;;  %s8098_s14 = inlined_call_operand.vmem [shape: f32[1,768], index: 14, kind: input, shape index: {}]   ;;  %s8099_s15 = inlined_call_operand.vmem [shape: f32[2,768], index: 15, kind: output, shape index: {}]  }
   0x1   :  { %v158_v0 = vld [vmem:[%s8084_s2 + $0x350] sm:$0xff]  ;;  %v157_v2 = vld [vmem:[%s8084_s2 + $0x348] sm:$0xff]  ;;  %v151_v4 = vld [vmem:[%s8084_s2 + $0x318] sm:$0xff] }
   0x2   :  { %v382_v1 = vld [vmem:[%s8084_s2 + $0xa50] sm:$0xff]  ;;  %794 = vmatprep.subr.mxu0 %v158_v0  ;;  %v381_v3 = vld [vmem:[%s8084_s2 + $0xa48] sm:$0xff]  ;;  %v375_v5 = vld [vmem:[%s8084_s2 + $0xa18] sm:$0xff] }
   0x3   :  { %865 = vmatprep.subr.mxu1 %v382_v1  ;;  %795 = vmatpush1.msra.mxu0 %v157_v2  ;;  %v150_v6 = vld [vmem:[%s8084_s2 + $0x310] sm:$0xff]  ;;  %v144_v8 = vld [vmem:[%s8084_s2 + $0x2e0] sm:$0xff]  ;;  %v143_v10 = vld [vmem:[%s8084_s2 + $0x2d8] sm:$0xff] }
   0x4   :  { %866 = vmatpush1.msra.mxu1 %v381_v3  ;;  %v374_v7 = vld [vmem:[%s8084_s2 + $0xa10] sm:$0xff]  ;;  %796 = vmatprep.subr.mxu0 %v151_v4  ;;  %v368_v9 = vld [vmem:[%s8084_s2 + $0x9e0] sm:$0xff]  ;;  %v367_v11 = vld [vmem:[%s8084_s2 + $0x9d8] sm:$0xff] }
   0x5   :  { %867 = vmatprep.subr.mxu1 %v375_v5  ;;  %797 = vmatpush1.msra.mxu0 %v150_v6  ;;  %v137_v12 = vld [vmem:[%s8084_s2 + $0x2a8] sm:$0xff]  ;;  %v136_v14 = vld [vmem:[%s8084_s2 + $0x2a0] sm:$0xff]  ;;  %v130_v16 = vld [vmem:[%s8084_s2 + $0x270] sm:$0xff] }
   0x6   :  { %868 = vmatpush1.msra.mxu1 %v374_v7  ;;  %v361_v13 = vld [vmem:[%s8084_s2 + $0x9a8] sm:$0xff]  ;;  %798 = vmatprep.subr.mxu0 %v144_v8  ;;  %v360_v15 = vld [vmem:[%s8084_s2 + $0x9a0] sm:$0xff]  ;;  %v354_v17 = vld [vmem:[%s8084_s2 + $0x970] sm:$0xff] }
   0x7   :  { %869 = vmatprep.subr.mxu1 %v368_v9  ;;  %799 = vmatpush1.msra.mxu0 %v143_v10  ;;  %v129_v18 = vld [vmem:[%s8084_s2 + $0x268] sm:$0xff]  ;;  %v123_v20 = vld [vmem:[%s8084_s2 + $0x238] sm:$0xff]  ;;  %v122_v22 = vld [vmem:[%s8084_s2 + $0x230] sm:$0xff] }
   0x8   :  { %870 = vmatpush1.msra.mxu1 %v367_v11  ;;  %800 = vmatprep.subr.mxu0 %v137_v12  ;;  %v353_v19 = vld [vmem:[%s8084_s2 + $0x968] sm:$0xff]  ;;  %v347_v21 = vld [vmem:[%s8084_s2 + $0x938] sm:$0xff]  ;;  %v346_v23 = vld [vmem:[%s8084_s2 + $0x930] sm:$0xff] }
   0x9   :  { %871 = vmatprep.subr.mxu1 %v361_v13  ;;  %801 = vmatpush1.msra.mxu0 %v136_v14  ;;  %v116_v24 = vld [vmem:[%s8084_s2 + $0x200] sm:$0xff]  ;;  %v115_v26 = vld [vmem:[%s8084_s2 + $0x1f8] sm:$0xff]  ;;  %v109_v28 = vld [vmem:[%s8084_s2 + $0x1c8] sm:$0xff] }
   0xa   :  { %872 = vmatpush1.msra.mxu1 %v360_v15  ;;  %802 = vmatprep.subr.mxu0 %v130_v16  ;;  %v340_v25 = vld [vmem:[%s8084_s2 + $0x900] sm:$0xff]  ;;  %v339_v27 = vld [vmem:[%s8084_s2 + $0x8f8] sm:$0xff]  ;;  %v333_v29 = vld [vmem:[%s8084_s2 + $0x8c8] sm:$0xff] }
   0xb   :  { %873 = vmatprep.subr.mxu1 %v354_v17  ;;  %803 = vmatpush1.msra.mxu0 %v129_v18  ;;  %v108_v30 = vld [vmem:[%s8084_s2 + $0x1c0] sm:$0xff]  ;;  %v102_v32 = vld [vmem:[%s8084_s2 + $0x190] sm:$0xff]  ;;  %v101_v34 = vld [vmem:[%s8084_s2 + $0x188] sm:$0xff] }
   0xc   :  { %874 = vmatpush1.msra.mxu1 %v353_v19  ;;  %804 = vmatprep.subr.mxu0 %v123_v20  ;;  %v332_v31 = vld [vmem:[%s8084_s2 + $0x8c0] sm:$0xff]  ;;  %v326_v33 = vld [vmem:[%s8084_s2 + $0x890] sm:$0xff]  ;;  %v325_v35 = vld [vmem:[%s8084_s2 + $0x888] sm:$0xff] }
   0xd   :  { %875 = vmatprep.subr.mxu1 %v347_v21  ;;  %805 = vmatpush1.msra.mxu0 %v122_v22  ;;  %v95_v36 = vld [vmem:[%s8084_s2 + $0x158] sm:$0xff]  ;;  %v94_v38 = vld [vmem:[%s8084_s2 + $0x150] sm:$0xff]  ;;  %v88_v40 = vld [vmem:[%s8084_s2 + $0x120] sm:$0xff] }
   0xe   :  { %876 = vmatpush1.msra.mxu1 %v346_v23  ;;  %806 = vmatprep.subr.mxu0 %v116_v24  ;;  %v319_v37 = vld [vmem:[%s8084_s2 + $0x858] sm:$0xff]  ;;  %v318_v39 = vld [vmem:[%s8084_s2 + $0x850] sm:$0xff]  ;;  %v312_v41 = vld [vmem:[%s8084_s2 + $0x820] sm:$0xff] }
   0xf   :  { %877 = vmatprep.subr.mxu1 %v340_v25  ;;  %807 = vmatpush1.msra.mxu0 %v115_v26  ;;  %v87_v42 = vld [vmem:[%s8084_s2 + $0x118] sm:$0xff]  ;;  %v81_v44 = vld [vmem:[%s8084_s2 + $0xe8] sm:$0xff]  ;;  %v80_v46 = vld [vmem:[%s8084_s2 + $0xe0] sm:$0xff] }
  0x10   :  { %878 = vmatpush1.msra.mxu1 %v339_v27  ;;  %808 = vmatprep.subr.mxu0 %v109_v28  ;;  %v311_v43 = vld [vmem:[%s8084_s2 + $0x818] sm:$0xff]  ;;  %v305_v45 = vld [vmem:[%s8084_s2 + $0x7e8] sm:$0xff]  ;;  %v304_v47 = vld [vmem:[%s8084_s2 + $0x7e0] sm:$0xff] }
  0x11   :  { %879 = vmatprep.subr.mxu1 %v333_v29  ;;  %809 = vmatpush1.msra.mxu0 %v108_v30  ;;  %v74_v48 = vld [vmem:[%s8084_s2 + $0xb0] sm:$0xff]  ;;  %v73_v50 = vld [vmem:[%s8084_s2 + $0xa8] sm:$0xff]  ;;  %v67_v52 = vld [vmem:[%s8084_s2 + $0x78] sm:$0xff]  ;;  %v726_v30 = vlaneseq }
  0x12   :  { %880 = vmatpush1.msra.mxu1 %v332_v31  ;;  %810 = vmatprep.subr.mxu0 %v102_v32  ;;  %v298_v49 = vld [vmem:[%s8084_s2 + $0x7b0] sm:$0xff]  ;;  %v297_v51 = vld [vmem:[%s8084_s2 + $0x7a8] sm:$0xff]  ;;  %v291_v53 = vld [vmem:[%s8084_s2 + $0x778] sm:$0xff]  ;;  %v3902_v31 = vmov 1983009808  }
  0x13   :  { %881 = vmatprep.subr.mxu1 %v326_v33  ;;  %811 = vmatpush1.msra.mxu0 %v101_v34  ;;  %v66_v54 = vld [vmem:[%s8084_s2 + $0x70] sm:$0xff]  ;;  %v60_v56 = vld [vmem:[%s8084_s2 + $0x40] sm:$0xff]  ;;  %v59_v58 = vld [vmem:[%s8084_s2 + $0x38] sm:$0xff]  ;;  %v765_v32 = vunpack.c.l.s4 %v3902_v31 }
  0x14   :  { %882 = vmatpush1.msra.mxu1 %v325_v35  ;;  %812 = vmatprep.subr.mxu0 %v95_v36  ;;  %v290_v55 = vld [vmem:[%s8084_s2 + $0x770] sm:$0xff]  ;;  %v284_v57 = vld [vmem:[%s8084_s2 + $0x740] sm:$0xff]  ;;  %v283_v59 = vld [vmem:[%s8084_s2 + $0x738] sm:$0xff] }
  0x15   :  { %883 = vmatprep.subr.mxu1 %v319_v37  ;;  %813 = vmatpush1.msra.mxu0 %v94_v38  ;;  %v53_v60 = vld [vmem:[%s8084_s2 + $0x8] sm:$0xff]  ;;  %v52_v62 = vld [vmem:[%s8084_s2] sm:$0xff]  ;;  %v270_v0 = vld [vmem:[%s8084_s2 + $0x6d0] sm:$0xff] }
  0x16   :  { %884 = vmatpush1.msra.mxu1 %v318_v39  ;;  %814 = vmatprep.subr.mxu0 %v88_v40  ;;  %v277_v61 = vld [vmem:[%s8084_s2 + $0x708] sm:$0xff]  ;;  %v276_v63 = vld [vmem:[%s8084_s2 + $0x700] sm:$0xff]  ;;  %v494_v1 = vld [vmem:[%s8084_s2 + $0xdd0] sm:$0xff] }
  0x17   :  { %885 = vmatprep.subr.mxu1 %v312_v41  ;;  %815 = vmatpush1.msra.mxu0 %v87_v42  ;;  %v269_v2 = vld [vmem:[%s8084_s2 + $0x6c8] sm:$0xff]  ;;  %v263_v4 = vld [vmem:[%s8084_s2 + $0x698] sm:$0xff]  ;;  %v262_v6 = vld [vmem:[%s8084_s2 + $0x690] sm:$0xff]  ;;  %v4290_v41 = vshrl.u32 %v726_v30, 7  ;;  %v766_v42 = vunpack.c.0.s8 %v765_v32 }
  0x18   :  { %886 = vmatpush1.msra.mxu1 %v311_v43  ;;  %816 = vmatprep.subr.mxu0 %v81_v44  ;;  %v493_v3 = vld [vmem:[%s8084_s2 + $0xdc8] sm:$0xff]  ;;  %v487_v5 = vld [vmem:[%s8084_s2 + $0xd98] sm:$0xff]  ;;  %v486_v7 = vld [vmem:[%s8084_s2 + $0xd90] sm:$0xff] }
  0x19   :  { %887 = vmatprep.subr.mxu1 %v305_v45  ;;  %817 = vmatpush1.msra.mxu0 %v80_v46  ;;  %v256_v8 = vld [vmem:[%s8084_s2 + $0x660] sm:$0xff]  ;;  %v255_v10 = vld [vmem:[%s8084_s2 + $0x658] sm:$0xff]  ;;  %v249_v12 = vld [vmem:[%s8084_s2 + $0x628] sm:$0xff] }
  0x1a   :  { %888 = vmatpush1.msra.mxu1 %v304_v47  ;;  %818 = vmatprep.subr.mxu0 %v74_v48  ;;  %v480_v9 = vld [vmem:[%s8084_s2 + $0xd60] sm:$0xff]  ;;  %v479_v11 = vld [vmem:[%s8084_s2 + $0xd58] sm:$0xff]  ;;  %v473_v13 = vld [vmem:[%s8084_s2 + $0xd28] sm:$0xff] }
  0x1b   :  { %889 = vmatprep.subr.mxu1 %v298_v49  ;;  %819 = vmatpush1.msra.mxu0 %v73_v50  ;;  %v248_v14 = vld [vmem:[%s8084_s2 + $0x620] sm:$0xff]  ;;  %v242_v16 = vld [vmem:[%s8084_s2 + $0x5f0] sm:$0xff]  ;;  %v241_v18 = vld [vmem:[%s8084_s2 + $0x5e8] sm:$0xff] }
  0x1c   :  { %890 = vmatpush1.msra.mxu1 %v297_v51  ;;  %820 = vmatprep.subr.mxu0 %v67_v52  ;;  %v472_v15 = vld [vmem:[%s8084_s2 + $0xd20] sm:$0xff]  ;;  %v466_v17 = vld [vmem:[%s8084_s2 + $0xcf0] sm:$0xff]  ;;  %v465_v19 = vld [vmem:[%s8084_s2 + $0xce8] sm:$0xff]  ;;  %v4320_v52 = vsub.s32 %v766_v42, %v4290_v41 }
  0x1d   :  { %891 = vmatprep.subr.mxu1 %v291_v53  ;;  %821 = vmatpush1.msra.mxu0 %v66_v54  ;;  %v235_v20 = vld [vmem:[%s8084_s2 + $0x5b8] sm:$0xff]  ;;  %v234_v22 = vld [vmem:[%s8084_s2 + $0x5b0] sm:$0xff]  ;;  %v228_v24 = vld [vmem:[%s8084_s2 + $0x580] sm:$0xff] }
  0x1e   :  { %892 = vmatpush1.msra.mxu1 %v290_v55  ;;  %822 = vmatprep.subr.mxu0 %v60_v56  ;;  %v459_v21 = vld [vmem:[%s8084_s2 + $0xcb8] sm:$0xff]  ;;  %v458_v23 = vld [vmem:[%s8084_s2 + $0xcb0] sm:$0xff]  ;;  %v452_v25 = vld [vmem:[%s8084_s2 + $0xc80] sm:$0xff] }
  0x1f   :  { %893 = vmatprep.subr.mxu1 %v284_v57  ;;  %823 = vmatpush1.msra.mxu0 %v59_v58  ;;  %v227_v26 = vld [vmem:[%s8084_s2 + $0x578] sm:$0xff]  ;;  %v221_v28 = vld [vmem:[%s8084_s2 + $0x548] sm:$0xff]  ;;  %v220_v33 = vld [vmem:[%s8084_s2 + $0x540] sm:$0xff] }
  0x20   :  { %894 = vmatpush1.msra.mxu1 %v283_v59  ;;  %824 = vmatprep.subr.mxu0 %v53_v60  ;;  %v451_v27 = vld [vmem:[%s8084_s2 + $0xc78] sm:$0xff]  ;;  %v445_v29 = vld [vmem:[%s8084_s2 + $0xc48] sm:$0xff]  ;;  %v444_v34 = vld [vmem:[%s8084_s2 + $0xc40] sm:$0xff] }
  0x21   :  { %895 = vmatprep.subr.mxu1 %v277_v61  ;;  %825 = vmatpush1.msra.mxu0 %v52_v62  ;;  %v214_v35 = vld [vmem:[%s8084_s2 + $0x510] sm:$0xff]  ;;  %v213_v37 = vld [vmem:[%s8084_s2 + $0x508] sm:$0xff]  ;;  %v207_v39 = vld [vmem:[%s8084_s2 + $0x4d8] sm:$0xff] }
  0x22   :  { %896 = vmatpush1.msra.mxu1 %v276_v63  ;;  %826 = vmatprep.subr.mxu0 %v270_v0  ;;  %v438_v36 = vld [vmem:[%s8084_s2 + $0xc10] sm:$0xff]  ;;  %v437_v38 = vld [vmem:[%s8084_s2 + $0xc08] sm:$0xff]  ;;  %v431_v40 = vld [vmem:[%s8084_s2 + $0xbd8] sm:$0xff] }
  0x23   :  { %897 = vmatprep.subr.mxu1 %v494_v1  ;;  %827 = vmatpush2.msra.mxu0 %v269_v2  ;;  %v206_v43 = vld [vmem:[%s8084_s2 + $0x4d0] sm:$0xff]  ;;  %v200_v45 = vld [vmem:[%s8084_s2 + $0x4a0] sm:$0xff]  ;;  %v199_v47 = vld [vmem:[%s8084_s2 + $0x498] sm:$0xff] }
  0x24   :  { %898 = vmatpush2.msra.mxu1 %v493_v3  ;;  %828 = vmatprep.subr.mxu0 %v263_v4  ;;  %v430_v44 = vld [vmem:[%s8084_s2 + $0xbd0] sm:$0xff]  ;;  %v424_v46 = vld [vmem:[%s8084_s2 + $0xba0] sm:$0xff]  ;;  %v423_v48 = vld [vmem:[%s8084_s2 + $0xb98] sm:$0xff] }
  0x25   :  { %899 = vmatprep.subr.mxu1 %v487_v5  ;;  %829 = vmatpush2.msra.mxu0 %v262_v6  ;;  %v50_v49 = vld [vmem:[%s8085_s0] sm:$0xff]  ;;  %v193_v50 = vld [vmem:[%s8084_s2 + $0x468] sm:$0xff]  ;;  %v186_v55 = vld [vmem:[%s8084_s2 + $0x430] sm:$0xff] }
  0x26   :  { %900 = vmatpush2.msra.mxu1 %v486_v7  ;;  %830 = vmatprep.subr.mxu0 %v256_v8  ;;  %v417_v51 = vld [vmem:[%s8084_s2 + $0xb68] sm:$0xff]  ;;  %v192_v53 = vld [vmem:[%s8084_s2 + $0x460] sm:$0xff]  ;;  %v410_v56 = vld [vmem:[%s8084_s2 + $0xb30] sm:$0xff]  ;;  %v763_v57 = vcombine.high %v50_v49, %v50_v49  ;;  %v4347_v62 = vrot.slane %v50_v49, %v4320_v52 }
  0x27   :  { %901 = vmatprep.subr.mxu1 %v480_v9  ;;  %831 = vmatpush2.msra.mxu0 %v255_v10  ;;  %v416_v54 = vld [vmem:[%s8084_s2 + $0xb60] sm:$0xff]  ;;  %v185_v58 = vld [vmem:[%s8084_s2 + $0x428] sm:$0xff]  ;;  %v179_v60 = vld [vmem:[%s8084_s2 + $0x3f8] sm:$0xff] }
  0x28   :  { %902 = vmatpush2.msra.mxu1 %v479_v11  ;;  %832 = vmatprep.subr.mxu0 %v249_v12  ;;  %v409_v59 = vld [vmem:[%s8084_s2 + $0xb28] sm:$0xff]  ;;  %v403_v61 = vld [vmem:[%s8084_s2 + $0xaf8] sm:$0xff]  ;;  %v178_v63 = vld [vmem:[%s8084_s2 + $0x3f0] sm:$0xff]  ;;  %v4362_v3 = vrot.slane %v763_v57, %v4320_v52  ;;  %v4378_v8 = vcombine.high %v4347_v62, %v4347_v62 }
  0x29   :  { %903 = vmatprep.subr.mxu1 %v473_v13  ;;  %833 = vmatpush2.msra.mxu0 %v248_v14  ;;  %v402_v0 = vld [vmem:[%s8084_s2 + $0xaf0] sm:$0xff]  ;;  %v172_v1 = vld [vmem:[%s8084_s2 + $0x3c0] sm:$0xff]  ;;  %v171_v4 = vld [vmem:[%s8084_s2 + $0x3b8] sm:$0xff] }
  0x2a   :  { %904 = vmatpush2.msra.mxu1 %v472_v15  ;;  %834 = vmatprep.subr.mxu0 %v242_v16  ;;  %v396_v2 = vld [vmem:[%s8084_s2 + $0xac0] sm:$0xff]  ;;  %v395_v5 = vld [vmem:[%s8084_s2 + $0xab8] sm:$0xff]  ;;  %v165_v6 = vld [vmem:[%s8084_s2 + $0x388] sm:$0xff]  ;;  %v4388_v11 = vcombine.high %v4362_v3, %v4362_v3 }
  0x2b   :  { %905 = vmatprep.subr.mxu1 %v466_v17  ;;  %835 = vmatpush2.msra.mxu0 %v241_v18  ;;  %v389_v7 = vld [vmem:[%s8084_s2 + $0xa88] sm:$0xff]  ;;  %v164_v9 = vld [vmem:[%s8084_s2 + $0x380] sm:$0xff]  ;;  %v606_v12 = vld [vmem:[%s8084_s2 + $0x1150] sm:$0xff] }
  0x2c   :  { %906 = vmatpush2.msra.mxu1 %v465_v19  ;;  %836 = vmatprep.subr.mxu0 %v235_v20  ;;  %v388_v10 = vld [vmem:[%s8084_s2 + $0xa80] sm:$0xff]  ;;  %v605_v14 = vld [vmem:[%s8084_s2 + $0x1148] sm:$0xff]  ;;  %v159_v15 = vld [vmem:[%s8084_s2 + $0x358] sm:$0xff] }
  0x2d   :  { %907 = vmatprep.subr.mxu1 %v459_v21  ;;  %837 = vmatpush2.msra.mxu0 %v234_v22  ;;  %v160_v13 = vld [vmem:[%s8084_s2 + $0x360] sm:$0xff]  ;;  %v599_v16 = vld [vmem:[%s8084_s2 + $0x1118] sm:$0xff]  ;;  %v153_v17 = vld [vmem:[%s8084_s2 + $0x328] sm:$0xff] }
  0x2e   :  { %908 = vmatpush2.msra.mxu1 %v458_v23  ;;  %838 = vmatprep.subr.mxu0 %v228_v24  ;;  %v598_v18 = vld [vmem:[%s8084_s2 + $0x1110] sm:$0xff]  ;;  %v152_v19 = vld [vmem:[%s8084_s2 + $0x320] sm:$0xff]  ;;  %v591_v22 = vld [vmem:[%s8084_s2 + $0x10d8] sm:$0xff] }
  0x2f   :  { %909 = vmatprep.subr.mxu1 %v452_v25  ;;  %839 = vmatpush2.msra.mxu0 %v227_v26  ;;  %v592_v20 = vld [vmem:[%s8084_s2 + $0x10e0] sm:$0xff]  ;;  %v146_v21 = vld [vmem:[%s8084_s2 + $0x2f0] sm:$0xff]  ;;  %v145_v23 = vld [vmem:[%s8084_s2 + $0x2e8] sm:$0xff] }
  0x30   :  { %910 = vmatpush2.msra.mxu1 %v451_v27  ;;  %840 = vmatprep.subr.mxu0 %v221_v28  ;;  %v585_v24 = vld [vmem:[%s8084_s2 + $0x10a8] sm:$0xff]  ;;  %v139_v25 = vld [vmem:[%s8084_s2 + $0x2b8] sm:$0xff]  ;;  %v584_v26 = vld [vmem:[%s8084_s2 + $0x10a0] sm:$0xff] }
  0x31   :  { %911 = vmatprep.subr.mxu1 %v445_v29  ;;  %841 = vmatpush2.msra.mxu0 %v220_v33  ;;  %v138_v27 = vld [vmem:[%s8084_s2 + $0x2b0] sm:$0xff]  ;;  %v132_v29 = vld [vmem:[%s8084_s2 + $0x280] sm:$0xff]  ;;  %v577_v30 = vld [vmem:[%s8084_s2 + $0x1068] sm:$0xff] }
  0x32   :  { %912 = vmatpush2.msra.mxu1 %v444_v34  ;;  %842 = vmatprep.subr.mxu0 %v214_v35  ;;  %v578_v28 = vld [vmem:[%s8084_s2 + $0x1070] sm:$0xff]  ;;  %v131_v31 = vld [vmem:[%s8084_s2 + $0x278] sm:$0xff]  ;;  %v125_v33 = vld [vmem:[%s8084_s2 + $0x248] sm:$0xff] }
  0x33   :  { %913 = vmatprep.subr.mxu1 %v438_v36  ;;  %843 = vmatpush2.msra.mxu0 %v213_v37  ;;  %v571_v32 = vld [vmem:[%s8084_s2 + $0x1038] sm:$0xff]  ;;  %v570_v34 = vld [vmem:[%s8084_s2 + $0x1030] sm:$0xff]  ;;  %v124_v35 = vld [vmem:[%s8084_s2 + $0x240] sm:$0xff] }
  0x34   :  { %914 = vmatpush2.msra.mxu1 %v437_v38  ;;  %844 = vmatprep.subr.mxu0 %v207_v39  ;;  %v564_v36 = vld [vmem:[%s8084_s2 + $0x1000] sm:$0xff]  ;;  %v118_v37 = vld [vmem:[%s8084_s2 + $0x210] sm:$0xff]  ;;  %v563_v38 = vld [vmem:[%s8084_s2 + $0xff8] sm:$0xff] }
  0x35   :  { %915 = vmatprep.subr.mxu1 %v431_v40  ;;  %845 = vmatpush2.msra.mxu0 %v206_v43  ;;  %v117_v39 = vld [vmem:[%s8084_s2 + $0x208] sm:$0xff]  ;;  %v111_v42 = vld [vmem:[%s8084_s2 + $0x1d8] sm:$0xff]  ;;  %v556_v43 = vld [vmem:[%s8084_s2 + $0xfc0] sm:$0xff] }
  0x36   :  { %916 = vmatpush2.msra.mxu1 %v430_v44  ;;  %846 = vmatprep.subr.mxu0 %v200_v45  ;;  %v557_v40 = vld [vmem:[%s8084_s2 + $0xfc8] sm:$0xff]  ;;  %v110_v44 = vld [vmem:[%s8084_s2 + $0x1d0] sm:$0xff]  ;;  %v543_v49 = vld [vmem:[%s8084_s2 + $0xf58] sm:$0xff] }
  0x37   :  { %917 = vmatprep.subr.mxu1 %v424_v46  ;;  %847 = vmatpush2.msra.mxu0 %v199_v47  ;;  %v550_v45 = vld [vmem:[%s8084_s2 + $0xf90] sm:$0xff]  ;;  %v104_v46 = vld [vmem:[%s8084_s2 + $0x1a0] sm:$0xff]  ;;  %v549_v47 = vld [vmem:[%s8084_s2 + $0xf88] sm:$0xff] }
  0x38   :  { %918 = vmatpush2.msra.mxu1 %v423_v48  ;;  %848 = vmatprep.subr.mxu0 %v193_v50  ;;  %v103_v48 = vld [vmem:[%s8084_s2 + $0x198] sm:$0xff]  ;;  %v97_v50 = vld [vmem:[%s8084_s2 + $0x168] sm:$0xff] }
  0x39   :  { %919 = vmatprep.subr.mxu1 %v417_v51  ;;  %849 = vmatpush2.msra.mxu0 %v192_v53  ;;  %v542_v51 = vld [vmem:[%s8084_s2 + $0xf50] sm:$0xff]  ;;  %v96_v53 = vld [vmem:[%s8084_s2 + $0x160] sm:$0xff]  ;;  %v89_v57 = vld [vmem:[%s8084_s2 + $0x128] sm:$0xff] }
  0x3a   :  { %920 = vmatpush2.msra.mxu1 %v416_v54  ;;  %850 = vmatprep.subr.mxu0 %v186_v55  ;;  %v536_v54 = vld [vmem:[%s8084_s2 + $0xf20] sm:$0xff]  ;;  %v90_v55 = vld [vmem:[%s8084_s2 + $0x130] sm:$0xff] }
  0x3b   :  { %921 = vmatprep.subr.mxu1 %v410_v56  ;;  %851 = vmatpush2.msra.mxu0 %v185_v58  ;;  %v535_v56 = vld [vmem:[%s8084_s2 + $0xf18] sm:$0xff]  ;;  %v529_v58 = vld [vmem:[%s8084_s2 + $0xee8] sm:$0xff] }
  0x3c   :  { %922 = vmatpush2.msra.mxu1 %v409_v59  ;;  %852 = vmatprep.subr.mxu0 %v179_v60  ;;  %v83_v59 = vld [vmem:[%s8084_s2 + $0xf8] sm:$0xff]  ;;  %v528_v60 = vld [vmem:[%s8084_s2 + $0xee0] sm:$0xff] }
  0x3d   :  { %923 = vmatprep.subr.mxu1 %v403_v61  ;;  %853 = vmatpush2.msra.mxu0 %v178_v63  ;;  %v82_v61 = vld [vmem:[%s8084_s2 + $0xf0] sm:$0xff] }
  0x3e   :  { %924 = vmatpush2.msra.mxu1 %v402_v0  ;;  %854 = vmatprep.subr.mxu0 %v172_v1  ;;  %v522_v63 = vld [vmem:[%s8084_s2 + $0xeb0] sm:$0xff]  ;;  %v76_v0 = vld [vmem:[%s8084_s2 + $0xc0] sm:$0xff]  ;;  %v521_v1 = vld [vmem:[%s8084_s2 + $0xea8] sm:$0xff] }
  0x3f   :  { %925 = vmatprep.subr.mxu1 %v396_v2  ;;  %855 = vmatpush2.msra.mxu0 %v171_v4  ;;  %v75_v2 = vld [vmem:[%s8084_s2 + $0xb8] sm:$0xff] }
  0x40   :  { %926 = vmatpush2.msra.mxu1 %v395_v5  ;;  %856 = vmatprep.subr.mxu0 %v165_v6  ;;  %v515_v4 = vld [vmem:[%s8084_s2 + $0xe78] sm:$0xff]  ;;  %v69_v5 = vld [vmem:[%s8084_s2 + $0x88] sm:$0xff]  ;;  %v514_v6 = vld [vmem:[%s8084_s2 + $0xe70] sm:$0xff] }
  0x41   :  { %927 = vmatprep.subr.mxu1 %v389_v7  ;;  %857 = vmatpush2.msra.mxu0 %v164_v9  ;;  %v68_v7 = vld [vmem:[%s8084_s2 + $0x80] sm:$0xff] }
  0x42   :  { %858 = vmatprep.mubr.f32.mxu0 %v4378_v8  ;;  %928 = vmatpush2.msra.mxu1 %v388_v10  ;;  %v508_v9 = vld [vmem:[%s8084_s2 + $0xe40] sm:$0xff]  ;;  %v62_v10 = vld [vmem:[%s8084_s2 + $0x50] sm:$0xff] }
  0x43   :  { %859 = vmatmul.mubr.f32.vlgmr.msra.gmra.mxu0 %v4347_v62  ;;  %929 = vmatprep.mubr.f32.mxu1 %v4388_v11 }
  0x44   :  { %936 = vmatprep.subr.mxu0 %v606_v12  ;;  %1007 = vmatprep.subr.mxu1 %v160_v13  ;;  %v507_v12 = vld [vmem:[%s8084_s2 + $0xe38] sm:$0xff]  ;;  %v61_v13 = vld [vmem:[%s8084_s2 + $0x48] sm:$0xff] }
  0x45   :  { %930 = vmatmul.mubr.f32.vlgmr.msra.gmra.mxu1 %v4362_v3  ;;  %937 = vmatpush1.msra.mxu0 %v605_v14  ;;  %v501_v14 = vld [vmem:[%s8084_s2 + $0xe08] sm:$0xff] }
  0x46   :  { %1008 = vmatpush1.msra.mxu1 %v159_v15  ;;  %938 = vmatprep.subr.mxu0 %v599_v16  ;;  %v55_v15 = vld [vmem:[%s8084_s2 + $0x18] sm:$0xff]  ;;  %v500_v16 = vld [vmem:[%s8084_s2 + $0xe00] sm:$0xff] }
  0x47   :  { %1009 = vmatprep.subr.mxu1 %v153_v17  ;;  %939 = vmatpush1.msra.mxu0 %v598_v18  ;;  %v54_v17 = vld [vmem:[%s8084_s2 + $0x10] sm:$0xff] }
  0x48   :  { %1010 = vmatpush1.msra.mxu1 %v152_v19  ;;  %940 = vmatprep.subr.mxu0 %v592_v20  ;;  %v718_v18 = vld [vmem:[%s8084_s2 + $0x14d0] sm:$0xff]  ;;  %v272_v19 = vld [vmem:[%s8084_s2 + $0x6e0] sm:$0xff]  ;;  %v717_v20 = vld [vmem:[%s8084_s2 + $0x14c8] sm:$0xff] }
  0x49   :  { %1011 = vmatprep.subr.mxu1 %v146_v21  ;;  %941 = vmatpush1.msra.mxu0 %v591_v22  ;;  %v271_v21 = vld [vmem:[%s8084_s2 + $0x6d8] sm:$0xff] }
  0x4a   :  { %1012 = vmatpush1.msra.mxu1 %v145_v23  ;;  %942 = vmatprep.subr.mxu0 %v585_v24  ;;  %v711_v22 = vld [vmem:[%s8084_s2 + $0x1498] sm:$0xff]  ;;  %v265_v23 = vld [vmem:[%s8084_s2 + $0x6a8] sm:$0xff]  ;;  %v710_v24 = vld [vmem:[%s8084_s2 + $0x1490] sm:$0xff] }
  0x4b   :  { %1013 = vmatprep.subr.mxu1 %v139_v25  ;;  %943 = vmatpush1.msra.mxu0 %v584_v26  ;;  %v264_v25 = vld [vmem:[%s8084_s2 + $0x6a0] sm:$0xff] }
  0x4c   :  { %1014 = vmatpush1.msra.mxu1 %v138_v27  ;;  %944 = vmatprep.subr.mxu0 %v578_v28  ;;  %v704_v26 = vld [vmem:[%s8084_s2 + $0x1460] sm:$0xff]  ;;  %v258_v27 = vld [vmem:[%s8084_s2 + $0x670] sm:$0xff]  ;;  %v703_v28 = vld [vmem:[%s8084_s2 + $0x1458] sm:$0xff] }
  0x4d   :  { %1015 = vmatprep.subr.mxu1 %v132_v29  ;;  %945 = vmatpush1.msra.mxu0 %v577_v30  ;;  %v257_v29 = vld [vmem:[%s8084_s2 + $0x668] sm:$0xff] }
  0x4e   :  { %1016 = vmatpush1.msra.mxu1 %v131_v31  ;;  %946 = vmatprep.subr.mxu0 %v571_v32  ;;  %v697_v30 = vld [vmem:[%s8084_s2 + $0x1428] sm:$0xff]  ;;  %v251_v31 = vld [vmem:[%s8084_s2 + $0x638] sm:$0xff]  ;;  %v696_v32 = vld [vmem:[%s8084_s2 + $0x1420] sm:$0xff] }
  0x4f   :  { %1017 = vmatprep.subr.mxu1 %v125_v33  ;;  %947 = vmatpush1.msra.mxu0 %v570_v34  ;;  %v250_v33 = vld [vmem:[%s8084_s2 + $0x630] sm:$0xff] }
  0x50   :  { %1018 = vmatpush1.msra.mxu1 %v124_v35  ;;  %948 = vmatprep.subr.mxu0 %v564_v36  ;;  %v690_v34 = vld [vmem:[%s8084_s2 + $0x13f0] sm:$0xff]  ;;  %v244_v35 = vld [vmem:[%s8084_s2 + $0x600] sm:$0xff]  ;;  %v689_v36 = vld [vmem:[%s8084_s2 + $0x13e8] sm:$0xff] }
  0x51   :  { %1019 = vmatprep.subr.mxu1 %v118_v37  ;;  %949 = vmatpush1.msra.mxu0 %v563_v38  ;;  %v243_v37 = vld [vmem:[%s8084_s2 + $0x5f8] sm:$0xff] }
  0x52   :  { %1020 = vmatpush1.msra.mxu1 %v117_v39  ;;  %950 = vmatprep.subr.mxu0 %v557_v40  ;;  %v683_v38 = vld [vmem:[%s8084_s2 + $0x13b8] sm:$0xff]  ;;  %v237_v39 = vld [vmem:[%s8084_s2 + $0x5c8] sm:$0xff]  ;;  %v682_v40 = vld [vmem:[%s8084_s2 + $0x13b0] sm:$0xff] }
  0x53   :  { %1021 = vmatprep.subr.mxu1 %v111_v42  ;;  %951 = vmatpush1.msra.mxu0 %v556_v43  ;;  %v236_v42 = vld [vmem:[%s8084_s2 + $0x5c0] sm:$0xff] }
  0x54   :  { %1022 = vmatpush1.msra.mxu1 %v110_v44  ;;  %952 = vmatprep.subr.mxu0 %v550_v45  ;;  %v676_v43 = vld [vmem:[%s8084_s2 + $0x1380] sm:$0xff]  ;;  %v230_v44 = vld [vmem:[%s8084_s2 + $0x590] sm:$0xff]  ;;  %v675_v45 = vld [vmem:[%s8084_s2 + $0x1378] sm:$0xff] }
  0x55   :  { %1023 = vmatprep.subr.mxu1 %v104_v46  ;;  %953 = vmatpush1.msra.mxu0 %v549_v47  ;;  %v229_v46 = vld [vmem:[%s8084_s2 + $0x588] sm:$0xff] }
  0x56   :  { %1024 = vmatpush1.msra.mxu1 %v103_v48  ;;  %954 = vmatprep.subr.mxu0 %v543_v49  ;;  %v669_v47 = vld [vmem:[%s8084_s2 + $0x1348] sm:$0xff]  ;;  %v223_v48 = vld [vmem:[%s8084_s2 + $0x558] sm:$0xff]  ;;  %v668_v49 = vld [vmem:[%s8084_s2 + $0x1340] sm:$0xff] }
  0x57   :  { %1025 = vmatprep.subr.mxu1 %v97_v50  ;;  %955 = vmatpush1.msra.mxu0 %v542_v51  ;;  %v222_v50 = vld [vmem:[%s8084_s2 + $0x550] sm:$0xff] }
  0x58   :  { %1026 = vmatpush1.msra.mxu1 %v96_v53  ;;  %956 = vmatprep.subr.mxu0 %v536_v54  ;;  %v662_v51 = vld [vmem:[%s8084_s2 + $0x1310] sm:$0xff]  ;;  %v216_v53 = vld [vmem:[%s8084_s2 + $0x520] sm:$0xff]  ;;  %v661_v54 = vld [vmem:[%s8084_s2 + $0x1308] sm:$0xff] }
  0x59   :  { %1027 = vmatprep.subr.mxu1 %v90_v55  ;;  %957 = vmatpush1.msra.mxu0 %v535_v56  ;;  %v215_v55 = vld [vmem:[%s8084_s2 + $0x518] sm:$0xff] }
  0x5a   :  { %1028 = vmatpush1.msra.mxu1 %v89_v57  ;;  %958 = vmatprep.subr.mxu0 %v529_v58  ;;  %v655_v56 = vld [vmem:[%s8084_s2 + $0x12d8] sm:$0xff]  ;;  %v209_v57 = vld [vmem:[%s8084_s2 + $0x4e8] sm:$0xff]  ;;  %v654_v58 = vld [vmem:[%s8084_s2 + $0x12d0] sm:$0xff] }
  0x5b   :  { %1029 = vmatprep.subr.mxu1 %v83_v59  ;;  %959 = vmatpush1.msra.mxu0 %v528_v60  ;;  %v208_v59 = vld [vmem:[%s8084_s2 + $0x4e0] sm:$0xff] }
  0x5c   :  { %1030 = vmatpush1.msra.mxu1 %v82_v61  ;;  %960 = vmatprep.subr.mxu0 %v522_v63  ;;  %v648_v60 = vld [vmem:[%s8084_s2 + $0x12a0] sm:$0xff]  ;;  %v202_v61 = vld [vmem:[%s8084_s2 + $0x4b0] sm:$0xff]  ;;  %v647_v63 = vld [vmem:[%s8084_s2 + $0x1298] sm:$0xff] }
  0x5d   :  { %1031 = vmatprep.subr.mxu1 %v76_v0  ;;  %961 = vmatpush1.msra.mxu0 %v521_v1  ;;  %v201_v0 = vld [vmem:[%s8084_s2 + $0x4a8] sm:$0xff] }
  0x5e   :  { %1032 = vmatpush1.msra.mxu1 %v75_v2  ;;  %962 = vmatprep.subr.mxu0 %v515_v4  ;;  %v641_v1 = vld [vmem:[%s8084_s2 + $0x1268] sm:$0xff]  ;;  %v195_v2 = vld [vmem:[%s8084_s2 + $0x478] sm:$0xff]  ;;  %v640_v4 = vld [vmem:[%s8084_s2 + $0x1260] sm:$0xff] }
  0x5f   :  { %1033 = vmatprep.subr.mxu1 %v69_v5  ;;  %963 = vmatpush1.msra.mxu0 %v514_v6  ;;  %v194_v5 = vld [vmem:[%s8084_s2 + $0x470] sm:$0xff] }
  0x60   :  { %1034 = vmatpush1.msra.mxu1 %v68_v7  ;;  %964 = vmatprep.subr.mxu0 %v508_v9  ;;  %v634_v6 = vld [vmem:[%s8084_s2 + $0x1230] sm:$0xff]  ;;  %v188_v7 = vld [vmem:[%s8084_s2 + $0x440] sm:$0xff]  ;;  %v633_v9 = vld [vmem:[%s8084_s2 + $0x1228] sm:$0xff] }
  0x61   :  { %1035 = vmatprep.subr.mxu1 %v62_v10  ;;  %965 = vmatpush1.msra.mxu0 %v507_v12  ;;  %v187_v10 = vld [vmem:[%s8084_s2 + $0x438] sm:$0xff] }
  0x62   :  { %1036 = vmatpush1.msra.mxu1 %v61_v13  ;;  %966 = vmatprep.subr.mxu0 %v501_v14  ;;  %v627_v12 = vld [vmem:[%s8084_s2 + $0x11f8] sm:$0xff]  ;;  %v181_v13 = vld [vmem:[%s8084_s2 + $0x408] sm:$0xff]  ;;  %v626_v14 = vld [vmem:[%s8084_s2 + $0x11f0] sm:$0xff] }
  0x63   :  { %1037 = vmatprep.subr.mxu1 %v55_v15  ;;  %967 = vmatpush1.msra.mxu0 %v500_v16  ;;  %v180_v15 = vld [vmem:[%s8084_s2 + $0x400] sm:$0xff]  ;;  %v4757_v16 = vld.sshfl [vmem:[%s8085_s0 + $0x8] sm:$0x33 pattern:$0x76325410] }
  0x64   :  { %1038 = vmatpush1.msra.mxu1 %v54_v17  ;;  %968 = vmatprep.subr.mxu0 %v718_v18  ;;  %v620_v17 = vld [vmem:[%s8084_s2 + $0x11c0] sm:$0xff]  ;;  %v174_v18 = vld [vmem:[%s8084_s2 + $0x3d0] sm:$0xff] }
  0x65   :  { %1039 = vmatprep.subr.mxu1 %v272_v19  ;;  %969 = vmatpush2.msra.mxu0 %v717_v20  ;;  %v619_v19 = vld [vmem:[%s8084_s2 + $0x11b8] sm:$0xff]  ;;  %v173_v20 = vld [vmem:[%s8084_s2 + $0x3c8] sm:$0xff] }
  0x66   :  { %1040 = vmatpush2.msra.mxu1 %v271_v21  ;;  %970 = vmatprep.subr.mxu0 %v711_v22  ;;  %v613_v21 = vld [vmem:[%s8084_s2 + $0x1188] sm:$0xff]  ;;  %v167_v22 = vld [vmem:[%s8084_s2 + $0x398] sm:$0xff] }
  0x67   :  { %1041 = vmatprep.subr.mxu1 %v265_v23  ;;  %971 = vmatpush2.msra.mxu0 %v710_v24  ;;  %v4779_v23 = vcombine.high %v4757_v16, %v4757_v16  ;;  %v612_v24 = vld [vmem:[%s8084_s2 + $0x1180] sm:$0xff] }
  0x68   :  { %1042 = vmatpush2.msra.mxu1 %v264_v25  ;;  %972 = vmatprep.subr.mxu0 %v704_v26  ;;  %v166_v25 = vld [vmem:[%s8084_s2 + $0x390] sm:$0xff]  ;;  %v384_v26 = vld [vmem:[%s8084_s2 + $0xa60] sm:$0xff] }
  0x69   :  { %1043 = vmatprep.subr.mxu1 %v258_v27  ;;  %973 = vmatpush2.msra.mxu0 %v703_v28  ;;  %v608_v27 = vld [vmem:[%s8084_s2 + $0x1160] sm:$0xff]  ;;  %v383_v28 = vld [vmem:[%s8084_s2 + $0xa58] sm:$0xff] }
  0x6a   :  { %1044 = vmatpush2.msra.mxu1 %v257_v29  ;;  %974 = vmatprep.subr.mxu0 %v697_v30  ;;  %v607_v29 = vld [vmem:[%s8084_s2 + $0x1158] sm:$0xff]  ;;  %v377_v30 = vld [vmem:[%s8084_s2 + $0xa28] sm:$0xff] }
  0x6b   :  { %1045 = vmatprep.subr.mxu1 %v251_v31  ;;  %975 = vmatpush2.msra.mxu0 %v696_v32  ;;  %v601_v31 = vld [vmem:[%s8084_s2 + $0x1128] sm:$0xff]  ;;  %v376_v32 = vld [vmem:[%s8084_s2 + $0xa20] sm:$0xff] }
  0x6c   :  { %1046 = vmatpush2.msra.mxu1 %v250_v33  ;;  %976 = vmatprep.subr.mxu0 %v690_v34  ;;  %v600_v33 = vld [vmem:[%s8084_s2 + $0x1120] sm:$0xff]  ;;  %v370_v34 = vld [vmem:[%s8084_s2 + $0x9f0] sm:$0xff] }
  0x6d   :  { %1047 = vmatprep.subr.mxu1 %v244_v35  ;;  %977 = vmatpush2.msra.mxu0 %v689_v36  ;;  %v594_v35 = vld [vmem:[%s8084_s2 + $0x10f0] sm:$0xff]  ;;  %v369_v36 = vld [vmem:[%s8084_s2 + $0x9e8] sm:$0xff] }
  0x6e   :  { %1048 = vmatpush2.msra.mxu1 %v243_v37  ;;  %978 = vmatprep.subr.mxu0 %v683_v38  ;;  %v593_v37 = vld [vmem:[%s8084_s2 + $0x10e8] sm:$0xff]  ;;  %v363_v38 = vld [vmem:[%s8084_s2 + $0x9b8] sm:$0xff] }
  0x6f   :  { %1049 = vmatprep.subr.mxu1 %v237_v39  ;;  %979 = vmatpush2.msra.mxu0 %v682_v40  ;;  %v587_v39 = vld [vmem:[%s8084_s2 + $0x10b8] sm:$0xff]  ;;  %v362_v40 = vld [vmem:[%s8084_s2 + $0x9b0] sm:$0xff] }
  0x70   :  { %1050 = vmatpush2.msra.mxu1 %v236_v42  ;;  %980 = vmatprep.subr.mxu0 %v676_v43  ;;  %v586_v42 = vld [vmem:[%s8084_s2 + $0x10b0] sm:$0xff]  ;;  %v356_v43 = vld [vmem:[%s8084_s2 + $0x980] sm:$0xff] }
  0x71   :  { %1051 = vmatprep.subr.mxu1 %v230_v44  ;;  %981 = vmatpush2.msra.mxu0 %v675_v45  ;;  %v580_v44 = vld [vmem:[%s8084_s2 + $0x1080] sm:$0xff]  ;;  %v355_v45 = vld [vmem:[%s8084_s2 + $0x978] sm:$0xff] }
  0x72   :  { %1052 = vmatpush2.msra.mxu1 %v229_v46  ;;  %982 = vmatprep.subr.mxu0 %v669_v47  ;;  %v579_v46 = vld [vmem:[%s8084_s2 + $0x1078] sm:$0xff]  ;;  %v349_v47 = vld [vmem:[%s8084_s2 + $0x948] sm:$0xff] }
  0x73   :  { %1053 = vmatprep.subr.mxu1 %v223_v48  ;;  %983 = vmatpush2.msra.mxu0 %v668_v49  ;;  %v573_v48 = vld [vmem:[%s8084_s2 + $0x1048] sm:$0xff]  ;;  %v348_v49 = vld [vmem:[%s8084_s2 + $0x940] sm:$0xff] }
  0x74   :  { %1054 = vmatpush2.msra.mxu1 %v222_v50  ;;  %984 = vmatprep.subr.mxu0 %v662_v51  ;;  %v572_v50 = vld [vmem:[%s8084_s2 + $0x1040] sm:$0xff]  ;;  %v342_v51 = vld [vmem:[%s8084_s2 + $0x910] sm:$0xff] }
  0x75   :  { %1055 = vmatprep.subr.mxu1 %v216_v53  ;;  %985 = vmatpush2.msra.mxu0 %v661_v54  ;;  %v566_v53 = vld [vmem:[%s8084_s2 + $0x1010] sm:$0xff]  ;;  %v341_v54 = vld [vmem:[%s8084_s2 + $0x908] sm:$0xff] }
  0x76   :  { %1056 = vmatpush2.msra.mxu1 %v215_v55  ;;  %986 = vmatprep.subr.mxu0 %v655_v56  ;;  %v565_v55 = vld [vmem:[%s8084_s2 + $0x1008] sm:$0xff]  ;;  %v335_v56 = vld [vmem:[%s8084_s2 + $0x8d8] sm:$0xff] }
  0x77   :  { %1057 = vmatprep.subr.mxu1 %v209_v57  ;;  %987 = vmatpush2.msra.mxu0 %v654_v58  ;;  %v559_v57 = vld [vmem:[%s8084_s2 + $0xfd8] sm:$0xff]  ;;  %v334_v58 = vld [vmem:[%s8084_s2 + $0x8d0] sm:$0xff] }
  0x78   :  { %1058 = vmatpush2.msra.mxu1 %v208_v59  ;;  %988 = vmatprep.subr.mxu0 %v648_v60  ;;  %v558_v59 = vld [vmem:[%s8084_s2 + $0xfd0] sm:$0xff]  ;;  %v328_v60 = vld [vmem:[%s8084_s2 + $0x8a0] sm:$0xff] }
  0x79   :  { %1059 = vmatprep.subr.mxu1 %v202_v61  ;;  %989 = vmatpush2.msra.mxu0 %v647_v63  ;;  %v552_v61 = vld [vmem:[%s8084_s2 + $0xfa0] sm:$0xff]  ;;  %v327_v63 = vld [vmem:[%s8084_s2 + $0x898] sm:$0xff] }
  0x7a   :  { %1060 = vmatpush2.msra.mxu1 %v201_v0  ;;  %990 = vmatprep.subr.mxu0 %v641_v1  ;;  %v551_v0 = vld [vmem:[%s8084_s2 + $0xf98] sm:$0xff]  ;;  %v321_v1 = vld [vmem:[%s8084_s2 + $0x868] sm:$0xff] }
  0x7b   :  { %1061 = vmatprep.subr.mxu1 %v195_v2  ;;  %991 = vmatpush2.msra.mxu0 %v640_v4  ;;  %v545_v2 = vld [vmem:[%s8084_s2 + $0xf68] sm:$0xff]  ;;  %v320_v4 = vld [vmem:[%s8084_s2 + $0x860] sm:$0xff] }
  0x7c   :  { %1062 = vmatpush2.msra.mxu1 %v194_v5  ;;  %992 = vmatprep.subr.mxu0 %v634_v6  ;;  %v544_v5 = vld [vmem:[%s8084_s2 + $0xf60] sm:$0xff]  ;;  %v314_v6 = vld [vmem:[%s8084_s2 + $0x830] sm:$0xff] }
  0x7d   :  { %1063 = vmatprep.subr.mxu1 %v188_v7  ;;  %993 = vmatpush2.msra.mxu0 %v633_v9  ;;  %v538_v7 = vld [vmem:[%s8084_s2 + $0xf30] sm:$0xff]  ;;  %v313_v9 = vld [vmem:[%s8084_s2 + $0x828] sm:$0xff] }
  0x7e   :  { %1064 = vmatpush2.msra.mxu1 %v187_v10  ;;  %994 = vmatprep.subr.mxu0 %v627_v12  ;;  %v537_v10 = vld [vmem:[%s8084_s2 + $0xf28] sm:$0xff]  ;;  %v307_v12 = vld [vmem:[%s8084_s2 + $0x7f8] sm:$0xff] }
  0x7f   :  { %1065 = vmatprep.subr.mxu1 %v181_v13  ;;  %995 = vmatpush2.msra.mxu0 %v626_v14  ;;  %v531_v13 = vld [vmem:[%s8084_s2 + $0xef8] sm:$0xff]  ;;  %v306_v14 = vld [vmem:[%s8084_s2 + $0x7f0] sm:$0xff] }
  0x80   :  { %1066 = vmatpush2.msra.mxu1 %v180_v15  ;;  %996 = vmatprep.subr.mxu0 %v620_v17  ;;  %v530_v15 = vld [vmem:[%s8084_s2 + $0xef0] sm:$0xff]  ;;  %v300_v17 = vld [vmem:[%s8084_s2 + $0x7c0] sm:$0xff] }
  0x81   :  { %1067 = vmatprep.subr.mxu1 %v174_v18  ;;  %997 = vmatpush2.msra.mxu0 %v619_v19  ;;  %v524_v18 = vld [vmem:[%s8084_s2 + $0xec0] sm:$0xff]  ;;  %v299_v19 = vld [vmem:[%s8084_s2 + $0x7b8] sm:$0xff] }
  0x82   :  { %1068 = vmatpush2.msra.mxu1 %v173_v20  ;;  %998 = vmatprep.subr.mxu0 %v613_v21  ;;  %v523_v20 = vld [vmem:[%s8084_s2 + $0xeb8] sm:$0xff]  ;;  %v293_v21 = vld [vmem:[%s8084_s2 + $0x788] sm:$0xff] }
  0x83   :  { %1069 = vmatprep.subr.mxu1 %v167_v22  ;;  %999 = vmatpush2.msra.mxu0 %v612_v24  ;;  %v517_v22 = vld [vmem:[%s8084_s2 + $0xe88] sm:$0xff]  ;;  %v292_v24 = vld [vmem:[%s8084_s2 + $0x780] sm:$0xff] }
  0x84   :  { %1000 = vmatprep.mubr.f32.mxu0 %v4779_v23  ;;  %1070 = vmatpush2.msra.mxu1 %v166_v25  ;;  %v516_v25 = vld [vmem:[%s8084_s2 + $0xe80] sm:$0xff] }
  0x85   :  { %1001 = vmatmul.mubr.f32.vlgmr.msra.gmra.mxu0 %v4757_v16  ;;  %1071 = vmatprep.mubr.f32.mxu1 %v4378_v8 }
  0x86   :  { %1078 = vmatprep.subr.mxu0 %v384_v26  ;;  %1149 = vmatprep.subr.mxu1 %v608_v27  ;;  %v286_v26 = vld [vmem:[%s8084_s2 + $0x750] sm:$0xff] }
  0x87   :  { %1072 = vmatmul.mubr.f32.vlgmr.msra.gmra.mxu1 %v4347_v62  ;;  %1079 = vmatpush1.msra.mxu0 %v383_v28  ;;  %v510_v27 = vld [vmem:[%s8084_s2 + $0xe50] sm:$0xff]  ;;  %v285_v28 = vld [vmem:[%s8084_s2 + $0x748] sm:$0xff] }
  0x88   :  { %1150 = vmatpush1.msra.mxu1 %v607_v29  ;;  %1080 = vmatprep.subr.mxu0 %v377_v30  ;;  %v509_v29 = vld [vmem:[%s8084_s2 + $0xe48] sm:$0xff]  ;;  %v279_v30 = vld [vmem:[%s8084_s2 + $0x718] sm:$0xff] }
  0x89   :  { %1151 = vmatprep.subr.mxu1 %v601_v31  ;;  %1081 = vmatpush1.msra.mxu0 %v376_v32  ;;  %v503_v31 = vld [vmem:[%s8084_s2 + $0xe18] sm:$0xff]  ;;  %v278_v32 = vld [vmem:[%s8084_s2 + $0x710] sm:$0xff] }
  0x8a   :  { %1152 = vmatpush1.msra.mxu1 %v600_v33  ;;  %1082 = vmatprep.subr.mxu0 %v370_v34  ;;  %v502_v33 = vld [vmem:[%s8084_s2 + $0xe10] sm:$0xff]  ;;  %v496_v34 = vld [vmem:[%s8084_s2 + $0xde0] sm:$0xff] }
  0x8b   :  { %1153 = vmatprep.subr.mxu1 %v594_v35  ;;  %1083 = vmatpush1.msra.mxu0 %v369_v36  ;;  %v720_v35 = vld [vmem:[%s8084_s2 + $0x14e0] sm:$0xff]  ;;  %v495_v36 = vld [vmem:[%s8084_s2 + $0xdd8] sm:$0xff] }
  0x8c   :  { %1154 = vmatpush1.msra.mxu1 %v593_v37  ;;  %1084 = vmatprep.subr.mxu0 %v363_v38  ;;  %v719_v37 = vld [vmem:[%s8084_s2 + $0x14d8] sm:$0xff]  ;;  %v489_v38 = vld [vmem:[%s8084_s2 + $0xda8] sm:$0xff] }
  0x8d   :  { %1155 = vmatprep.subr.mxu1 %v587_v39  ;;  %1085 = vmatpush1.msra.mxu0 %v362_v40  ;;  %v713_v39 = vld [vmem:[%s8084_s2 + $0x14a8] sm:$0xff]  ;;  %v488_v40 = vld [vmem:[%s8084_s2 + $0xda0] sm:$0xff] }
  0x8e   :  { %1156 = vmatpush1.msra.mxu1 %v586_v42  ;;  %1086 = vmatprep.subr.mxu0 %v356_v43  ;;  %v712_v42 = vld [vmem:[%s8084_s2 + $0x14a0] sm:$0xff]  ;;  %v482_v43 = vld [vmem:[%s8084_s2 + $0xd70] sm:$0xff] }
  0x8f   :  { %1157 = vmatprep.subr.mxu1 %v580_v44  ;;  %1087 = vmatpush1.msra.mxu0 %v355_v45  ;;  %v706_v44 = vld [vmem:[%s8084_s2 + $0x1470] sm:$0xff]  ;;  %v481_v45 = vld [vmem:[%s8084_s2 + $0xd68] sm:$0xff] }
  0x90   :  { %1158 = vmatpush1.msra.mxu1 %v579_v46  ;;  %1088 = vmatprep.subr.mxu0 %v349_v47  ;;  %v705_v46 = vld [vmem:[%s8084_s2 + $0x1468] sm:$0xff]  ;;  %v475_v47 = vld [vmem:[%s8084_s2 + $0xd38] sm:$0xff] }
  0x91   :  { %1159 = vmatprep.subr.mxu1 %v573_v48  ;;  %1089 = vmatpush1.msra.mxu0 %v348_v49  ;;  %v699_v48 = vld [vmem:[%s8084_s2 + $0x1438] sm:$0xff]  ;;  %v474_v49 = vld [vmem:[%s8084_s2 + $0xd30] sm:$0xff] }
  0x92   :  { %1160 = vmatpush1.msra.mxu1 %v572_v50  ;;  %1090 = vmatprep.subr.mxu0 %v342_v51  ;;  %v698_v50 = vld [vmem:[%s8084_s2 + $0x1430] sm:$0xff]  ;;  %v468_v51 = vld [vmem:[%s8084_s2 + $0xd00] sm:$0xff] }
  0x93   :  { %1161 = vmatprep.subr.mxu1 %v566_v53  ;;  %1091 = vmatpush1.msra.mxu0 %v341_v54  ;;  %v692_v53 = vld [vmem:[%s8084_s2 + $0x1400] sm:$0xff]  ;;  %v467_v54 = vld [vmem:[%s8084_s2 + $0xcf8] sm:$0xff] }
  0x94   :  { %1162 = vmatpush1.msra.mxu1 %v565_v55  ;;  %1092 = vmatprep.subr.mxu0 %v335_v56  ;;  %v691_v55 = vld [vmem:[%s8084_s2 + $0x13f8] sm:$0xff]  ;;  %v461_v56 = vld [vmem:[%s8084_s2 + $0xcc8] sm:$0xff] }
  0x95   :  { %1163 = vmatprep.subr.mxu1 %v559_v57  ;;  %1093 = vmatpush1.msra.mxu0 %v334_v58  ;;  %v685_v57 = vld [vmem:[%s8084_s2 + $0x13c8] sm:$0xff]  ;;  %v460_v58 = vld [vmem:[%s8084_s2 + $0xcc0] sm:$0xff] }
  0x96   :  { %1164 = vmatpush1.msra.mxu1 %v558_v59  ;;  %1094 = vmatprep.subr.mxu0 %v328_v60  ;;  %v684_v59 = vld [vmem:[%s8084_s2 + $0x13c0] sm:$0xff]  ;;  %v454_v60 = vld [vmem:[%s8084_s2 + $0xc90] sm:$0xff] }
  0x97   :  { %1165 = vmatprep.subr.mxu1 %v552_v61  ;;  %1095 = vmatpush1.msra.mxu0 %v327_v63  ;;  %v678_v61 = vld [vmem:[%s8084_s2 + $0x1390] sm:$0xff]  ;;  %v453_v63 = vld [vmem:[%s8084_s2 + $0xc88] sm:$0xff] }
  0x98   :  { %1166 = vmatpush1.msra.mxu1 %v551_v0  ;;  %1096 = vmatprep.subr.mxu0 %v321_v1  ;;  %v677_v0 = vld [vmem:[%s8084_s2 + $0x1388] sm:$0xff]  ;;  %v447_v1 = vld [vmem:[%s8084_s2 + $0xc58] sm:$0xff] }
  0x99   :  { %1167 = vmatprep.subr.mxu1 %v545_v2  ;;  %1097 = vmatpush1.msra.mxu0 %v320_v4  ;;  %v671_v2 = vld [vmem:[%s8084_s2 + $0x1358] sm:$0xff]  ;;  %v446_v4 = vld [vmem:[%s8084_s2 + $0xc50] sm:$0xff] }
  0x9a   :  { %1168 = vmatpush1.msra.mxu1 %v544_v5  ;;  %1098 = vmatprep.subr.mxu0 %v314_v6  ;;  %v670_v5 = vld [vmem:[%s8084_s2 + $0x1350] sm:$0xff]  ;;  %v440_v6 = vld [vmem:[%s8084_s2 + $0xc20] sm:$0xff] }
  0x9b   :  { %1169 = vmatprep.subr.mxu1 %v538_v7  ;;  %1099 = vmatpush1.msra.mxu0 %v313_v9  ;;  %v664_v7 = vld [vmem:[%s8084_s2 + $0x1320] sm:$0xff]  ;;  %v439_v9 = vld [vmem:[%s8084_s2 + $0xc18] sm:$0xff] }
  0x9c   :  { %1170 = vmatpush1.msra.mxu1 %v537_v10  ;;  %1100 = vmatprep.subr.mxu0 %v307_v12  ;;  %v663_v10 = vld [vmem:[%s8084_s2 + $0x1318] sm:$0xff]  ;;  %v433_v12 = vld [vmem:[%s8084_s2 + $0xbe8] sm:$0xff] }
  0x9d   :  { %1171 = vmatprep.subr.mxu1 %v531_v13  ;;  %1101 = vmatpush1.msra.mxu0 %v306_v14  ;;  %v657_v13 = vld [vmem:[%s8084_s2 + $0x12e8] sm:$0xff]  ;;  %v432_v14 = vld [vmem:[%s8084_s2 + $0xbe0] sm:$0xff] }
  0x9e   :  { %1172 = vmatpush1.msra.mxu1 %v530_v15  ;;  %1102 = vmatprep.subr.mxu0 %v300_v17  ;;  %v656_v15 = vld [vmem:[%s8084_s2 + $0x12e0] sm:$0xff]  ;;  %v426_v17 = vld [vmem:[%s8084_s2 + $0xbb0] sm:$0xff] }
  0x9f   :  { %1173 = vmatprep.subr.mxu1 %v524_v18  ;;  %1103 = vmatpush1.msra.mxu0 %v299_v19  ;;  %v650_v18 = vld [vmem:[%s8084_s2 + $0x12b0] sm:$0xff]  ;;  %v425_v19 = vld [vmem:[%s8084_s2 + $0xba8] sm:$0xff] }
  0xa0   :  { %1174 = vmatpush1.msra.mxu1 %v523_v20  ;;  %1104 = vmatprep.subr.mxu0 %v293_v21  ;;  %v649_v20 = vld [vmem:[%s8084_s2 + $0x12a8] sm:$0xff]  ;;  %v419_v21 = vld [vmem:[%s8084_s2 + $0xb78] sm:$0xff] }
  0xa1   :  { %1175 = vmatprep.subr.mxu1 %v517_v22  ;;  %1105 = vmatpush1.msra.mxu0 %v292_v24  ;;  %v643_v22 = vld [vmem:[%s8084_s2 + $0x1278] sm:$0xff]  ;;  %v418_v24 = vld [vmem:[%s8084_s2 + $0xb70] sm:$0xff] }
  0xa2   :  { %1176 = vmatpush1.msra.mxu1 %v516_v25  ;;  %1106 = vmatprep.subr.mxu0 %v286_v26  ;;  %v642_v25 = vld [vmem:[%s8084_s2 + $0x1270] sm:$0xff]  ;;  %v412_v26 = vld [vmem:[%s8084_s2 + $0xb40] sm:$0xff] }
  0xa3   :  { %1177 = vmatprep.subr.mxu1 %v510_v27  ;;  %1107 = vmatpush1.msra.mxu0 %v285_v28  ;;  %v636_v27 = vld [vmem:[%s8084_s2 + $0x1240] sm:$0xff]  ;;  %v411_v28 = vld [vmem:[%s8084_s2 + $0xb38] sm:$0xff] }
  0xa4   :  { %1178 = vmatpush1.msra.mxu1 %v509_v29  ;;  %1108 = vmatprep.subr.mxu0 %v279_v30  ;;  %v635_v29 = vld [vmem:[%s8084_s2 + $0x1238] sm:$0xff]  ;;  %v405_v30 = vld [vmem:[%s8084_s2 + $0xb08] sm:$0xff] }
  0xa5   :  { %1179 = vmatprep.subr.mxu1 %v503_v31  ;;  %1109 = vmatpush1.msra.mxu0 %v278_v32  ;;  %v629_v31 = vld [vmem:[%s8084_s2 + $0x1208] sm:$0xff]  ;;  %v404_v32 = vld [vmem:[%s8084_s2 + $0xb00] sm:$0xff] }
  0xa6   :  { %1180 = vmatpush1.msra.mxu1 %v502_v33  ;;  %1110 = vmatprep.subr.mxu0 %v496_v34  ;;  %v628_v33 = vld [vmem:[%s8084_s2 + $0x1200] sm:$0xff]  ;;  %v398_v34 = vld [vmem:[%s8084_s2 + $0xad0] sm:$0xff] }
  0xa7   :  { %1181 = vmatprep.subr.mxu1 %v720_v35  ;;  %1111 = vmatpush2.msra.mxu0 %v495_v36  ;;  %v622_v35 = vld [vmem:[%s8084_s2 + $0x11d0] sm:$0xff]  ;;  %v397_v36 = vld [vmem:[%s8084_s2 + $0xac8] sm:$0xff] }
  0xa8   :  { %1182 = vmatpush2.msra.mxu1 %v719_v37  ;;  %1112 = vmatprep.subr.mxu0 %v489_v38  ;;  %v621_v37 = vld [vmem:[%s8084_s2 + $0x11c8] sm:$0xff]  ;;  %v391_v38 = vld [vmem:[%s8084_s2 + $0xa98] sm:$0xff] }
  0xa9   :  { %1183 = vmatprep.subr.mxu1 %v713_v39  ;;  %1113 = vmatpush2.msra.mxu0 %v488_v40  ;;  %v615_v39 = vld [vmem:[%s8084_s2 + $0x1198] sm:$0xff]  ;;  %v390_v40 = vld [vmem:[%s8084_s2 + $0xa90] sm:$0xff] }
  0xaa   :  { %1184 = vmatpush2.msra.mxu1 %v712_v42  ;;  %1114 = vmatprep.subr.mxu0 %v482_v43  ;;  %v614_v42 = vld [vmem:[%s8084_s2 + $0x1190] sm:$0xff] }
  0xab   :  { %1185 = vmatprep.subr.mxu1 %v706_v44  ;;  %1115 = vmatpush2.msra.mxu0 %v481_v45  ;;  %v162_v43 = vld [vmem:[%s8084_s2 + $0x370] sm:$0xff]  ;;  %v161_v45 = vld [vmem:[%s8084_s2 + $0x368] sm:$0xff] }
  0xac   :  { %1186 = vmatpush2.msra.mxu1 %v705_v46  ;;  %1116 = vmatprep.subr.mxu0 %v475_v47  ;;  %v386_v44 = vld [vmem:[%s8084_s2 + $0xa70] sm:$0xff]  ;;  %v385_v46 = vld [vmem:[%s8084_s2 + $0xa68] sm:$0xff]  ;;  %v155_v47 = vld [vmem:[%s8084_s2 + $0x338] sm:$0xff] }
  0xad   :  { %1187 = vmatprep.subr.mxu1 %v699_v48  ;;  %1117 = vmatpush2.msra.mxu0 %v474_v49  ;;  %v379_v48 = vld [vmem:[%s8084_s2 + $0xa38] sm:$0xff]  ;;  %v154_v49 = vld [vmem:[%s8084_s2 + $0x330] sm:$0xff] }
  0xae   :  { %1188 = vmatpush2.msra.mxu1 %v698_v50  ;;  %1118 = vmatprep.subr.mxu0 %v468_v51  ;;  %v378_v50 = vld [vmem:[%s8084_s2 + $0xa30] sm:$0xff]  ;;  %v148_v51 = vld [vmem:[%s8084_s2 + $0x300] sm:$0xff] }
  0xaf   :  { %1189 = vmatprep.subr.mxu1 %v692_v53  ;;  %1119 = vmatpush2.msra.mxu0 %v467_v54  ;;  %v372_v53 = vld [vmem:[%s8084_s2 + $0xa00] sm:$0xff]  ;;  %v371_v54 = vld [vmem:[%s8084_s2 + $0x9f8] sm:$0xff] }
  0xb0   :  { %1190 = vmatpush2.msra.mxu1 %v691_v55  ;;  %1120 = vmatprep.subr.mxu0 %v461_v56  ;;  %v141_v55 = vld [vmem:[%s8084_s2 + $0x2c8] sm:$0xff] }
  0xb1   :  { %1191 = vmatprep.subr.mxu1 %v685_v57  ;;  %1121 = vmatpush2.msra.mxu0 %v460_v58  ;;  %v365_v56 = vld [vmem:[%s8084_s2 + $0x9c8] sm:$0xff]  ;;  %v140_v57 = vld [vmem:[%s8084_s2 + $0x2c0] sm:$0xff] }
  0xb2   :  { %1192 = vmatpush2.msra.mxu1 %v684_v59  ;;  %1122 = vmatprep.subr.mxu0 %v454_v60  ;;  %v364_v58 = vld [vmem:[%s8084_s2 + $0x9c0] sm:$0xff]  ;;  %v134_v59 = vld [vmem:[%s8084_s2 + $0x290] sm:$0xff] }
  0xb3   :  { %1193 = vmatprep.subr.mxu1 %v678_v61  ;;  %1123 = vmatpush2.msra.mxu0 %v453_v63  ;;  %v358_v60 = vld [vmem:[%s8084_s2 + $0x990] sm:$0xff]  ;;  %v133_v61 = vld [vmem:[%s8084_s2 + $0x288] sm:$0xff] }
  0xb4   :  { %1194 = vmatpush2.msra.mxu1 %v677_v0  ;;  %1124 = vmatprep.subr.mxu0 %v447_v1  ;;  %v357_v63 = vld [vmem:[%s8084_s2 + $0x988] sm:$0xff]  ;;  %v127_v0 = vld [vmem:[%s8084_s2 + $0x258] sm:$0xff] }
  0xb5   :  { %1195 = vmatprep.subr.mxu1 %v671_v2  ;;  %1125 = vmatpush2.msra.mxu0 %v446_v4  ;;  %v351_v1 = vld [vmem:[%s8084_s2 + $0x958] sm:$0xff]  ;;  %v126_v2 = vld [vmem:[%s8084_s2 + $0x250] sm:$0xff] }
  0xb6   :  { %1196 = vmatpush2.msra.mxu1 %v670_v5  ;;  %1126 = vmatprep.subr.mxu0 %v440_v6  ;;  %v350_v4 = vld [vmem:[%s8084_s2 + $0x950] sm:$0xff]  ;;  %v120_v5 = vld [vmem:[%s8084_s2 + $0x220] sm:$0xff] }
  0xb7   :  { %1197 = vmatprep.subr.mxu1 %v664_v7  ;;  %1127 = vmatpush2.msra.mxu0 %v439_v9  ;;  %v344_v6 = vld [vmem:[%s8084_s2 + $0x920] sm:$0xff]  ;;  %v119_v7 = vld [vmem:[%s8084_s2 + $0x218] sm:$0xff] }
  0xb8   :  { %1198 = vmatpush2.msra.mxu1 %v663_v10  ;;  %1128 = vmatprep.subr.mxu0 %v433_v12  ;;  %v343_v9 = vld [vmem:[%s8084_s2 + $0x918] sm:$0xff]  ;;  %v113_v10 = vld [vmem:[%s8084_s2 + $0x1e8] sm:$0xff] }
  0xb9   :  { %1199 = vmatprep.subr.mxu1 %v657_v13  ;;  %1129 = vmatpush2.msra.mxu0 %v432_v14  ;;  %v337_v12 = vld [vmem:[%s8084_s2 + $0x8e8] sm:$0xff]  ;;  %v112_v13 = vld [vmem:[%s8084_s2 + $0x1e0] sm:$0xff] }
  0xba   :  { %1200 = vmatpush2.msra.mxu1 %v656_v15  ;;  %1130 = vmatprep.subr.mxu0 %v426_v17  ;;  %v336_v14 = vld [vmem:[%s8084_s2 + $0x8e0] sm:$0xff]  ;;  %v106_v15 = vld [vmem:[%s8084_s2 + $0x1b0] sm:$0xff] }
  0xbb   :  { %1201 = vmatprep.subr.mxu1 %v650_v18  ;;  %1131 = vmatpush2.msra.mxu0 %v425_v19  ;;  %v330_v17 = vld [vmem:[%s8084_s2 + $0x8b0] sm:$0xff]  ;;  %v105_v18 = vld [vmem:[%s8084_s2 + $0x1a8] sm:$0xff] }
  0xbc   :  { %1202 = vmatpush2.msra.mxu1 %v649_v20  ;;  %1132 = vmatprep.subr.mxu0 %v419_v21  ;;  %v329_v19 = vld [vmem:[%s8084_s2 + $0x8a8] sm:$0xff]  ;;  %v99_v20 = vld [vmem:[%s8084_s2 + $0x178] sm:$0xff] }
  0xbd   :  { %1203 = vmatprep.subr.mxu1 %v643_v22  ;;  %1133 = vmatpush2.msra.mxu0 %v418_v24  ;;  %v323_v21 = vld [vmem:[%s8084_s2 + $0x878] sm:$0xff]  ;;  %v98_v22 = vld [vmem:[%s8084_s2 + $0x170] sm:$0xff] }
  0xbe   :  { %1204 = vmatpush2.msra.mxu1 %v642_v25  ;;  %1134 = vmatprep.subr.mxu0 %v412_v26  ;;  %v322_v24 = vld [vmem:[%s8084_s2 + $0x870] sm:$0xff]  ;;  %v92_v25 = vld [vmem:[%s8084_s2 + $0x140] sm:$0xff] }
  0xbf   :  { %1205 = vmatprep.subr.mxu1 %v636_v27  ;;  %1135 = vmatpush2.msra.mxu0 %v411_v28  ;;  %v316_v26 = vld [vmem:[%s8084_s2 + $0x840] sm:$0xff]  ;;  %v91_v27 = vld [vmem:[%s8084_s2 + $0x138] sm:$0xff] }
  0xc0   :  { %1206 = vmatpush2.msra.mxu1 %v635_v29  ;;  %1136 = vmatprep.subr.mxu0 %v405_v30  ;;  %v315_v28 = vld [vmem:[%s8084_s2 + $0x838] sm:$0xff]  ;;  %v85_v29 = vld [vmem:[%s8084_s2 + $0x108] sm:$0xff] }
  0xc1   :  { %1207 = vmatprep.subr.mxu1 %v629_v31  ;;  %1137 = vmatpush2.msra.mxu0 %v404_v32  ;;  %v309_v30 = vld [vmem:[%s8084_s2 + $0x808] sm:$0xff]  ;;  %v84_v31 = vld [vmem:[%s8084_s2 + $0x100] sm:$0xff] }
  0xc2   :  { %1208 = vmatpush2.msra.mxu1 %v628_v33  ;;  %1138 = vmatprep.subr.mxu0 %v398_v34  ;;  %v308_v32 = vld [vmem:[%s8084_s2 + $0x800] sm:$0xff]  ;;  %v78_v33 = vld [vmem:[%s8084_s2 + $0xd0] sm:$0xff] }
  0xc3   :  { %1209 = vmatprep.subr.mxu1 %v622_v35  ;;  %1139 = vmatpush2.msra.mxu0 %v397_v36  ;;  %v302_v34 = vld [vmem:[%s8084_s2 + $0x7d0] sm:$0xff]  ;;  %v77_v35 = vld [vmem:[%s8084_s2 + $0xc8] sm:$0xff] }
  0xc4   :  { %1210 = vmatpush2.msra.mxu1 %v621_v37  ;;  %1140 = vmatprep.subr.mxu0 %v391_v38  ;;  %v301_v36 = vld [vmem:[%s8084_s2 + $0x7c8] sm:$0xff]  ;;  %v71_v37 = vld [vmem:[%s8084_s2 + $0x98] sm:$0xff] }
  0xc5   :  { %1211 = vmatprep.subr.mxu1 %v615_v39  ;;  %1141 = vmatpush2.msra.mxu0 %v390_v40  ;;  %v295_v38 = vld [vmem:[%s8084_s2 + $0x798] sm:$0xff]  ;;  %v70_v39 = vld [vmem:[%s8084_s2 + $0x90] sm:$0xff] }
  0xc6   :  { %1142 = vmatprep.mubr.f32.mxu0 %v4388_v11  ;;  %1212 = vmatpush2.msra.mxu1 %v614_v42  ;;  %v294_v40 = vld [vmem:[%s8084_s2 + $0x790] sm:$0xff]  ;;  %v64_v42 = vld [vmem:[%s8084_s2 + $0x60] sm:$0xff] }
  0xc7   :  { %1143 = vmatmul.mubr.f32.vlgmr.msra.gmra.mxu0 %v4362_v3  ;;  %1213 = vmatprep.mubr.f32.mxu1 %v4779_v23 }
  0xc8   :  { %1220 = vmatprep.subr.mxu0 %v162_v43  ;;  %1291 = vmatprep.subr.mxu1 %v386_v44  ;;  %v288_v43 = vld [vmem:[%s8084_s2 + $0x760] sm:$0xff]  ;;  %v63_v44 = vld [vmem:[%s8084_s2 + $0x58] sm:$0xff] }
  0xc9   :  { %1214 = vmatmul.mubr.f32.vlgmr.msra.gmra.mxu1 %v4757_v16  ;;  %1221 = vmatpush1.msra.mxu0 %v161_v45  ;;  %v147_v16 = vld [vmem:[%s8084_s2 + $0x2f8] sm:$0xff] }
  0xca   :  { %1292 = vmatpush1.msra.mxu1 %v385_v46  ;;  %1222 = vmatprep.subr.mxu0 %v155_v47  ;;  %v287_v45 = vld [vmem:[%s8084_s2 + $0x758] sm:$0xff]  ;;  %v57_v46 = vld [vmem:[%s8084_s2 + $0x28] sm:$0xff] }
  0xcb   :  { %1293 = vmatprep.subr.mxu1 %v379_v48  ;;  %1223 = vmatpush1.msra.mxu0 %v154_v49  ;;  %v281_v47 = vld [vmem:[%s8084_s2 + $0x728] sm:$0xff]  ;;  %v56_v48 = vld [vmem:[%s8084_s2 + $0x20] sm:$0xff] }
  0xcc   :  { %1294 = vmatpush1.msra.mxu1 %v378_v50  ;;  %1224 = vmatprep.subr.mxu0 %v148_v51  ;;  %v280_v49 = vld [vmem:[%s8084_s2 + $0x720] sm:$0xff]  ;;  %v274_v50 = vld [vmem:[%s8084_s2 + $0x6f0] sm:$0xff] }
  0xcd   :  { %1295 = vmatprep.subr.mxu1 %v372_v53  ;;  %1225 = vmatpush1.msra.mxu0 %v147_v16  ;;  %v498_v51 = vld [vmem:[%s8084_s2 + $0xdf0] sm:$0xff]  ;;  %v273_v53 = vld [vmem:[%s8084_s2 + $0x6e8] sm:$0xff] }
  0xce   :  { %1296 = vmatpush1.msra.mxu1 %v371_v54  ;;  %1226 = vmatprep.subr.mxu0 %v141_v55  ;;  %v497_v16 = vld [vmem:[%s8084_s2 + $0xde8] sm:$0xff]  ;;  %v267_v54 = vld [vmem:[%s8084_s2 + $0x6b8] sm:$0xff] }
  0xcf   :  { %1297 = vmatprep.subr.mxu1 %v365_v56  ;;  %1227 = vmatpush1.msra.mxu0 %v140_v57  ;;  %v491_v55 = vld [vmem:[%s8084_s2 + $0xdb8] sm:$0xff]  ;;  %v266_v56 = vld [vmem:[%s8084_s2 + $0x6b0] sm:$0xff] }
  0xd0   :  { %1298 = vmatpush1.msra.mxu1 %v364_v58  ;;  %1228 = vmatprep.subr.mxu0 %v134_v59  ;;  %v490_v57 = vld [vmem:[%s8084_s2 + $0xdb0] sm:$0xff]  ;;  %v260_v58 = vld [vmem:[%s8084_s2 + $0x680] sm:$0xff] }
  0xd1   :  { %1299 = vmatprep.subr.mxu1 %v358_v60  ;;  %1229 = vmatpush1.msra.mxu0 %v133_v61  ;;  %v484_v59 = vld [vmem:[%s8084_s2 + $0xd80] sm:$0xff]  ;;  %v259_v60 = vld [vmem:[%s8084_s2 + $0x678] sm:$0xff] }
  0xd2   :  { %1300 = vmatpush1.msra.mxu1 %v357_v63  ;;  %1230 = vmatprep.subr.mxu0 %v127_v0  ;;  %v483_v61 = vld [vmem:[%s8084_s2 + $0xd78] sm:$0xff]  ;;  %v253_v63 = vld [vmem:[%s8084_s2 + $0x648] sm:$0xff] }
  0xd3   :  { %1301 = vmatprep.subr.mxu1 %v351_v1  ;;  %1231 = vmatpush1.msra.mxu0 %v126_v2  ;;  %v477_v0 = vld [vmem:[%s8084_s2 + $0xd48] sm:$0xff]  ;;  %v252_v1 = vld [vmem:[%s8084_s2 + $0x640] sm:$0xff] }
  0xd4   :  { %1302 = vmatpush1.msra.mxu1 %v350_v4  ;;  %1232 = vmatprep.subr.mxu0 %v120_v5  ;;  %v476_v2 = vld [vmem:[%s8084_s2 + $0xd40] sm:$0xff]  ;;  %v246_v4 = vld [vmem:[%s8084_s2 + $0x610] sm:$0xff] }
  0xd5   :  { %1303 = vmatprep.subr.mxu1 %v344_v6  ;;  %1233 = vmatpush1.msra.mxu0 %v119_v7  ;;  %v470_v5 = vld [vmem:[%s8084_s2 + $0xd10] sm:$0xff]  ;;  %v245_v6 = vld [vmem:[%s8084_s2 + $0x608] sm:$0xff] }
  0xd6   :  { %1304 = vmatpush1.msra.mxu1 %v343_v9  ;;  %1234 = vmatprep.subr.mxu0 %v113_v10  ;;  %v469_v7 = vld [vmem:[%s8084_s2 + $0xd08] sm:$0xff]  ;;  %v239_v9 = vld [vmem:[%s8084_s2 + $0x5d8] sm:$0xff] }
  0xd7   :  { %1305 = vmatprep.subr.mxu1 %v337_v12  ;;  %1235 = vmatpush1.msra.mxu0 %v112_v13  ;;  %v463_v10 = vld [vmem:[%s8084_s2 + $0xcd8] sm:$0xff]  ;;  %v238_v12 = vld [vmem:[%s8084_s2 + $0x5d0] sm:$0xff] }
  0xd8   :  { %1306 = vmatpush1.msra.mxu1 %v336_v14  ;;  %1236 = vmatprep.subr.mxu0 %v106_v15  ;;  %v462_v13 = vld [vmem:[%s8084_s2 + $0xcd0] sm:$0xff]  ;;  %v232_v14 = vld [vmem:[%s8084_s2 + $0x5a0] sm:$0xff] }
  0xd9   :  { %1307 = vmatprep.subr.mxu1 %v330_v17  ;;  %1237 = vmatpush1.msra.mxu0 %v105_v18  ;;  %v456_v15 = vld [vmem:[%s8084_s2 + $0xca0] sm:$0xff]  ;;  %v231_v17 = vld [vmem:[%s8084_s2 + $0x598] sm:$0xff] }
  0xda   :  { %1308 = vmatpush1.msra.mxu1 %v329_v19  ;;  %1238 = vmatprep.subr.mxu0 %v99_v20  ;;  %v455_v18 = vld [vmem:[%s8084_s2 + $0xc98] sm:$0xff]  ;;  %v225_v19 = vld [vmem:[%s8084_s2 + $0x568] sm:$0xff] }
  0xdb   :  { %1309 = vmatprep.subr.mxu1 %v323_v21  ;;  %1239 = vmatpush1.msra.mxu0 %v98_v22  ;;  %v449_v20 = vld [vmem:[%s8084_s2 + $0xc68] sm:$0xff]  ;;  %v224_v21 = vld [vmem:[%s8084_s2 + $0x560] sm:$0xff] }
  0xdc   :  { %1310 = vmatpush1.msra.mxu1 %v322_v24  ;;  %1240 = vmatprep.subr.mxu0 %v92_v25  ;;  %v448_v22 = vld [vmem:[%s8084_s2 + $0xc60] sm:$0xff]  ;;  %v218_v24 = vld [vmem:[%s8084_s2 + $0x530] sm:$0xff] }
  0xdd   :  { %1311 = vmatprep.subr.mxu1 %v316_v26  ;;  %1241 = vmatpush1.msra.mxu0 %v91_v27  ;;  %v442_v25 = vld [vmem:[%s8084_s2 + $0xc30] sm:$0xff]  ;;  %v217_v26 = vld [vmem:[%s8084_s2 + $0x528] sm:$0xff] }
  0xde   :  { %1312 = vmatpush1.msra.mxu1 %v315_v28  ;;  %1242 = vmatprep.subr.mxu0 %v85_v29  ;;  %v441_v27 = vld [vmem:[%s8084_s2 + $0xc28] sm:$0xff]  ;;  %v211_v28 = vld [vmem:[%s8084_s2 + $0x4f8] sm:$0xff] }
  0xdf   :  { %1313 = vmatprep.subr.mxu1 %v309_v30  ;;  %1243 = vmatpush1.msra.mxu0 %v84_v31  ;;  %v435_v29 = vld [vmem:[%s8084_s2 + $0xbf8] sm:$0xff]  ;;  %v210_v30 = vld [vmem:[%s8084_s2 + $0x4f0] sm:$0xff] }
  0xe0   :  { %1314 = vmatpush1.msra.mxu1 %v308_v32  ;;  %1244 = vmatprep.subr.mxu0 %v78_v33  ;;  %v434_v31 = vld [vmem:[%s8084_s2 + $0xbf0] sm:$0xff]  ;;  %v204_v32 = vld [vmem:[%s8084_s2 + $0x4c0] sm:$0xff] }
  0xe1   :  { %1315 = vmatprep.subr.mxu1 %v302_v34  ;;  %1245 = vmatpush1.msra.mxu0 %v77_v35  ;;  %v428_v33 = vld [vmem:[%s8084_s2 + $0xbc0] sm:$0xff]  ;;  %v203_v34 = vld [vmem:[%s8084_s2 + $0x4b8] sm:$0xff] }
  0xe2   :  { %1316 = vmatpush1.msra.mxu1 %v301_v36  ;;  %1246 = vmatprep.subr.mxu0 %v71_v37  ;;  %v427_v35 = vld [vmem:[%s8084_s2 + $0xbb8] sm:$0xff]  ;;  %v197_v36 = vld [vmem:[%s8084_s2 + $0x488] sm:$0xff] }
  0xe3   :  { %1317 = vmatprep.subr.mxu1 %v295_v38  ;;  %1247 = vmatpush1.msra.mxu0 %v70_v39  ;;  %v421_v37 = vld [vmem:[%s8084_s2 + $0xb88] sm:$0xff]  ;;  %v196_v38 = vld [vmem:[%s8084_s2 + $0x480] sm:$0xff] }
  0xe4   :  { %1318 = vmatpush1.msra.mxu1 %v294_v40  ;;  %1248 = vmatprep.subr.mxu0 %v64_v42  ;;  %v420_v39 = vld [vmem:[%s8084_s2 + $0xb80] sm:$0xff]  ;;  %v190_v40 = vld [vmem:[%s8084_s2 + $0x450] sm:$0xff] }
  0xe5   :  { %1319 = vmatprep.subr.mxu1 %v288_v43  ;;  %1249 = vmatpush1.msra.mxu0 %v63_v44  ;;  %v414_v42 = vld [vmem:[%s8084_s2 + $0xb50] sm:$0xff]  ;;  %v189_v43 = vld [vmem:[%s8084_s2 + $0x448] sm:$0xff] }
  0xe6   :  { %1320 = vmatpush1.msra.mxu1 %v287_v45  ;;  %1250 = vmatprep.subr.mxu0 %v57_v46  ;;  %v413_v44 = vld [vmem:[%s8084_s2 + $0xb48] sm:$0xff]  ;;  %v183_v45 = vld [vmem:[%s8084_s2 + $0x418] sm:$0xff] }
  0xe7   :  { %1321 = vmatprep.subr.mxu1 %v281_v47  ;;  %1251 = vmatpush1.msra.mxu0 %v56_v48  ;;  %v407_v46 = vld [vmem:[%s8084_s2 + $0xb18] sm:$0xff]  ;;  %v182_v47 = vld [vmem:[%s8084_s2 + $0x410] sm:$0xff] }
  0xe8   :  { %1322 = vmatpush1.msra.mxu1 %v280_v49  ;;  %1252 = vmatprep.subr.mxu0 %v274_v50  ;;  %v406_v48 = vld [vmem:[%s8084_s2 + $0xb10] sm:$0xff]  ;;  %v176_v49 = vld [vmem:[%s8084_s2 + $0x3e0] sm:$0xff] }
  0xe9   :  { %1323 = vmatprep.subr.mxu1 %v498_v51  ;;  %1253 = vmatpush2.msra.mxu0 %v273_v53  ;;  %v400_v50 = vld [vmem:[%s8084_s2 + $0xae0] sm:$0xff]  ;;  %v175_v51 = vld [vmem:[%s8084_s2 + $0x3d8] sm:$0xff] }
  0xea   :  { %1324 = vmatpush2.msra.mxu1 %v497_v16  ;;  %1254 = vmatprep.subr.mxu0 %v267_v54  ;;  %v399_v53 = vld [vmem:[%s8084_s2 + $0xad8] sm:$0xff]  ;;  %v169_v16 = vld [vmem:[%s8084_s2 + $0x3a8] sm:$0xff] }
  0xeb   :  { %1325 = vmatprep.subr.mxu1 %v491_v55  ;;  %1255 = vmatpush2.msra.mxu0 %v266_v56  ;;  %v393_v54 = vld [vmem:[%s8084_s2 + $0xaa8] sm:$0xff]  ;;  %v168_v55 = vld [vmem:[%s8084_s2 + $0x3a0] sm:$0xff] }
  0xec   :  { %1326 = vmatpush2.msra.mxu1 %v490_v57  ;;  %1256 = vmatprep.subr.mxu0 %v260_v58  ;;  %v392_v56 = vld [vmem:[%s8084_s2 + $0xaa0] sm:$0xff]  ;;  %v610_v57 = vld [vmem:[%s8084_s2 + $0x1170] sm:$0xff]  ;;  %v275_v58 = vld [vmem:[%s8084_s2 + $0x6f8] sm:$0xff] }
  0xed   :  { %1327 = vmatprep.subr.mxu1 %v484_v59  ;;  %1257 = vmatpush2.msra.mxu0 %v259_v60  ;;  %v609_v59 = vld [vmem:[%s8084_s2 + $0x1168] sm:$0xff]  ;;  %v163_v60 = vld [vmem:[%s8084_s2 + $0x378] sm:$0xff] }
  0xee   :  { %1328 = vmatpush2.msra.mxu1 %v483_v61  ;;  %1258 = vmatprep.subr.mxu0 %v253_v63  ;;  %v603_v61 = vld [vmem:[%s8084_s2 + $0x1138] sm:$0xff]  ;;  %v268_v63 = vld [vmem:[%s8084_s2 + $0x6c0] sm:$0xff] }
  0xef   :  { %1329 = vmatprep.subr.mxu1 %v477_v0  ;;  %1259 = vmatpush2.msra.mxu0 %v252_v1  ;;  %v602_v0 = vld [vmem:[%s8084_s2 + $0x1130] sm:$0xff]  ;;  %v156_v1 = vld [vmem:[%s8084_s2 + $0x340] sm:$0xff] }
  0xf0   :  { %1330 = vmatpush2.msra.mxu1 %v476_v2  ;;  %1260 = vmatprep.subr.mxu0 %v246_v4  ;;  %v596_v2 = vld [vmem:[%s8084_s2 + $0x1100] sm:$0xff]  ;;  %v261_v4 = vld [vmem:[%s8084_s2 + $0x688] sm:$0xff] }
  0xf1   :  { %1331 = vmatprep.subr.mxu1 %v470_v5  ;;  %1261 = vmatpush2.msra.mxu0 %v245_v6  ;;  %v595_v5 = vld [vmem:[%s8084_s2 + $0x10f8] sm:$0xff]  ;;  %v149_v6 = vld [vmem:[%s8084_s2 + $0x308] sm:$0xff] }
  0xf2   :  { %1332 = vmatpush2.msra.mxu1 %v469_v7  ;;  %1262 = vmatprep.subr.mxu0 %v239_v9  ;;  %v589_v7 = vld [vmem:[%s8084_s2 + $0x10c8] sm:$0xff]  ;;  %v254_v9 = vld [vmem:[%s8084_s2 + $0x650] sm:$0xff] }
  0xf3   :  { %1333 = vmatprep.subr.mxu1 %v463_v10  ;;  %1263 = vmatpush2.msra.mxu0 %v238_v12  ;;  %v588_v10 = vld [vmem:[%s8084_s2 + $0x10c0] sm:$0xff]  ;;  %v142_v12 = vld [vmem:[%s8084_s2 + $0x2d0] sm:$0xff] }
  0xf4   :  { %1334 = vmatpush2.msra.mxu1 %v462_v13  ;;  %1264 = vmatprep.subr.mxu0 %v232_v14  ;;  %v582_v13 = vld [vmem:[%s8084_s2 + $0x1090] sm:$0xff]  ;;  %v247_v14 = vld [vmem:[%s8084_s2 + $0x618] sm:$0xff] }
  0xf5   :  { %1335 = vmatprep.subr.mxu1 %v456_v15  ;;  %1265 = vmatpush2.msra.mxu0 %v231_v17  ;;  %v581_v15 = vld [vmem:[%s8084_s2 + $0x1088] sm:$0xff]  ;;  %v135_v17 = vld [vmem:[%s8084_s2 + $0x298] sm:$0xff] }
  0xf6   :  { %1336 = vmatpush2.msra.mxu1 %v455_v18  ;;  %1266 = vmatprep.subr.mxu0 %v225_v19  ;;  %v575_v18 = vld [vmem:[%s8084_s2 + $0x1058] sm:$0xff]  ;;  %v240_v19 = vld [vmem:[%s8084_s2 + $0x5e0] sm:$0xff] }
  0xf7   :  { %1337 = vmatprep.subr.mxu1 %v449_v20  ;;  %1267 = vmatpush2.msra.mxu0 %v224_v21  ;;  %v574_v20 = vld [vmem:[%s8084_s2 + $0x1050] sm:$0xff]  ;;  %v128_v21 = vld [vmem:[%s8084_s2 + $0x260] sm:$0xff] }
  0xf8   :  { %1338 = vmatpush2.msra.mxu1 %v448_v22  ;;  %1268 = vmatprep.subr.mxu0 %v218_v24  ;;  %v568_v22 = vld [vmem:[%s8084_s2 + $0x1020] sm:$0xff]  ;;  %v233_v24 = vld [vmem:[%s8084_s2 + $0x5a8] sm:$0xff] }
  0xf9   :  { %1339 = vmatprep.subr.mxu1 %v442_v25  ;;  %1269 = vmatpush2.msra.mxu0 %v217_v26  ;;  %v567_v25 = vld [vmem:[%s8084_s2 + $0x1018] sm:$0xff]  ;;  %v121_v26 = vld [vmem:[%s8084_s2 + $0x228] sm:$0xff] }
  0xfa   :  { %1340 = vmatpush2.msra.mxu1 %v441_v27  ;;  %1270 = vmatprep.subr.mxu0 %v211_v28  ;;  %v561_v27 = vld [vmem:[%s8084_s2 + $0xfe8] sm:$0xff]  ;;  %v226_v28 = vld [vmem:[%s8084_s2 + $0x570] sm:$0xff] }
  0xfb   :  { %1341 = vmatprep.subr.mxu1 %v435_v29  ;;  %1271 = vmatpush2.msra.mxu0 %v210_v30  ;;  %v560_v29 = vld [vmem:[%s8084_s2 + $0xfe0] sm:$0xff]  ;;  %v114_v30 = vld [vmem:[%s8084_s2 + $0x1f0] sm:$0xff] }
  0xfc   :  { %1342 = vmatpush2.msra.mxu1 %v434_v31  ;;  %1272 = vmatprep.subr.mxu0 %v204_v32  ;;  %v554_v31 = vld [vmem:[%s8084_s2 + $0xfb0] sm:$0xff]  ;;  %v219_v32 = vld [vmem:[%s8084_s2 + $0x538] sm:$0xff] }
  0xfd   :  { %1343 = vmatprep.subr.mxu1 %v428_v33  ;;  %1273 = vmatpush2.msra.mxu0 %v203_v34  ;;  %v553_v33 = vld [vmem:[%s8084_s2 + $0xfa8] sm:$0xff]  ;;  %v107_v34 = vld [vmem:[%s8084_s2 + $0x1b8] sm:$0xff] }
  0xfe   :  { %1344 = vmatpush2.msra.mxu1 %v427_v35  ;;  %1274 = vmatprep.subr.mxu0 %v197_v36  ;;  %v547_v35 = vld [vmem:[%s8084_s2 + $0xf78] sm:$0xff]  ;;  %v212_v36 = vld [vmem:[%s8084_s2 + $0x500] sm:$0xff] }
  0xff   :  { %1345 = vmatprep.subr.mxu1 %v421_v37  ;;  %1275 = vmatpush2.msra.mxu0 %v196_v38  ;;  %v546_v37 = vld [vmem:[%s8084_s2 + $0xf70] sm:$0xff]  ;;  %v100_v38 = vld [vmem:[%s8084_s2 + $0x180] sm:$0xff] }
 0x100   :  { %1346 = vmatpush2.msra.mxu1 %v420_v39  ;;  %1276 = vmatprep.subr.mxu0 %v190_v40  ;;  %v540_v39 = vld [vmem:[%s8084_s2 + $0xf40] sm:$0xff]  ;;  %v205_v40 = vld [vmem:[%s8084_s2 + $0x4c8] sm:$0xff] }
 0x101   :  { %1347 = vmatprep.subr.mxu1 %v414_v42  ;;  %1277 = vmatpush2.msra.mxu0 %v189_v43  ;;  %v539_v42 = vld [vmem:[%s8084_s2 + $0xf38] sm:$0xff]  ;;  %v93_v43 = vld [vmem:[%s8084_s2 + $0x148] sm:$0xff] }
 0x102   :  { %1348 = vmatpush2.msra.mxu1 %v413_v44  ;;  %1278 = vmatprep.subr.mxu0 %v183_v45  ;;  %v533_v44 = vld [vmem:[%s8084_s2 + $0xf08] sm:$0xff]  ;;  %v198_v45 = vld [vmem:[%s8084_s2 + $0x490] sm:$0xff] }
 0x103   :  { %1349 = vmatprep.subr.mxu1 %v407_v46  ;;  %1279 = vmatpush2.msra.mxu0 %v182_v47  ;;  %v532_v46 = vld [vmem:[%s8084_s2 + $0xf00] sm:$0xff]  ;;  %v86_v47 = vld [vmem:[%s8084_s2 + $0x110] sm:$0xff] }
 0x104   :  { %1350 = vmatpush2.msra.mxu1 %v406_v48  ;;  %1280 = vmatprep.subr.mxu0 %v176_v49  ;;  %v526_v48 = vld [vmem:[%s8084_s2 + $0xed0] sm:$0xff]  ;;  %v191_v49 = vld [vmem:[%s8084_s2 + $0x458] sm:$0xff] }
 0x105   :  { %1351 = vmatprep.subr.mxu1 %v400_v50  ;;  %1281 = vmatpush2.msra.mxu0 %v175_v51  ;;  %v525_v50 = vld [vmem:[%s8084_s2 + $0xec8] sm:$0xff]  ;;  %v79_v51 = vld [vmem:[%s8084_s2 + $0xd8] sm:$0xff] }
 0x106   :  { %1352 = vmatpush2.msra.mxu1 %v399_v53  ;;  %1282 = vmatprep.subr.mxu0 %v169_v16  ;;  %v519_v53 = vld [vmem:[%s8084_s2 + $0xe98] sm:$0xff]  ;;  %v184_v16 = vld [vmem:[%s8084_s2 + $0x420] sm:$0xff] }
 0x107   :  { %1353 = vmatprep.subr.mxu1 %v393_v54  ;;  %1283 = vmatpush2.msra.mxu0 %v168_v55  ;;  %v518_v54 = vld [vmem:[%s8084_s2 + $0xe90] sm:$0xff]  ;;  %v72_v55 = vld [vmem:[%s8084_s2 + $0xa0] sm:$0xff] }
 0x108   :  { %1284 = vmatprep.mubr.f32.mxu0 %v4378_v8  ;;  %1354 = vmatpush2.msra.mxu1 %v392_v56  ;;  %v512_v56 = vld [vmem:[%s8084_s2 + $0xe60] sm:$0xff] }
 0x109   :  { %1285 = vmatmul.mubr.f32.vlgmr.msra.gmra.mxu0 %v4347_v62  ;;  %1355 = vmatprep.mubr.f32.mxu1 %v4388_v11 }
 0x10a   :  { %1362 = vmatprep.subr.mxu0 %v610_v57  ;;  %3778 = vmatprep.subr.mxu1 %v275_v58  ;;  %v177_v57 = vld [vmem:[%s8084_s2 + $0x3e8] sm:$0xff]  ;;  %v511_v58 = vld [vmem:[%s8084_s2 + $0xe58] sm:$0xff] }
 0x10b   :  { %1356 = vmatmul.mubr.f32.vlgmr.msra.gmra.mxu1 %v4362_v3  ;;  %1363 = vmatpush1.msra.mxu0 %v609_v59  ;;  %v65_v59 = vld [vmem:[%s8084_s2 + $0x68] sm:$0xff] }
 0x10c   :  { %3779 = vmatpush3.msra.mxu1 %v163_v60  ;;  %1364 = vmatprep.subr.mxu0 %v603_v61  ;;  %v505_v60 = vld [vmem:[%s8084_s2 + $0xe28] sm:$0xff]  ;;  %v170_v61 = vld [vmem:[%s8084_s2 + $0x3b0] sm:$0xff] }
 0x10d   :  { %3780 = vmatprep.subr.mxu1 %v268_v63  ;;  %1365 = vmatpush1.msra.mxu0 %v602_v0  ;;  %v504_v63 = vld [vmem:[%s8084_s2 + $0xe20] sm:$0xff]  ;;  %v58_v0 = vld [vmem:[%s8084_s2 + $0x30] sm:$0xff] }
 0x10e   :  { %3781 = vmatpush3.msra.mxu1 %v156_v1  ;;  %1366 = vmatprep.subr.mxu0 %v596_v2  ;;  %v722_v1 = vld [vmem:[%s8084_s2 + $0x14f0] sm:$0xff]  ;;  %v499_v2 = vld [vmem:[%s8084_s2 + $0xdf8] sm:$0xff] }
 0x10f   :  { %3782 = vmatprep.subr.mxu1 %v261_v4  ;;  %1367 = vmatpush1.msra.mxu0 %v595_v5  ;;  %v721_v4 = vld [vmem:[%s8084_s2 + $0x14e8] sm:$0xff]  ;;  %v715_v5 = vld [vmem:[%s8084_s2 + $0x14b8] sm:$0xff] }
 0x110   :  { %3783 = vmatpush3.msra.mxu1 %v149_v6  ;;  %1368 = vmatprep.subr.mxu0 %v589_v7  ;;  %v387_v6 = vld [vmem:[%s8084_s2 + $0xa78] sm:$0xff]  ;;  %v714_v7 = vld [vmem:[%s8084_s2 + $0x14b0] sm:$0xff] }
 0x111   :  { %3784 = vmatprep.subr.mxu1 %v254_v9  ;;  %1369 = vmatpush1.msra.mxu0 %v588_v10  ;;  %v492_v9 = vld [vmem:[%s8084_s2 + $0xdc0] sm:$0xff] }
 0x112   :  { %3785 = vmatpush3.msra.mxu1 %v142_v12  ;;  %1370 = vmatprep.subr.mxu0 %v582_v13  ;;  %v708_v10 = vld [vmem:[%s8084_s2 + $0x1480] sm:$0xff]  ;;  %v707_v12 = vld [vmem:[%s8084_s2 + $0x1478] sm:$0xff]  ;;  %v485_v13 = vld [vmem:[%s8084_s2 + $0xd88] sm:$0xff] }
 0x113   :  { %3786 = vmatprep.subr.mxu1 %v247_v14  ;;  %1371 = vmatpush1.msra.mxu0 %v581_v15  ;;  %v701_v14 = vld [vmem:[%s8084_s2 + $0x1448] sm:$0xff]  ;;  %v700_v15 = vld [vmem:[%s8084_s2 + $0x1440] sm:$0xff] }
 0x114   :  { %3787 = vmatpush3.msra.mxu1 %v135_v17  ;;  %1372 = vmatprep.subr.mxu0 %v575_v18  ;;  %v478_v17 = vld [vmem:[%s8084_s2 + $0xd50] sm:$0xff] }
 0x115   :  { %3788 = vmatprep.subr.mxu1 %v240_v19  ;;  %1373 = vmatpush1.msra.mxu0 %v574_v20  ;;  %v694_v18 = vld [vmem:[%s8084_s2 + $0x1410] sm:$0xff]  ;;  %v693_v20 = vld [vmem:[%s8084_s2 + $0x1408] sm:$0xff] }
 0x116   :  { %3789 = vmatpush3.msra.mxu1 %v128_v21  ;;  %1374 = vmatprep.subr.mxu0 %v568_v22  ;;  %v366_v19 = vld [vmem:[%s8084_s2 + $0x9d0] sm:$0xff]  ;;  %v471_v21 = vld [vmem:[%s8084_s2 + $0xd18] sm:$0xff] }
 0x117   :  { %3790 = vmatprep.subr.mxu1 %v233_v24  ;;  %1375 = vmatpush1.msra.mxu0 %v567_v25  ;;  %v687_v22 = vld [vmem:[%s8084_s2 + $0x13d8] sm:$0xff]  ;;  %v686_v25 = vld [vmem:[%s8084_s2 + $0x13d0] sm:$0xff] }
 0x118   :  { %3791 = vmatpush3.msra.mxu1 %v121_v26  ;;  %1376 = vmatprep.subr.mxu0 %v561_v27  ;;  %v359_v24 = vld [vmem:[%s8084_s2 + $0x998] sm:$0xff]  ;;  %v464_v26 = vld [vmem:[%s8084_s2 + $0xce0] sm:$0xff] }
 0x119   :  { %3792 = vmatprep.subr.mxu1 %v226_v28  ;;  %1377 = vmatpush1.msra.mxu0 %v560_v29  ;;  %v680_v27 = vld [vmem:[%s8084_s2 + $0x13a0] sm:$0xff]  ;;  %v679_v29 = vld [vmem:[%s8084_s2 + $0x1398] sm:$0xff] }
 0x11a   :  { %3793 = vmatpush3.msra.mxu1 %v114_v30  ;;  %1378 = vmatprep.subr.mxu0 %v554_v31  ;;  %v352_v28 = vld [vmem:[%s8084_s2 + $0x960] sm:$0xff]  ;;  %v457_v30 = vld [vmem:[%s8084_s2 + $0xca8] sm:$0xff] }
 0x11b   :  { %3794 = vmatprep.subr.mxu1 %v219_v32  ;;  %1379 = vmatpush1.msra.mxu0 %v553_v33  ;;  %v673_v31 = vld [vmem:[%s8084_s2 + $0x1368] sm:$0xff]  ;;  %v672_v33 = vld [vmem:[%s8084_s2 + $0x1360] sm:$0xff] }
 0x11c   :  { %3795 = vmatpush3.msra.mxu1 %v107_v34  ;;  %1380 = vmatprep.subr.mxu0 %v547_v35  ;;  %v345_v32 = vld [vmem:[%s8084_s2 + $0x928] sm:$0xff]  ;;  %v450_v34 = vld [vmem:[%s8084_s2 + $0xc70] sm:$0xff] }
 0x11d   :  { %3796 = vmatprep.subr.mxu1 %v212_v36  ;;  %1381 = vmatpush1.msra.mxu0 %v546_v37  ;;  %v666_v35 = vld [vmem:[%s8084_s2 + $0x1330] sm:$0xff]  ;;  %v665_v37 = vld [vmem:[%s8084_s2 + $0x1328] sm:$0xff] }
 0x11e   :  { %3797 = vmatpush3.msra.mxu1 %v100_v38  ;;  %1382 = vmatprep.subr.mxu0 %v540_v39  ;;  %v338_v36 = vld [vmem:[%s8084_s2 + $0x8f0] sm:$0xff]  ;;  %v443_v38 = vld [vmem:[%s8084_s2 + $0xc38] sm:$0xff] }
 0x11f   :  { %3798 = vmatprep.subr.mxu1 %v205_v40  ;;  %1383 = vmatpush1.msra.mxu0 %v539_v42  ;;  %v659_v39 = vld [vmem:[%s8084_s2 + $0x12f8] sm:$0xff]  ;;  %v658_v42 = vld [vmem:[%s8084_s2 + $0x12f0] sm:$0xff] }
 0x120   :  { %3799 = vmatpush3.msra.mxu1 %v93_v43  ;;  %1384 = vmatprep.subr.mxu0 %v533_v44  ;;  %v331_v40 = vld [vmem:[%s8084_s2 + $0x8b8] sm:$0xff]  ;;  %v436_v43 = vld [vmem:[%s8084_s2 + $0xc00] sm:$0xff] }
 0x121   :  { %3800 = vmatprep.subr.mxu1 %v198_v45  ;;  %1385 = vmatpush1.msra.mxu0 %v532_v46  ;;  %v652_v44 = vld [vmem:[%s8084_s2 + $0x12c0] sm:$0xff]  ;;  %v651_v46 = vld [vmem:[%s8084_s2 + $0x12b8] sm:$0xff] }
 0x122   :  { %3801 = vmatpush3.msra.mxu1 %v86_v47  ;;  %1386 = vmatprep.subr.mxu0 %v526_v48  ;;  %v324_v45 = vld [vmem:[%s8084_s2 + $0x880] sm:$0xff]  ;;  %v5888_v47 = vsub.s32 1, %v4290_v41  ;;  %v429_v48 = vld [vmem:[%s8084_s2 + $0xbc8] sm:$0xff] }
 0x123   :  { %3802 = vmatprep.subr.mxu1 %v191_v49  ;;  %1387 = vmatpush1.msra.mxu0 %v525_v50  ;;  %v645_v49 = vld [vmem:[%s8084_s2 + $0x1288] sm:$0xff]  ;;  %v5899_v50 = vld [vmem:[%s8086_s3] sm:$0x7f] }
 0x124   :  { %3803 = vmatpush3.msra.mxu1 %v79_v51  ;;  %1388 = vmatprep.subr.mxu0 %v519_v53  ;;  %v5901_v51 = vpop.f32.mrf.mxu0  ;;  %v317_v53 = vld [vmem:[%s8084_s2 + $0x848] sm:$0xff] }
 0x125   :  { %3804 = vmatprep.subr.mxu1 %v184_v16  ;;  %1389 = vmatpush1.msra.mxu0 %v518_v54  ;;  %v644_v16 = vld [vmem:[%s8084_s2 + $0x1280] sm:$0xff]  ;;  %v422_v54 = vld [vmem:[%s8084_s2 + $0xb90] sm:$0xff] }
 0x126   :  { %3805 = vmatpush3.msra.mxu1 %v72_v55  ;;  %1390 = vmatprep.subr.mxu0 %v512_v56  ;;  %v638_v55 = vld [vmem:[%s8084_s2 + $0x1250] sm:$0xff] }
 0x127   :  { %3806 = vmatprep.subr.mxu1 %v177_v57  ;;  %1391 = vmatpush1.msra.mxu0 %v511_v58  ;;  %v310_v56 = vld [vmem:[%s8084_s2 + $0x810] sm:$0xff]  ;;  %v637_v57 = vld [vmem:[%s8084_s2 + $0x1248] sm:$0xff]  ;;  %v733_v58 = vrot.slane %v5899_v50, %v5888_v47 }
 0x128   :  { %3807 = vmatpush3.msra.mxu1 %v65_v59  ;;  %1392 = vmatprep.subr.mxu0 %v505_v60  ;;  %v415_v59 = vld [vmem:[%s8084_s2 + $0xb58] sm:$0xff] }
 0x129   :  { %3808 = vmatprep.subr.mxu1 %v170_v61  ;;  %1393 = vmatpush1.msra.mxu0 %v504_v63  ;;  %v631_v60 = vld [vmem:[%s8084_s2 + $0x1218] sm:$0xff]  ;;  %v862_v61 = vpop.f32.mrf.mxu0  ;;  %v5929_v63 = vpop.f32.mrf.mxu1 }
 0x12a   :  { %3809 = vmatpush3.msra.mxu1 %v58_v0  ;;  %1394 = vmatprep.subr.mxu0 %v722_v1  ;;  %v303_v0 = vld [vmem:[%s8084_s2 + $0x7d8] sm:$0xff]  ;;  %v630_v1 = vld [vmem:[%s8084_s2 + $0x1210] sm:$0xff] }
 0x12b   :  { %1497 = vmatprep.mubr.f32.mxu1 %v4378_v8  ;;  %3813 = vmatprep.subr.mxu1 %v499_v2  ;;  %v380_v8 = vld [vmem:[%s8084_s2 + $0xa40] sm:$0xff] }
 0x12c   :  { %1395 = vmatpush2.msra.mxu0 %v721_v4  ;;  %1498 = vmatmul.mubr.f32.vlgmr.msra.gmra.mxu1 %v4347_v62  ;;  %v373_v62 = vld [vmem:[%s8084_s2 + $0xa08] sm:$0xff]  ;;  %v408_v2 = vld [vmem:[%s8084_s2 + $0xb20] sm:$0xff] }
 0x12d   :  { %1396 = vmatprep.subr.mxu0 %v715_v5  ;;  %3814 = vmatpush3.msra.mxu1 %v387_v6  ;;  %v624_v4 = vld [vmem:[%s8084_s2 + $0x11e0] sm:$0xff]  ;;  %v623_v6 = vld [vmem:[%s8084_s2 + $0x11d8] sm:$0xff] }
 0x12e   :  { %1397 = vmatpush2.msra.mxu0 %v714_v7  ;;  %3815 = vmatprep.subr.mxu1 %v492_v9  ;;  %v296_v5 = vld [vmem:[%s8084_s2 + $0x7a0] sm:$0xff]  ;;  %v863_v9 = vadd.f32 %v862_v61, %v733_v58  ;;  %v667_v58 = vld [vmem:[%s8084_s2 + $0x1338] sm:$0xff] }
 0x12f   :  { %1398 = vmatprep.subr.mxu0 %v708_v10  ;;  %3816 = vmatpush3.msra.mxu1 %v380_v8  ;;  %v401_v10 = vld [vmem:[%s8084_s2 + $0xae8] sm:$0xff]  ;;  %v1692_v61 = vld [vmem:[%s8087_s4 + $0xe0] sm:$0xff] }
 0x130   :  { %1399 = vmatpush2.msra.mxu0 %v707_v12  ;;  %3817 = vmatprep.subr.mxu1 %v485_v13  ;;  %v617_v8 = vld [vmem:[%s8084_s2 + $0x11a8] sm:$0xff]  ;;  %v933_v12 = vpop.f32.mrf.mxu1 }
 0x131   :  { %1400 = vmatprep.subr.mxu0 %v701_v14  ;;  %3818 = vmatpush3.msra.mxu1 %v373_v62  ;;  %v289_v13 = vld [vmem:[%s8084_s2 + $0x768] sm:$0xff]  ;;  %v616_v14 = vld [vmem:[%s8084_s2 + $0x11a0] sm:$0xff]  ;;  %v394_v62 = vld [vmem:[%s8084_s2 + $0xab0] sm:$0xff] }
 0x132   :  { %1401 = vmatpush2.msra.mxu0 %v700_v15  ;;  %3819 = vmatprep.subr.mxu1 %v478_v17  ;;  %v282_v15 = vld [vmem:[%s8084_s2 + $0x730] sm:$0xff] }
 0x133   :  { %1402 = vmatprep.subr.mxu0 %v694_v18  ;;  %3820 = vmatpush3.msra.mxu1 %v366_v19  ;;  %v934_v18 = vadd.f32 %v933_v12, %v863_v9  ;;  %v723_v19 = vld [vmem:[%s8084_s2 + $0x14f8] sm:$0xff]  ;;  %v541_v9 = vld [vmem:[%s8084_s2 + $0xf48] sm:$0xff] }
 0x134   :  { %1403 = vmatpush2.msra.mxu0 %v693_v20  ;;  %3821 = vmatprep.subr.mxu1 %v471_v21  ;;  %v1725_v20 = vld [vmem:[%s8087_s4 + $0x1e8] sm:$0xff]  ;;  %v611_v21 = vld [vmem:[%s8084_s2 + $0x1178] sm:$0xff] }
 0x135   :  { %1404 = vmatprep.subr.mxu0 %v687_v22  ;;  %3822 = vmatpush3.msra.mxu1 %v359_v24  ;;  %v1724_v22 = vld [vmem:[%s8087_s4 + $0x1e0] sm:$0xff]  ;;  %v1681_v12 = vld [vmem:[%s8087_s4 + $0x88] sm:$0xff] }
 0x136   :  { %1405 = vmatpush2.msra.mxu0 %v686_v25  ;;  %3823 = vmatprep.subr.mxu1 %v464_v26  ;;  %v5986_v25 = vld.sshfl [vmem:[%s8085_s0 + $0x8] sm:$0x33 pattern:$0x76325410] }
 0x137   :  { %1406 = vmatprep.subr.mxu0 %v680_v27  ;;  %3824 = vmatpush3.msra.mxu1 %v352_v28  ;;  %v1721_v26 = vld [vmem:[%s8087_s4 + $0x1c8] sm:$0xff]  ;;  %v604_v27 = vld [vmem:[%s8084_s2 + $0x1140] sm:$0xff] }
 0x138   :  { %1407 = vmatpush2.msra.mxu0 %v679_v29  ;;  %3825 = vmatprep.subr.mxu1 %v457_v30  ;;  %v1720_v28 = vld [vmem:[%s8087_s4 + $0x1c0] sm:$0xff]  ;;  %v1717_v29 = vld [vmem:[%s8087_s4 + $0x1a8] sm:$0xff] }
 0x139   :  { %1408 = vmatprep.subr.mxu0 %v673_v31  ;;  %3826 = vmatpush3.msra.mxu1 %v345_v32  ;;  %v597_v31 = vld [vmem:[%s8084_s2 + $0x1108] sm:$0xff]  ;;  %v1716_v32 = vld [vmem:[%s8087_s4 + $0x1a0] sm:$0xff] }
 0x13a   :  { %1409 = vmatpush2.msra.mxu0 %v672_v33  ;;  %3827 = vmatprep.subr.mxu1 %v450_v34  ;;  %v702_v33 = vld [vmem:[%s8084_s2 + $0x1450] sm:$0xff]  ;;  %v1713_v34 = vld [vmem:[%s8087_s4 + $0x188] sm:$0xff] }
 0x13b   :  { %1410 = vmatprep.subr.mxu0 %v666_v35  ;;  %3828 = vmatpush3.msra.mxu1 %v338_v36  ;;  %v590_v35 = vld [vmem:[%s8084_s2 + $0x10d0] sm:$0xff]  ;;  %v1712_v36 = vld [vmem:[%s8087_s4 + $0x180] sm:$0xff] }
 0x13c   :  { %1411 = vmatpush2.msra.mxu0 %v665_v37  ;;  %3829 = vmatprep.subr.mxu1 %v443_v38  ;;  %v695_v37 = vld [vmem:[%s8084_s2 + $0x1418] sm:$0xff]  ;;  %v1709_v38 = vld [vmem:[%s8087_s4 + $0x168] sm:$0xff] }
 0x13d   :  { %1412 = vmatprep.subr.mxu0 %v659_v39  ;;  %3830 = vmatpush3.msra.mxu1 %v331_v40  ;;  %v583_v40 = vld [vmem:[%s8084_s2 + $0x1098] sm:$0xff] }
 0x13e   :  { %1413 = vmatpush2.msra.mxu0 %v658_v42  ;;  %3831 = vmatprep.subr.mxu1 %v436_v43  ;;  %v1708_v42 = vld [vmem:[%s8087_s4 + $0x160] sm:$0xff] }
 0x13f   :  { %1414 = vmatprep.subr.mxu0 %v652_v44  ;;  %3832 = vmatpush3.msra.mxu1 %v324_v45  ;;  %v688_v43 = vld [vmem:[%s8084_s2 + $0x13e0] sm:$0xff]  ;;  %v1705_v44 = vld [vmem:[%s8087_s4 + $0x148] sm:$0xff] }
 0x140   :  { %1415 = vmatpush2.msra.mxu0 %v651_v46  ;;  %3833 = vmatprep.subr.mxu1 %v429_v48  ;;  %v576_v45 = vld [vmem:[%s8084_s2 + $0x1060] sm:$0xff]  ;;  %v681_v48 = vld [vmem:[%s8084_s2 + $0x13a8] sm:$0xff] }
 0x141   :  { %1416 = vmatprep.subr.mxu0 %v645_v49  ;;  %3834 = vmatpush3.msra.mxu1 %v317_v53  ;;  %v1704_v46 = vld [vmem:[%s8087_s4 + $0x140] sm:$0xff]  ;;  %v1701_v49 = vld [vmem:[%s8087_s4 + $0x128] sm:$0xff] }
 0x142   :  { %1417 = vmatpush2.msra.mxu0 %v644_v16  ;;  %3835 = vmatprep.subr.mxu1 %v422_v54  ;;  %v569_v53 = vld [vmem:[%s8084_s2 + $0x1028] sm:$0xff]  ;;  %v1700_v16 = vld [vmem:[%s8087_s4 + $0x120] sm:$0xff]  ;;  %v674_v54 = vld [vmem:[%s8084_s2 + $0x1370] sm:$0xff] }
 0x143   :  { %1418 = vmatprep.subr.mxu0 %v638_v55  ;;  %3836 = vmatpush3.msra.mxu1 %v310_v56  ;;  %v1697_v55 = vld [vmem:[%s8087_s4 + $0x108] sm:$0xff]  ;;  %v562_v56 = vld [vmem:[%s8084_s2 + $0xff0] sm:$0xff] }
 0x144   :  { %1419 = vmatpush2.msra.mxu0 %v637_v57  ;;  %3837 = vmatprep.subr.mxu1 %v415_v59  ;;  %v1696_v57 = vld [vmem:[%s8087_s4 + $0x100] sm:$0xff]  ;;  %v1693_v59 = vld [vmem:[%s8087_s4 + $0xe8] sm:$0xff] }
 0x145   :  { %1420 = vmatprep.subr.mxu0 %v631_v60  ;;  %v5949_v7 = vpop.f32.mrf.mxu0  ;;  %3838 = vmatpush3.msra.mxu1 %v303_v0  ;;  %v555_v60 = vld [vmem:[%s8084_s2 + $0xfb8] sm:$0xff]  ;;  %v660_v0 = vld [vmem:[%s8084_s2 + $0x1300] sm:$0xff] }
 0x146   :  { %1421 = vmatpush2.msra.mxu0 %v630_v1  ;;  %3839 = vmatprep.subr.mxu1 %v408_v2  ;;  %v1689_v1 = vld [vmem:[%s8087_s4 + $0xc8] sm:$0xff]  ;;  %v548_v2 = vld [vmem:[%s8084_s2 + $0xf80] sm:$0xff] }
 0x147   :  { %1422 = vmatprep.subr.mxu0 %v624_v4  ;;  %3840 = vmatpush3.msra.mxu1 %v296_v5  ;;  %v1004_v17 = vpop.f32.mrf.mxu0  ;;  %v1688_v4 = vld [vmem:[%s8087_s4 + $0xc0] sm:$0xff]  ;;  %v653_v5 = vld [vmem:[%s8084_s2 + $0x12c8] sm:$0xff] }
 0x148   :  { %1423 = vmatpush2.msra.mxu0 %v623_v6  ;;  %3841 = vmatprep.subr.mxu1 %v401_v10  ;;  %v1005_v24 = vadd.f32 %v1004_v17, %v934_v18  ;;  %v1685_v6 = vld [vmem:[%s8087_s4 + $0xa8] sm:$0xff]  ;;  %v1684_v10 = vld [vmem:[%s8087_s4 + $0xa0] sm:$0xff]  ;;  %v527_v17 = vld [vmem:[%s8084_s2 + $0xed8] sm:$0xff] }
 0x149   :  { %1424 = vmatprep.subr.mxu0 %v617_v8  ;;  %3842 = vmatpush3.msra.mxu1 %v289_v13  ;;  %v646_v8 = vld [vmem:[%s8084_s2 + $0x1290] sm:$0xff]  ;;  %v1676_v18 = vld [vmem:[%s8087_s4 + $0x60] sm:$0xff] }
 0x14a   :  { %1425 = vmatpush2.msra.mxu0 %v616_v14  ;;  %3843 = vmatprep.subr.mxu1 %v394_v62  ;;  %v1651_v30 = vmul.f32 0.01, %v1005_v24  ;;  %vm1644_vm0 = vcmp.ge.f32.partialorder %v1005_v24, 0.0  ;;  %v534_v13 = vld [vmem:[%s8084_s2 + $0xf10] sm:$0xff]  ;;  %v1680_v14 = vld [vmem:[%s8087_s4 + $0x80] sm:$0xff]  ;;  %v639_v62 = vld [vmem:[%s8084_s2 + $0x1258] sm:$0xff] }
 0x14b   :  { %1426 = vmatprep.mubr.f32.mxu0 %v4779_v23  ;;  %3844 = vmatpush3.msra.mxu1 %v282_v15  ;;  %v1677_v15 = vld [vmem:[%s8087_s4 + $0x68] sm:$0xff] }
 0x14c   :  { %1567 = vmatprep.mubr.f32.mxu1 %v4388_v11  ;;  %1427 = vmatmul.mubr.f32.vlgmr.msra.gmra.mxu0 %v5986_v25  ;;  %v716_v11 = vld [vmem:[%s8084_s2 + $0x14c0] sm:$0xff]  ;;  %v6032_v39 = vsel %vm1644_vm0, %v1005_v24, %v1651_v30  ;;  %v625_v24 = vld [vmem:[%s8084_s2 + $0x11e8] sm:$0xff]  ;;  %vm3597_vm0 = vcmask 1041408  }
 0x14d   :  { %1568 = vmatmul.mubr.f32.vlgmr.msra.gmra.mxu1 %v4362_v3  ;;  %3848 = vmatprep.subr.mxu0 %v723_v19  ;;  %v709_v3 = vld [vmem:[%s8084_s2 + $0x1488] sm:$0xff]  ;;  %v632_v19 = vld [vmem:[%s8084_s2 + $0x1220] sm:$0xff] }
 0x14e   :  { %2082 = vmatprep.subr.mxu1 %v1725_v20  ;;  %3849 = vmatpush3.msra.mxu0 %v611_v21  ;;  %v1673_v20 = vld [vmem:[%s8087_s4 + $0x48] sm:$0xff]  ;;  %v520_v21 = vld [vmem:[%s8084_s2 + $0xea0] sm:$0xff] }
 0x14f   :  { %2083 = vmatpush1.msra.mxu1 %v1724_v22  ;;  %3850 = vmatprep.subr.mxu0 %v716_v11  ;;  %v1672_v22 = vld [vmem:[%s8087_s4 + $0x40] sm:$0xff]  ;;  %v1669_v11 = vld [vmem:[%s8087_s4 + $0x28] sm:$0xff] }
 0x150   :  { %2084 = vmatprep.subr.mxu1 %v1721_v26  ;;  %3851 = vmatpush3.msra.mxu0 %v604_v27  ;;  %v513_v26 = vld [vmem:[%s8084_s2 + $0xe68] sm:$0xff]  ;;  %v1668_v27 = vld [vmem:[%s8087_s4 + $0x20] sm:$0xff] }
 0x151   :  { %2085 = vmatpush1.msra.mxu1 %v1720_v28  ;;  %3852 = vmatprep.subr.mxu0 %v709_v3  ;;  %v618_v28 = vld [vmem:[%s8084_s2 + $0x11b0] sm:$0xff]  ;;  %v1665_v3 = vld [vmem:[%s8087_s4 + $0x8] sm:$0xff]  ;;  %v1664_v30 = vld [vmem:[%s8087_s4] sm:$0xff] }
 0x152   :  { %2086 = vmatprep.subr.mxu1 %v1717_v29  ;;  %3853 = vmatpush3.msra.mxu0 %v597_v31  ;;  %v506_v29 = vld [vmem:[%s8084_s2 + $0xe30] sm:$0xff]  ;;  %v1789_v31 = vld [vmem:[%s8087_s4 + $0x3e8] sm:$0xff] }
 0x153   :  { %2087 = vmatpush1.msra.mxu1 %v1716_v32  ;;  %3854 = vmatprep.subr.mxu0 %v702_v33  ;;  %v1853_v32 = vld [vmem:[%s8087_s4 + $0x5e8] sm:$0xff]  ;;  %v1788_v33 = vld [vmem:[%s8087_s4 + $0x3e0] sm:$0xff] }
 0x154   :  { %2088 = vmatprep.subr.mxu1 %v1713_v34  ;;  %3855 = vmatpush3.msra.mxu0 %v590_v35  ;;  %v1852_v34 = vld [vmem:[%s8087_s4 + $0x5e0] sm:$0xff]  ;;  %v1785_v35 = vld [vmem:[%s8087_s4 + $0x3c8] sm:$0xff] }
 0x155   :  { %2089 = vmatpush1.msra.mxu1 %v1712_v36  ;;  %3856 = vmatprep.subr.mxu0 %v695_v37  ;;  %v1849_v36 = vld [vmem:[%s8087_s4 + $0x5c8] sm:$0xff]  ;;  %v1848_v37 = vld [vmem:[%s8087_s4 + $0x5c0] sm:$0xff] }
 0x156   :  { %2090 = vmatprep.subr.mxu1 %v1709_v38  ;;  %2146 = vmatprep.mubr.f32.mxu1 %v6032_v39  ;;  %v1781_v38 = vld [vmem:[%s8087_s4 + $0x3a8] sm:$0xff] }
 0x157   :  { %3857 = vmatpush3.msra.mxu0 %v583_v40  ;;  %2091 = vmatpush1.msra.mxu1 %v1708_v42  ;;  %v1780_v40 = vld [vmem:[%s8087_s4 + $0x3a0] sm:$0xff] }
 0x158   :  { %3858 = vmatprep.subr.mxu0 %v688_v43  ;;  %2092 = vmatprep.subr.mxu1 %v1705_v44  ;;  %v1844_v42 = vld [vmem:[%s8087_s4 + $0x5a0] sm:$0xff]  ;;  %v1777_v43 = vld [vmem:[%s8087_s4 + $0x388] sm:$0xff] }
 0x159   :  { %3859 = vmatpush3.msra.mxu0 %v576_v45  ;;  %2093 = vmatpush1.msra.mxu1 %v1704_v46  ;;  %v1841_v44 = vld [vmem:[%s8087_s4 + $0x588] sm:$0xff]  ;;  %v1776_v45 = vld [vmem:[%s8087_s4 + $0x380] sm:$0xff] }
 0x15a   :  { %3860 = vmatprep.subr.mxu0 %v681_v48  ;;  %2094 = vmatprep.subr.mxu1 %v1701_v49  ;;  %v1840_v46 = vld [vmem:[%s8087_s4 + $0x580] sm:$0xff]  ;;  %v1773_v48 = vld [vmem:[%s8087_s4 + $0x368] sm:$0xff] }
 0x15b   :  { %3861 = vmatpush3.msra.mxu0 %v569_v53  ;;  %2095 = vmatpush1.msra.mxu1 %v1700_v16  ;;  %v1837_v49 = vld [vmem:[%s8087_s4 + $0x568] sm:$0xff]  ;;  %v1772_v53 = vld [vmem:[%s8087_s4 + $0x360] sm:$0xff] }
 0x15c   :  { %3862 = vmatprep.subr.mxu0 %v674_v54  ;;  %2096 = vmatprep.subr.mxu1 %v1697_v55  ;;  %v1836_v16 = vld [vmem:[%s8087_s4 + $0x560] sm:$0xff]  ;;  %v1769_v54 = vld [vmem:[%s8087_s4 + $0x348] sm:$0xff] }
 0x15d   :  { %3863 = vmatpush3.msra.mxu0 %v562_v56  ;;  %2097 = vmatpush1.msra.mxu1 %v1696_v57  ;;  %v1833_v55 = vld [vmem:[%s8087_s4 + $0x548] sm:$0xff]  ;;  %v1768_v56 = vld [vmem:[%s8087_s4 + $0x340] sm:$0xff]  ;;  %v6245_v57 = vsub.s32 0, %v4290_v41 }
 0x15e   :  { %3864 = vmatprep.subr.mxu0 %v667_v58  ;;  %2098 = vmatprep.subr.mxu1 %v1693_v59  ;;  %v1832_v58 = vld [vmem:[%s8087_s4 + $0x540] sm:$0xff]  ;;  %v1765_v59 = vld [vmem:[%s8087_s4 + $0x328] sm:$0xff] }
 0x15f   :  { %3865 = vmatpush3.msra.mxu0 %v555_v60  ;;  %2099 = vmatpush1.msra.mxu1 %v1692_v61  ;;  %v1829_v60 = vld [vmem:[%s8087_s4 + $0x528] sm:$0xff]  ;;  %v1764_v61 = vld [vmem:[%s8087_s4 + $0x320] sm:$0xff] }
 0x160   :  { %3866 = vmatprep.subr.mxu0 %v660_v0  ;;  %2100 = vmatprep.subr.mxu1 %v1689_v1  ;;  %v1828_v0 = vld [vmem:[%s8087_s4 + $0x520] sm:$0xff]  ;;  %v1761_v1 = vld [vmem:[%s8087_s4 + $0x308] sm:$0xff] }
 0x161   :  { %3867 = vmatpush3.msra.mxu0 %v548_v2  ;;  %2101 = vmatpush1.msra.mxu1 %v1688_v4  ;;  %v1825_v2 = vld [vmem:[%s8087_s4 + $0x508] sm:$0xff]  ;;  %v1760_v4 = vld [vmem:[%s8087_s4 + $0x300] sm:$0xff] }
 0x162   :  { %3868 = vmatprep.subr.mxu0 %v653_v5  ;;  %2102 = vmatprep.subr.mxu1 %v1685_v6  ;;  %v729_v5 = vrot.slane %v5899_v50, %v6245_v57  ;;  %v1824_v6 = vld [vmem:[%s8087_s4 + $0x500] sm:$0xff] }
 0x163   :  { %3869 = vmatpush3.msra.mxu0 %v541_v9  ;;  %2103 = vmatpush1.msra.mxu1 %v1684_v10  ;;  %v1757_v9 = vld [vmem:[%s8087_s4 + $0x2e8] sm:$0xff] }
 0x164   :  { %3870 = vmatprep.subr.mxu0 %v646_v8  ;;  %2104 = vmatprep.subr.mxu1 %v1681_v12  ;;  %v1821_v10 = vld [vmem:[%s8087_s4 + $0x4e8] sm:$0xff]  ;;  %v1756_v8 = vld [vmem:[%s8087_s4 + $0x2e0] sm:$0xff] }
 0x165   :  { %3871 = vmatpush3.msra.mxu0 %v534_v13  ;;  %2105 = vmatpush1.msra.mxu1 %v1680_v14  ;;  %v1820_v12 = vld [vmem:[%s8087_s4 + $0x4e0] sm:$0xff]  ;;  %v1753_v13 = vld [vmem:[%s8087_s4 + $0x2c8] sm:$0xff] }
 0x166   :  { %3872 = vmatprep.subr.mxu0 %v639_v62  ;;  %2106 = vmatprep.subr.mxu1 %v1677_v15  ;;  %v1817_v14 = vld [vmem:[%s8087_s4 + $0x4c8] sm:$0xff]  ;;  %v1752_v62 = vld [vmem:[%s8087_s4 + $0x2c0] sm:$0xff]  ;;  %v861_v15 = vadd.f32 %v5901_v51, %v729_v5 }
 0x167   :  { %3873 = vmatpush3.msra.mxu0 %v527_v17  ;;  %2107 = vmatpush1.msra.mxu1 %v1676_v18  ;;  %v6299_v17 = vsub.s32 3, %v4290_v41  ;;  %v1816_v18 = vld [vmem:[%s8087_s4 + $0x4c0] sm:$0xff]  ;;  %v1813_v51 = vld [vmem:[%s8087_s4 + $0x4a8] sm:$0xff] }
 0x168   :  { %3874 = vmatprep.subr.mxu0 %v632_v19  ;;  %2108 = vmatprep.subr.mxu1 %v1673_v20  ;;  %v1749_v19 = vld [vmem:[%s8087_s4 + $0x2a8] sm:$0xff]  ;;  %v6307_v20 = vpop.f32.mrf.mxu1 }
 0x169   :  { %3875 = vmatpush3.msra.mxu0 %v520_v21  ;;  %2109 = vmatpush1.msra.mxu1 %v1672_v22  ;;  %v1748_v21 = vld [vmem:[%s8087_s4 + $0x2a0] sm:$0xff]  ;;  %v1977_v5 = vld [vmem:[%s8087_s4 + $0x9c8] sm:$0xff] }
 0x16a   :  { %3876 = vmatprep.subr.mxu0 %v625_v24  ;;  %2110 = vmatprep.subr.mxu1 %v1669_v11  ;;  %v1812_v22 = vld [vmem:[%s8087_s4 + $0x4a0] sm:$0xff]  ;;  %v1745_v24 = vld [vmem:[%s8087_s4 + $0x288] sm:$0xff] }
 0x16b   :  { %3877 = vmatpush3.msra.mxu0 %v513_v26  ;;  %2111 = vmatpush1.msra.mxu1 %v1668_v27  ;;  %v1809_v11 = vld [vmem:[%s8087_s4 + $0x488] sm:$0xff]  ;;  %v1744_v26 = vld [vmem:[%s8087_s4 + $0x280] sm:$0xff]  ;;  %v932_v27 = vadd.f32 %v5929_v63, %v861_v15 }
 0x16c   :  { %3878 = vmatprep.subr.mxu0 %v618_v28  ;;  %2112 = vmatprep.subr.mxu1 %v1665_v3  ;;  %v741_v28 = vrot.slane %v5899_v50, %v6299_v17  ;;  %v1808_v3 = vld [vmem:[%s8087_s4 + $0x480] sm:$0xff]  ;;  %v1805_v63 = vld [vmem:[%s8087_s4 + $0x468] sm:$0xff] }
 0x16d   :  { %3879 = vmatpush3.msra.mxu0 %v506_v29  ;;  %1637 = vmatprep.mubr.f32.mxu0 %v4779_v23  ;;  %v1784_v23 = vld [vmem:[%s8087_s4 + $0x3c0] sm:$0xff]  ;;  %v1741_v29 = vld [vmem:[%s8087_s4 + $0x268] sm:$0xff] }
 0x16e   :  { %2113 = vmatpush1.msra.mxu1 %v1664_v30  ;;  %1638 = vmatmul.mubr.f32.vlgmr.msra.gmra.mxu0 %v5986_v25  ;;  %v1845_v25 = vld [vmem:[%s8087_s4 + $0x5a8] sm:$0xff]  ;;  %v1075_v30 = vpop.f32.mrf.mxu1 }
 0x16f   :  { %2114 = vmatprep.subr.mxu1 %v1789_v31  ;;  %2153 = vmatprep.subr.mxu0 %v1853_v32  ;;  %v1740_v31 = vld [vmem:[%s8087_s4 + $0x260] sm:$0xff]  ;;  %v1003_v32 = vadd.f32 %v5949_v7, %v932_v27  ;;  %v1901_v15 = vld [vmem:[%s8087_s4 + $0x768] sm:$0xff] }
 0x170   :  { %2115 = vmatpush2.msra.mxu1 %v1788_v33  ;;  %2154 = vmatpush1.msra.mxu0 %v1852_v34  ;;  %v1804_v33 = vld [vmem:[%s8087_s4 + $0x460] sm:$0xff]  ;;  %v1737_v34 = vld [vmem:[%s8087_s4 + $0x248] sm:$0xff] }
 0x171   :  { %2116 = vmatprep.subr.mxu1 %v1785_v35  ;;  %2155 = vmatprep.subr.mxu0 %v1849_v36  ;;  %v1801_v35 = vld [vmem:[%s8087_s4 + $0x448] sm:$0xff]  ;;  %v1736_v7 = vld [vmem:[%s8087_s4 + $0x240] sm:$0xff]  ;;  %vm1643_vm1 = vcmp.ge.f32.partialorder %v1003_v32, 0.0 }
 0x172   :  { %2117 = vmatpush2.msra.mxu1 %v1784_v23  ;;  %2156 = vmatpush1.msra.mxu0 %v1848_v37  ;;  %v1076_v23 = vadd.f32 %v1075_v30, %v741_v28  ;;  %v1800_v37 = vld [vmem:[%s8087_s4 + $0x440] sm:$0xff]  ;;  %v1893_v27 = vld [vmem:[%s8087_s4 + $0x728] sm:$0xff] }
 0x173   :  { %2118 = vmatprep.subr.mxu1 %v1781_v38  ;;  %2157 = vmatprep.subr.mxu0 %v1845_v25  ;;  %v1733_v38 = vld [vmem:[%s8087_s4 + $0x228] sm:$0xff]  ;;  %v1960_v28 = vld [vmem:[%s8087_s4 + $0x940] sm:$0xff] }
 0x174   :  { %2119 = vmatpush2.msra.mxu1 %v1780_v40  ;;  %2158 = vmatpush1.msra.mxu0 %v1844_v42  ;;  %v1797_v25 = vld [vmem:[%s8087_s4 + $0x428] sm:$0xff]  ;;  %v1732_v40 = vld [vmem:[%s8087_s4 + $0x220] sm:$0xff] }
 0x175   :  { %2120 = vmatprep.subr.mxu1 %v1777_v43  ;;  %2159 = vmatprep.subr.mxu0 %v1841_v44  ;;  %v1650_v44 = vmul.f32 0.01, %v1003_v32  ;;  %v1889_v30 = vld [vmem:[%s8087_s4 + $0x708] sm:$0xff] }
 0x176   :  { %2121 = vmatpush2.msra.mxu1 %v1776_v45  ;;  %2160 = vmatpush1.msra.mxu0 %v1840_v46  ;;  %v1796_v45 = vld [vmem:[%s8087_s4 + $0x420] sm:$0xff]  ;;  %v1729_v46 = vld [vmem:[%s8087_s4 + $0x208] sm:$0xff] }
 0x177   :  { %2122 = vmatprep.subr.mxu1 %v1773_v48  ;;  %2161 = vmatprep.subr.mxu0 %v1837_v49  ;;  %v1793_v49 = vld [vmem:[%s8087_s4 + $0x408] sm:$0xff] }
 0x178   :  { %2123 = vmatpush2.msra.mxu1 %v1772_v53  ;;  %2162 = vmatpush1.msra.mxu0 %v1836_v16  ;;  %v1728_v53 = vld [vmem:[%s8087_s4 + $0x200] sm:$0xff] }
 0x179   :  { %2124 = vmatprep.subr.mxu1 %v1769_v54  ;;  %2163 = vmatprep.subr.mxu0 %v1833_v55  ;;  %v1792_v54 = vld [vmem:[%s8087_s4 + $0x400] sm:$0xff] }
 0x17a   :  { %2125 = vmatpush2.msra.mxu1 %v1768_v56  ;;  %2164 = vmatpush1.msra.mxu0 %v1832_v58  ;;  %v1917_v56 = vld [vmem:[%s8087_s4 + $0x7e8] sm:$0xff] }
 0x17b   :  { %2126 = vmatprep.subr.mxu1 %v1765_v59  ;;  %2165 = vmatprep.subr.mxu0 %v1829_v60  ;;  %v1981_v58 = vld [vmem:[%s8087_s4 + $0x9e8] sm:$0xff]  ;;  %v6393_v59 = vsel %vm1643_vm1, %v1003_v32, %v1650_v44  ;;  %v1916_v60 = vld [vmem:[%s8087_s4 + $0x7e0] sm:$0xff] }
 0x17c   :  { %2127 = vmatpush2.msra.mxu1 %v1764_v61  ;;  %2166 = vmatpush1.msra.mxu0 %v1828_v0  ;;  %v1913_v0 = vld [vmem:[%s8087_s4 + $0x7c8] sm:$0xff]  ;;  %v1944_v44 = vld [vmem:[%s8087_s4 + $0x8c0] sm:$0xff] }
 0x17d   :  { %2128 = vmatprep.subr.mxu1 %v1761_v1  ;;  %2167 = vmatprep.subr.mxu0 %v1825_v2  ;;  %v1980_v1 = vld [vmem:[%s8087_s4 + $0x9e0] sm:$0xff]  ;;  %v1953_v32 = vld [vmem:[%s8087_s4 + $0x908] sm:$0xff] }
 0x17e   :  { %2129 = vmatpush2.msra.mxu1 %v1760_v4  ;;  %2168 = vmatpush1.msra.mxu0 %v1824_v6  ;;  %v1912_v2 = vld [vmem:[%s8087_s4 + $0x7c0] sm:$0xff]  ;;  %v1909_v6 = vld [vmem:[%s8087_s4 + $0x7a8] sm:$0xff] }
 0x17f   :  { %2130 = vmatprep.subr.mxu1 %v1757_v9  ;;  %2169 = vmatprep.subr.mxu0 %v1821_v10  ;;  %v1976_v9 = vld [vmem:[%s8087_s4 + $0x9c0] sm:$0xff] }
 0x180   :  { %2131 = vmatpush2.msra.mxu1 %v1756_v8  ;;  %2170 = vmatpush1.msra.mxu0 %v1820_v12  ;;  %v1908_v10 = vld [vmem:[%s8087_s4 + $0x7a0] sm:$0xff]  ;;  %v1973_v8 = vld [vmem:[%s8087_s4 + $0x9a8] sm:$0xff] }
 0x181   :  { %2132 = vmatprep.subr.mxu1 %v1753_v13  ;;  %2171 = vmatprep.subr.mxu0 %v1817_v14  ;;  %v1905_v12 = vld [vmem:[%s8087_s4 + $0x788] sm:$0xff]  ;;  %v1972_v13 = vld [vmem:[%s8087_s4 + $0x9a0] sm:$0xff] }
 0x182   :  { %2133 = vmatpush2.msra.mxu1 %v1752_v62  ;;  %2172 = vmatpush1.msra.mxu0 %v1816_v18  ;;  %v1904_v14 = vld [vmem:[%s8087_s4 + $0x780] sm:$0xff]  ;;  %v1969_v62 = vld [vmem:[%s8087_s4 + $0x988] sm:$0xff] }
 0x183   :  { %2134 = vmatprep.subr.mxu1 %v1749_v19  ;;  %2173 = vmatprep.subr.mxu0 %v1813_v51  ;;  %v1968_v18 = vld [vmem:[%s8087_s4 + $0x980] sm:$0xff]  ;;  %v1965_v51 = vld [vmem:[%s8087_s4 + $0x968] sm:$0xff] }
 0x184   :  { %2135 = vmatpush2.msra.mxu1 %v1748_v21  ;;  %2174 = vmatpush1.msra.mxu0 %v1812_v22  ;;  %v1900_v19 = vld [vmem:[%s8087_s4 + $0x760] sm:$0xff]  ;;  %v1897_v21 = vld [vmem:[%s8087_s4 + $0x748] sm:$0xff] }
 0x185   :  { %2136 = vmatprep.subr.mxu1 %v1745_v24  ;;  %2175 = vmatprep.subr.mxu0 %v1809_v11  ;;  %v1964_v22 = vld [vmem:[%s8087_s4 + $0x960] sm:$0xff]  ;;  %v1961_v11 = vld [vmem:[%s8087_s4 + $0x948] sm:$0xff] }
 0x186   :  { %2137 = vmatpush2.msra.mxu1 %v1744_v26  ;;  %2176 = vmatpush1.msra.mxu0 %v1808_v3  ;;  %v1896_v24 = vld [vmem:[%s8087_s4 + $0x740] sm:$0xff]  ;;  %v6463_v26 = vsub.s32 2, %v4290_v41 }
 0x187   :  { %2138 = vmatprep.subr.mxu1 %v1741_v29  ;;  %v6355_v36 = vpop.f32.mrf.mxu0  ;;  %2177 = vmatprep.subr.mxu0 %v1805_v63  ;;  %v1892_v3 = vld [vmem:[%s8087_s4 + $0x720] sm:$0xff]  ;;  %v1957_v29 = vld [vmem:[%s8087_s4 + $0x928] sm:$0xff] }
 0x188   :  { %2139 = vmatpush2.msra.mxu1 %v1740_v31  ;;  %2178 = vmatpush1.msra.mxu0 %v1804_v33  ;;  %v1956_v63 = vld [vmem:[%s8087_s4 + $0x920] sm:$0xff]  ;;  %v737_v33 = vrot.slane %v5899_v50, %v6463_v26  ;;  %v1949_v50 = vld [vmem:[%s8087_s4 + $0x8e8] sm:$0xff] }
 0x189   :  { %2140 = vmatprep.subr.mxu1 %v1737_v34  ;;  %v1146_v42 = vpop.f32.mrf.mxu0  ;;  %v6369_v43 = vpop.f32.mrf.mxu1  ;;  %2179 = vmatprep.subr.mxu0 %v1801_v35  ;;  %v1888_v31 = vld [vmem:[%s8087_s4 + $0x700] sm:$0xff]  ;;  %v1885_v34 = vld [vmem:[%s8087_s4 + $0x6e8] sm:$0xff] }
 0x18a   :  { %2141 = vmatpush2.msra.mxu1 %v1736_v7  ;;  %v1147_v48 = vadd.f32 %v1146_v42, %v1076_v23  ;;  %2180 = vmatpush1.msra.mxu0 %v1800_v37  ;;  %v1952_v35 = vld [vmem:[%s8087_s4 + $0x900] sm:$0xff]  ;;  %v1881_v23 = vld [vmem:[%s8087_s4 + $0x6c8] sm:$0xff] }
 0x18b   :  { %2142 = vmatprep.subr.mxu1 %v1733_v38  ;;  %v1217_v16 = vpop.f32.mrf.mxu1  ;;  %2181 = vmatprep.subr.mxu0 %v1797_v25  ;;  %v1884_v7 = vld [vmem:[%s8087_s4 + $0x6e0] sm:$0xff]  ;;  %v1945_v25 = vld [vmem:[%s8087_s4 + $0x8c8] sm:$0xff] }
 0x18c   :  { %2143 = vmatpush2.msra.mxu1 %v1732_v40  ;;  %v1218_v55 = vadd.f32 %v1217_v16, %v1147_v48  ;;  %2182 = vmatpush1.msra.mxu0 %v1796_v45  ;;  %v1948_v37 = vld [vmem:[%s8087_s4 + $0x8e0] sm:$0xff]  ;;  %v1074_v40 = vadd.f32 %v6307_v20, %v737_v33  ;;  %v1877_v42 = vld [vmem:[%s8087_s4 + $0x6a8] sm:$0xff]  ;;  %v1707_v33 = vld [vmem:[%s8087_s4 + $0x158] sm:$0xff] }
 0x18d   :  { %2144 = vmatprep.subr.mxu1 %v1729_v46  ;;  %2183 = vmatprep.subr.mxu0 %v1793_v49  ;;  %v1880_v38 = vld [vmem:[%s8087_s4 + $0x6c0] sm:$0xff]  ;;  %v1941_v20 = vld [vmem:[%s8087_s4 + $0x8a8] sm:$0xff] }
 0x18e   :  { %2145 = vmatpush2.msra.mxu1 %v1728_v53  ;;  %v1653_v61 = vmul.f32 0.01, %v1218_v55  ;;  %vm1646_vm2 = vcmp.ge.f32.partialorder %v1218_v55, 0.0  ;;  %2184 = vmatpush1.msra.mxu0 %v1792_v54  ;;  %v1876_v45 = vld [vmem:[%s8087_s4 + $0x6a0] sm:$0xff]  ;;  %v1145_v46 = vadd.f32 %v6355_v36, %v1074_v40  ;;  %v1873_v48 = vld [vmem:[%s8087_s4 + $0x688] sm:$0xff] }
 0x18f   :  { %2147 = vmatmul.mubr.f32.vlgmr.msra.gmra.mxu1 %v6393_v59  ;;  %2185 = vmatprep.subr.mxu0 %v1917_v56  ;;  %v1940_v49 = vld [vmem:[%s8087_s4 + $0x8a0] sm:$0xff]  ;;  %v1937_v36 = vld [vmem:[%s8087_s4 + $0x888] sm:$0xff] }
 0x190   :  { %v6408_v4 = vsel %vm1646_vm2, %v1218_v55, %v1653_v61  ;;  %2224 = vmatprep.subr.mxu1 %v1981_v58  ;;  %2186 = vmatpush2.msra.mxu0 %v1916_v60  ;;  %v1872_v53 = vld [vmem:[%s8087_s4 + $0x680] sm:$0xff]  ;;  %v1869_v16 = vld [vmem:[%s8087_s4 + $0x668] sm:$0xff]  ;;  %v1216_v58 = vadd.f32 %v6369_v43, %v1145_v46  ;;  %v1694_v46 = vld [vmem:[%s8087_s4 + $0xf0] sm:$0xff] }
 0x191   :  { %2217 = vmatprep.mubr.f32.mxu0 %v6408_v4  ;;  %2187 = vmatprep.subr.mxu0 %v1913_v0  ;;  %v1936_v54 = vld [vmem:[%s8087_s4 + $0x880] sm:$0xff]  ;;  %v1933_v56 = vld [vmem:[%s8087_s4 + $0x868] sm:$0xff] }
 0x192   :  { %2225 = vmatpush1.msra.mxu1 %v1980_v1  ;;  %2188 = vmatpush2.msra.mxu0 %v1912_v2  ;;  %v1868_v55 = vld [vmem:[%s8087_s4 + $0x660] sm:$0xff]  ;;  %v1865_v60 = vld [vmem:[%s8087_s4 + $0x648] sm:$0xff]  ;;  %vm1645_vm3 = vcmp.ge.f32.partialorder %v1216_v58, 0.0 }
 0x193   :  { %2226 = vmatprep.subr.mxu1 %v1977_v5  ;;  %2189 = vmatprep.subr.mxu0 %v1909_v6  ;;  %v1932_v61 = vld [vmem:[%s8087_s4 + $0x860] sm:$0xff]  ;;  %v1929_v43 = vld [vmem:[%s8087_s4 + $0x848] sm:$0xff] }
 0x194   :  { %2227 = vmatpush1.msra.mxu1 %v1976_v9  ;;  %2190 = vmatpush2.msra.mxu0 %v1908_v10  ;;  %v1864_v0 = vld [vmem:[%s8087_s4 + $0x640] sm:$0xff]  ;;  %v1861_v1 = vld [vmem:[%s8087_s4 + $0x628] sm:$0xff]  ;;  %v1652_v9 = vmul.f32 0.01, %v1216_v58 }
 0x195   :  { %2228 = vmatprep.subr.mxu1 %v1973_v8  ;;  %2191 = vmatprep.subr.mxu0 %v1905_v12  ;;  %v1928_v2 = vld [vmem:[%s8087_s4 + $0x840] sm:$0xff]  ;;  %v1925_v6 = vld [vmem:[%s8087_s4 + $0x828] sm:$0xff] }
 0x196   :  { %2229 = vmatpush1.msra.mxu1 %v1972_v13  ;;  %2192 = vmatpush2.msra.mxu0 %v1904_v14  ;;  %v1860_v5 = vld [vmem:[%s8087_s4 + $0x620] sm:$0xff]  ;;  %v1857_v10 = vld [vmem:[%s8087_s4 + $0x608] sm:$0xff]  ;;  %v1727_v14 = vld [vmem:[%s8087_s4 + $0x1f8] sm:$0xff] }
 0x197   :  { %2230 = vmatprep.subr.mxu1 %v1969_v62  ;;  %2193 = vmatprep.subr.mxu0 %v1901_v15  ;;  %v1924_v8 = vld [vmem:[%s8087_s4 + $0x820] sm:$0xff]  ;;  %v1921_v13 = vld [vmem:[%s8087_s4 + $0x808] sm:$0xff]  ;;  %v1726_v62 = vld [vmem:[%s8087_s4 + $0x1f0] sm:$0xff]  ;;  %v6596_v15 = vsel %vm1645_vm3, %v1216_v58, %v1652_v9 }
 0x198   :  { %2231 = vmatpush1.msra.mxu1 %v1968_v18  ;;  %2194 = vmatpush2.msra.mxu0 %v1900_v19  ;;  %v1856_v12 = vld [vmem:[%s8087_s4 + $0x600] sm:$0xff]  ;;  %v1723_v18 = vld [vmem:[%s8087_s4 + $0x1d8] sm:$0xff]  ;;  %v2009_v58 = vld [vmem:[%s8087_s4 + $0xac8] sm:$0xff] }
 0x199   :  { %2232 = vmatprep.subr.mxu1 %v1965_v51  ;;  %2195 = vmatprep.subr.mxu0 %v1897_v21  ;;  %v1920_v19 = vld [vmem:[%s8087_s4 + $0x800] sm:$0xff]  ;;  %v1722_v51 = vld [vmem:[%s8087_s4 + $0x1d0] sm:$0xff]  ;;  %v2045_v21 = vld [vmem:[%s8087_s4 + $0xbe8] sm:$0xff] }
 0x19a   :  { %2233 = vmatpush1.msra.mxu1 %v1964_v22  ;;  %2196 = vmatpush2.msra.mxu0 %v1896_v24  ;;  %v1719_v22 = vld [vmem:[%s8087_s4 + $0x1b8] sm:$0xff]  ;;  %v2044_v24 = vld [vmem:[%s8087_s4 + $0xbe0] sm:$0xff] }
 0x19b   :  { %2234 = vmatprep.subr.mxu1 %v1961_v11  ;;  %2197 = vmatprep.subr.mxu0 %v1893_v27  ;;  %v1718_v11 = vld [vmem:[%s8087_s4 + $0x1b0] sm:$0xff]  ;;  %v2041_v27 = vld [vmem:[%s8087_s4 + $0xbc8] sm:$0xff]  ;;  %v2024_v40 = vld [vmem:[%s8087_s4 + $0xb40] sm:$0xff] }
 0x19c   :  { %2235 = vmatpush1.msra.mxu1 %v1960_v28  ;;  %2198 = vmatpush2.msra.mxu0 %v1892_v3  ;;  %v2040_v28 = vld [vmem:[%s8087_s4 + $0xbc0] sm:$0xff]  ;;  %v1714_v3 = vld [vmem:[%s8087_s4 + $0x190] sm:$0xff]  ;;  %v1675_v9 = vld [vmem:[%s8087_s4 + $0x58] sm:$0xff] }
 0x19d   :  { %2236 = vmatprep.subr.mxu1 %v1957_v29  ;;  %2199 = vmatprep.subr.mxu0 %v1889_v30  ;;  %v2037_v29 = vld [vmem:[%s8087_s4 + $0xba8] sm:$0xff]  ;;  %v1711_v30 = vld [vmem:[%s8087_s4 + $0x178] sm:$0xff] }
 0x19e   :  { %2237 = vmatpush1.msra.mxu1 %v1956_v63  ;;  %2200 = vmatpush2.msra.mxu0 %v1888_v31  ;;  %v2036_v63 = vld [vmem:[%s8087_s4 + $0xba0] sm:$0xff]  ;;  %v1710_v31 = vld [vmem:[%s8087_s4 + $0x170] sm:$0xff] }
 0x19f   :  { %2238 = vmatprep.subr.mxu1 %v1953_v32  ;;  %2201 = vmatprep.subr.mxu0 %v1885_v34  ;;  %v2033_v32 = vld [vmem:[%s8087_s4 + $0xb88] sm:$0xff]  ;;  %v2032_v34 = vld [vmem:[%s8087_s4 + $0xb80] sm:$0xff] }
 0x1a0   :  { %2239 = vmatpush1.msra.mxu1 %v1952_v35  ;;  %2202 = vmatpush2.msra.mxu0 %v1884_v7  ;;  %v1706_v35 = vld [vmem:[%s8087_s4 + $0x150] sm:$0xff]  ;;  %v2029_v7 = vld [vmem:[%s8087_s4 + $0xb68] sm:$0xff] }
 0x1a1   :  { %2240 = vmatprep.subr.mxu1 %v1949_v50  ;;  %2203 = vmatprep.subr.mxu0 %v1881_v23  ;;  %v1703_v50 = vld [vmem:[%s8087_s4 + $0x138] sm:$0xff]  ;;  %v2028_v23 = vld [vmem:[%s8087_s4 + $0xb60] sm:$0xff] }
 0x1a2   :  { %2241 = vmatpush1.msra.mxu1 %v1948_v37  ;;  %2204 = vmatpush2.msra.mxu0 %v1880_v38  ;;  %v1702_v37 = vld [vmem:[%s8087_s4 + $0x130] sm:$0xff]  ;;  %v2025_v38 = vld [vmem:[%s8087_s4 + $0xb48] sm:$0xff] }
 0x1a3   :  { %2242 = vmatprep.subr.mxu1 %v1945_v25  ;;  %2205 = vmatprep.subr.mxu0 %v1877_v42  ;;  %v1699_v25 = vld [vmem:[%s8087_s4 + $0x118] sm:$0xff]  ;;  %v1698_v42 = vld [vmem:[%s8087_s4 + $0x110] sm:$0xff] }
 0x1a4   :  { %2243 = vmatpush1.msra.mxu1 %v1944_v44  ;;  %2206 = vmatpush2.msra.mxu0 %v1876_v45  ;;  %v2021_v44 = vld [vmem:[%s8087_s4 + $0xb28] sm:$0xff]  ;;  %v1695_v45 = vld [vmem:[%s8087_s4 + $0xf8] sm:$0xff] }
 0x1a5   :  { %2244 = vmatprep.subr.mxu1 %v1941_v20  ;;  %2207 = vmatprep.subr.mxu0 %v1873_v48  ;;  %v2020_v20 = vld [vmem:[%s8087_s4 + $0xb20] sm:$0xff]  ;;  %v2017_v48 = vld [vmem:[%s8087_s4 + $0xb08] sm:$0xff] }
 0x1a6   :  { %2245 = vmatpush1.msra.mxu1 %v1940_v49  ;;  %2208 = vmatpush2.msra.mxu0 %v1872_v53  ;;  %v1691_v49 = vld [vmem:[%s8087_s4 + $0xd8] sm:$0xff]  ;;  %v2016_v53 = vld [vmem:[%s8087_s4 + $0xb00] sm:$0xff] }
 0x1a7   :  { %2246 = vmatprep.subr.mxu1 %v1937_v36  ;;  %2209 = vmatprep.subr.mxu0 %v1869_v16  ;;  %v1690_v36 = vld [vmem:[%s8087_s4 + $0xd0] sm:$0xff]  ;;  %v2013_v16 = vld [vmem:[%s8087_s4 + $0xae8] sm:$0xff] }
 0x1a8   :  { %2247 = vmatpush1.msra.mxu1 %v1936_v54  ;;  %2210 = vmatpush2.msra.mxu0 %v1868_v55  ;;  %v1687_v54 = vld [vmem:[%s8087_s4 + $0xb8] sm:$0xff]  ;;  %v2012_v55 = vld [vmem:[%s8087_s4 + $0xae0] sm:$0xff] }
 0x1a9   :  { %2248 = vmatprep.subr.mxu1 %v1933_v56  ;;  %2211 = vmatprep.subr.mxu0 %v1865_v60  ;;  %v1686_v56 = vld [vmem:[%s8087_s4 + $0xb0] sm:$0xff]  ;;  %v1683_v60 = vld [vmem:[%s8087_s4 + $0x98] sm:$0xff] }
 0x1aa   :  { %2249 = vmatpush1.msra.mxu1 %v1932_v61  ;;  %2212 = vmatpush2.msra.mxu0 %v1864_v0  ;;  %v2008_v61 = vld [vmem:[%s8087_s4 + $0xac0] sm:$0xff]  ;;  %v1682_v0 = vld [vmem:[%s8087_s4 + $0x90] sm:$0xff] }
 0x1ab   :  { %2250 = vmatprep.subr.mxu1 %v1929_v43  ;;  %2213 = vmatprep.subr.mxu0 %v1861_v1  ;;  %v2005_v43 = vld [vmem:[%s8087_s4 + $0xaa8] sm:$0xff]  ;;  %v1679_v1 = vld [vmem:[%s8087_s4 + $0x78] sm:$0xff] }
 0x1ac   :  { %2251 = vmatpush1.msra.mxu1 %v1928_v2  ;;  %2214 = vmatpush2.msra.mxu0 %v1860_v5  ;;  %v2004_v2 = vld [vmem:[%s8087_s4 + $0xaa0] sm:$0xff]  ;;  %v1678_v5 = vld [vmem:[%s8087_s4 + $0x70] sm:$0xff] }
 0x1ad   :  { %2252 = vmatprep.subr.mxu1 %v1925_v6  ;;  %2215 = vmatprep.subr.mxu0 %v1857_v10  ;;  %v2001_v6 = vld [vmem:[%s8087_s4 + $0xa88] sm:$0xff]  ;;  %v2000_v10 = vld [vmem:[%s8087_s4 + $0xa80] sm:$0xff] }
 0x1ae   :  { %2253 = vmatpush1.msra.mxu1 %v1924_v8  ;;  %2216 = vmatpush2.msra.mxu0 %v1856_v12  ;;  %v1674_v8 = vld [vmem:[%s8087_s4 + $0x50] sm:$0xff]  ;;  %v1997_v12 = vld [vmem:[%s8087_s4 + $0xa68] sm:$0xff] }
 0x1af   :  { %2254 = vmatprep.subr.mxu1 %v1921_v13  ;;  %2218 = vmatmul.mubr.f32.vlgmr.msra.gmra.mxu0 %v6596_v15  ;;  %v1671_v13 = vld [vmem:[%s8087_s4 + $0x38] sm:$0xff] }
 0x1b0   :  { %2366 = vmatprep.subr.mxu0 %v1727_v14  ;;  %2430 = vmatprep.mubr.f32.mxu0 %v6032_v39  ;;  %v1715_v39 = vld [vmem:[%s8087_s4 + $0x198] sm:$0xff]  ;;  %v1996_v14 = vld [vmem:[%s8087_s4 + $0xa60] sm:$0xff] }
 0x1b1   :  { %2367 = vmatpush1.msra.mxu0 %v1726_v62  ;;  %2255 = vmatpush1.msra.mxu1 %v1920_v19  ;;  %v1670_v62 = vld [vmem:[%s8087_s4 + $0x30] sm:$0xff]  ;;  %v1667_v19 = vld [vmem:[%s8087_s4 + $0x18] sm:$0xff] }
 0x1b2   :  { %2368 = vmatprep.subr.mxu0 %v1723_v18  ;;  %2256 = vmatprep.subr.mxu1 %v2045_v21  ;;  %v1993_v18 = vld [vmem:[%s8087_s4 + $0xa48] sm:$0xff]  ;;  %v1666_v21 = vld [vmem:[%s8087_s4 + $0x10] sm:$0xff] }
 0x1b3   :  { %2369 = vmatpush1.msra.mxu0 %v1722_v51  ;;  %2257 = vmatpush2.msra.mxu1 %v2044_v24  ;;  %v1992_v51 = vld [vmem:[%s8087_s4 + $0xa40] sm:$0xff]  ;;  %v1791_v24 = vld [vmem:[%s8087_s4 + $0x3f8] sm:$0xff] }
 0x1b4   :  { %2370 = vmatprep.subr.mxu0 %v1719_v22  ;;  %2258 = vmatprep.subr.mxu1 %v2041_v27  ;;  %v1989_v22 = vld [vmem:[%s8087_s4 + $0xa28] sm:$0xff]  ;;  %v1790_v27 = vld [vmem:[%s8087_s4 + $0x3f0] sm:$0xff] }
 0x1b5   :  { %2371 = vmatpush1.msra.mxu0 %v1718_v11  ;;  %2259 = vmatpush2.msra.mxu1 %v2040_v28  ;;  %v1988_v11 = vld [vmem:[%s8087_s4 + $0xa20] sm:$0xff]  ;;  %v1787_v28 = vld [vmem:[%s8087_s4 + $0x3d8] sm:$0xff] }
 0x1b6   :  { %2372 = vmatprep.subr.mxu0 %v1715_v39  ;;  %2260 = vmatprep.subr.mxu1 %v2037_v29  ;;  %v1985_v39 = vld [vmem:[%s8087_s4 + $0xa08] sm:$0xff]  ;;  %v1786_v29 = vld [vmem:[%s8087_s4 + $0x3d0] sm:$0xff] }
 0x1b7   :  { %2373 = vmatpush1.msra.mxu0 %v1714_v3  ;;  %2261 = vmatpush2.msra.mxu1 %v2036_v63  ;;  %v1984_v3 = vld [vmem:[%s8087_s4 + $0xa00] sm:$0xff]  ;;  %v1783_v63 = vld [vmem:[%s8087_s4 + $0x3b8] sm:$0xff] }
 0x1b8   :  { %2374 = vmatprep.subr.mxu0 %v1711_v30  ;;  %2262 = vmatprep.subr.mxu1 %v2033_v32  ;;  %v2053_v30 = vld [vmem:[%s8087_s4 + $0xc28] sm:$0xff]  ;;  %v1779_v32 = vld [vmem:[%s8087_s4 + $0x398] sm:$0xff] }
 0x1b9   :  { %2375 = vmatpush1.msra.mxu0 %v1710_v31  ;;  %2263 = vmatpush2.msra.mxu1 %v2032_v34  ;;  %v1782_v31 = vld [vmem:[%s8087_s4 + $0x3b0] sm:$0xff]  ;;  %v1775_v34 = vld [vmem:[%s8087_s4 + $0x378] sm:$0xff] }
 0x1ba   :  { %2376 = vmatprep.subr.mxu0 %v1707_v33  ;;  %2264 = vmatprep.subr.mxu1 %v2029_v7  ;;  %v1778_v33 = vld [vmem:[%s8087_s4 + $0x390] sm:$0xff]  ;;  %v1771_v7 = vld [vmem:[%s8087_s4 + $0x358] sm:$0xff] }
 0x1bb   :  { %2377 = vmatpush1.msra.mxu0 %v1706_v35  ;;  %2265 = vmatpush2.msra.mxu1 %v2028_v23  ;;  %v1774_v35 = vld [vmem:[%s8087_s4 + $0x370] sm:$0xff]  ;;  %v1767_v23 = vld [vmem:[%s8087_s4 + $0x338] sm:$0xff] }
 0x1bc   :  { %2378 = vmatprep.subr.mxu0 %v1703_v50  ;;  %2266 = vmatprep.subr.mxu1 %v2025_v38  ;;  %v1770_v50 = vld [vmem:[%s8087_s4 + $0x350] sm:$0xff]  ;;  %v1763_v38 = vld [vmem:[%s8087_s4 + $0x318] sm:$0xff] }
 0x1bd   :  { %2379 = vmatpush1.msra.mxu0 %v1702_v37  ;;  %2267 = vmatpush2.msra.mxu1 %v2024_v40  ;;  %v1766_v37 = vld [vmem:[%s8087_s4 + $0x330] sm:$0xff]  ;;  %v1759_v40 = vld [vmem:[%s8087_s4 + $0x2f8] sm:$0xff] }
 0x1be   :  { %2380 = vmatprep.subr.mxu0 %v1699_v25  ;;  %2268 = vmatprep.subr.mxu1 %v2021_v44  ;;  %v1762_v25 = vld [vmem:[%s8087_s4 + $0x310] sm:$0xff]  ;;  %v1755_v44 = vld [vmem:[%s8087_s4 + $0x2d8] sm:$0xff] }
 0x1bf   :  { %2381 = vmatpush1.msra.mxu0 %v1698_v42  ;;  %2269 = vmatpush2.msra.mxu1 %v2020_v20  ;;  %v1758_v42 = vld [vmem:[%s8087_s4 + $0x2f0] sm:$0xff]  ;;  %v1751_v20 = vld [vmem:[%s8087_s4 + $0x2b8] sm:$0xff] }
 0x1c0   :  { %2382 = vmatprep.subr.mxu0 %v1695_v45  ;;  %2270 = vmatprep.subr.mxu1 %v2017_v48  ;;  %v1754_v45 = vld [vmem:[%s8087_s4 + $0x2d0] sm:$0xff]  ;;  %v1747_v48 = vld [vmem:[%s8087_s4 + $0x298] sm:$0xff] }
 0x1c1   :  { %2383 = vmatpush1.msra.mxu0 %v1694_v46  ;;  %2271 = vmatpush2.msra.mxu1 %v2016_v53  ;;  %v1750_v46 = vld [vmem:[%s8087_s4 + $0x2b0] sm:$0xff]  ;;  %v1743_v53 = vld [vmem:[%s8087_s4 + $0x278] sm:$0xff] }
 0x1c2   :  { %2384 = vmatprep.subr.mxu0 %v1691_v49  ;;  %2272 = vmatprep.subr.mxu1 %v2013_v16  ;;  %v1746_v49 = vld [vmem:[%s8087_s4 + $0x290] sm:$0xff]  ;;  %v1739_v16 = vld [vmem:[%s8087_s4 + $0x258] sm:$0xff] }
 0x1c3   :  { %2385 = vmatpush1.msra.mxu0 %v1690_v36  ;;  %2273 = vmatpush2.msra.mxu1 %v2012_v55  ;;  %v1742_v36 = vld [vmem:[%s8087_s4 + $0x270] sm:$0xff]  ;;  %v1735_v55 = vld [vmem:[%s8087_s4 + $0x238] sm:$0xff] }
 0x1c4   :  { %2386 = vmatprep.subr.mxu0 %v1687_v54  ;;  %2274 = vmatprep.subr.mxu1 %v2009_v58  ;;  %v1738_v54 = vld [vmem:[%s8087_s4 + $0x250] sm:$0xff]  ;;  %v1731_v58 = vld [vmem:[%s8087_s4 + $0x218] sm:$0xff] }
 0x1c5   :  { %2387 = vmatpush1.msra.mxu0 %v1686_v56  ;;  %2275 = vmatpush2.msra.mxu1 %v2008_v61  ;;  %v1734_v56 = vld [vmem:[%s8087_s4 + $0x230] sm:$0xff]  ;;  %v1983_v61 = vld [vmem:[%s8087_s4 + $0x9f8] sm:$0xff] }
 0x1c6   :  { %2388 = vmatprep.subr.mxu0 %v1683_v60  ;;  %2276 = vmatprep.subr.mxu1 %v2005_v43  ;;  %v1730_v60 = vld [vmem:[%s8087_s4 + $0x210] sm:$0xff]  ;;  %v1979_v43 = vld [vmem:[%s8087_s4 + $0x9d8] sm:$0xff] }
 0x1c7   :  { %2389 = vmatpush1.msra.mxu0 %v1682_v0  ;;  %2277 = vmatpush2.msra.mxu1 %v2004_v2  ;;  %v1982_v0 = vld [vmem:[%s8087_s4 + $0x9f0] sm:$0xff]  ;;  %v1975_v2 = vld [vmem:[%s8087_s4 + $0x9b8] sm:$0xff] }
 0x1c8   :  { %2390 = vmatprep.subr.mxu0 %v1679_v1  ;;  %2278 = vmatprep.subr.mxu1 %v2001_v6  ;;  %v1978_v1 = vld [vmem:[%s8087_s4 + $0x9d0] sm:$0xff] }
 0x1c9   :  { %2391 = vmatpush1.msra.mxu0 %v1678_v5  ;;  %2279 = vmatpush2.msra.mxu1 %v2000_v10  ;;  %v1974_v5 = vld [vmem:[%s8087_s4 + $0x9b0] sm:$0xff] }
 0x1ca   :  { %2392 = vmatprep.subr.mxu0 %v1675_v9  ;;  %2280 = vmatprep.subr.mxu1 %v1997_v12  ;;  %v1970_v6 = vld [vmem:[%s8087_s4 + $0x990] sm:$0xff]  ;;  %v1967_v9 = vld [vmem:[%s8087_s4 + $0x978] sm:$0xff] }
 0x1cb   :  { %2393 = vmatpush1.msra.mxu0 %v1674_v8  ;;  %2281 = vmatpush2.msra.mxu1 %v1996_v14  ;;  %v1966_v10 = vld [vmem:[%s8087_s4 + $0x970] sm:$0xff]  ;;  %v1963_v8 = vld [vmem:[%s8087_s4 + $0x958] sm:$0xff] }
 0x1cc   :  { %2394 = vmatprep.subr.mxu0 %v1671_v13  ;;  %2282 = vmatprep.subr.mxu1 %v1993_v18  ;;  %v1962_v12 = vld [vmem:[%s8087_s4 + $0x950] sm:$0xff]  ;;  %v1959_v13 = vld [vmem:[%s8087_s4 + $0x938] sm:$0xff] }
 0x1cd   :  { %2395 = vmatpush1.msra.mxu0 %v1670_v62  ;;  %2283 = vmatpush2.msra.mxu1 %v1992_v51  ;;  %v1958_v14 = vld [vmem:[%s8087_s4 + $0x930] sm:$0xff]  ;;  %v1955_v62 = vld [vmem:[%s8087_s4 + $0x918] sm:$0xff] }
 0x1ce   :  { %2396 = vmatprep.subr.mxu0 %v1667_v19  ;;  %2284 = vmatprep.subr.mxu1 %v1989_v22  ;;  %v1954_v18 = vld [vmem:[%s8087_s4 + $0x910] sm:$0xff]  ;;  %v1951_v19 = vld [vmem:[%s8087_s4 + $0x8f8] sm:$0xff]  ;;  %v6947_v22 = vsub.s32 4, %v4290_v41 }
 0x1cf   :  { %2397 = vmatpush1.msra.mxu0 %v1666_v21  ;;  %2285 = vmatpush2.msra.mxu1 %v1988_v11  ;;  %v1950_v51 = vld [vmem:[%s8087_s4 + $0x8f0] sm:$0xff]  ;;  %v1947_v21 = vld [vmem:[%s8087_s4 + $0x8d8] sm:$0xff] }
 0x1d0   :  { %2398 = vmatprep.subr.mxu0 %v1791_v24  ;;  %2286 = vmatprep.subr.mxu1 %v1985_v39  ;;  %v1946_v24 = vld [vmem:[%s8087_s4 + $0x8d0] sm:$0xff]  ;;  %v1943_v11 = vld [vmem:[%s8087_s4 + $0x8b8] sm:$0xff] }
 0x1d1   :  { %2399 = vmatpush2.msra.mxu0 %v1790_v27  ;;  %2287 = vmatpush2.msra.mxu1 %v1984_v3  ;;  %v6956_v27 = vsub.s32 5, %v4290_v41  ;;  %v1942_v39 = vld [vmem:[%s8087_s4 + $0x8b0] sm:$0xff]  ;;  %v1939_v3 = vld [vmem:[%s8087_s4 + $0x898] sm:$0xff] }
 0x1d2   :  { %2400 = vmatprep.subr.mxu0 %v1787_v28  ;;  %2323 = vmatprep.subr.mxu1 %v2053_v30  ;;  %v1286_v28 = vpop.f32.mrf.mxu0 }
 0x1d3   :  { %2401 = vmatpush2.msra.mxu0 %v1786_v29  ;;  %v6967_v29 = vld [vmem:[%s8086_s3] sm:$0x7f] }
 0x1d4   :  { %2402 = vmatprep.subr.mxu0 %v1783_v63  ;;  %v745_v30 = vrot.slane %v6967_v29, %v6947_v22  ;;  %v1938_v63 = vld [vmem:[%s8087_s4 + $0x890] sm:$0xff] }
 0x1d5   :  { %2403 = vmatpush2.msra.mxu0 %v1782_v31  ;;  %v1935_v31 = vld [vmem:[%s8087_s4 + $0x878] sm:$0xff] }
 0x1d6   :  { %2404 = vmatprep.subr.mxu0 %v1779_v32  ;;  %v749_v32 = vrot.slane %v6967_v29, %v6956_v27 }
 0x1d7   :  { %2405 = vmatpush2.msra.mxu0 %v1778_v33  ;;  %v1934_v33 = vld [vmem:[%s8087_s4 + $0x870] sm:$0xff] }
 0x1d8   :  { %2406 = vmatprep.subr.mxu0 %v1775_v34  ;;  %v1288_v34 = vpop.f32.mrf.mxu0 }
 0x1d9   :  { %2407 = vmatpush2.msra.mxu0 %v1774_v35  ;;  %v1357_v35 = vpop.f32.mrf.mxu1 }
 0x1da   :  { %2408 = vmatprep.subr.mxu0 %v1771_v7  ;;  %v1931_v7 = vld [vmem:[%s8087_s4 + $0x858] sm:$0xff] }
 0x1db   :  { %2409 = vmatpush2.msra.mxu0 %v1770_v50  ;;  %v1287_v50 = vadd.f32 %v1286_v28, %v745_v30  ;;  %v2010_v28 = vld [vmem:[%s8087_s4 + $0xad0] sm:$0xff] }
 0x1dc   :  { %2410 = vmatprep.subr.mxu0 %v1767_v23  ;;  %v1930_v23 = vld [vmem:[%s8087_s4 + $0x850] sm:$0xff] }
 0x1dd   :  { %2411 = vmatpush2.msra.mxu0 %v1766_v37  ;;  %v1927_v37 = vld [vmem:[%s8087_s4 + $0x838] sm:$0xff]  ;;  %v2006_v30 = vld [vmem:[%s8087_s4 + $0xab0] sm:$0xff] }
 0x1de   :  { %2412 = vmatprep.subr.mxu0 %v1763_v38  ;;  %v1289_v38 = vadd.f32 %v1288_v34, %v749_v32  ;;  %v2002_v32 = vld [vmem:[%s8087_s4 + $0xa90] sm:$0xff]  ;;  %v752_v34 = vsub.s32 6, %v4290_v41  ;;  %v1991_v41 = vld [vmem:[%s8087_s4 + $0xa38] sm:$0xff] }
 0x1df   :  { %2413 = vmatpush2.msra.mxu0 %v1762_v25  ;;  %v1926_v25 = vld [vmem:[%s8087_s4 + $0x830] sm:$0xff] }
 0x1e0   :  { %2414 = vmatprep.subr.mxu0 %v1759_v40  ;;  %v1359_v40 = vpop.f32.mrf.mxu1 }
 0x1e1   :  { %2415 = vmatpush2.msra.mxu0 %v1758_v42  ;;  %v1923_v42 = vld [vmem:[%s8087_s4 + $0x818] sm:$0xff] }
 0x1e2   :  { %2416 = vmatprep.subr.mxu0 %v1755_v44  ;;  %v1358_v44 = vadd.f32 %v1357_v35, %v1287_v50  ;;  %v1998_v35 = vld [vmem:[%s8087_s4 + $0xa70] sm:$0xff]  ;;  %v1995_v50 = vld [vmem:[%s8087_s4 + $0xa58] sm:$0xff] }
 0x1e3   :  { %2417 = vmatpush2.msra.mxu0 %v1754_v45  ;;  %v1922_v45 = vld [vmem:[%s8087_s4 + $0x810] sm:$0xff] }
 0x1e4   :  { %2418 = vmatprep.subr.mxu0 %v1751_v20 }
 0x1e5   :  { %2419 = vmatpush2.msra.mxu0 %v1750_v46  ;;  %v2047_v46 = vld [vmem:[%s8087_s4 + $0xbf8] sm:$0xff] }
 0x1e6   :  { %2420 = vmatprep.subr.mxu0 %v1747_v48  ;;  %v1360_v48 = vadd.f32 %v1359_v40, %v1289_v38 }
 0x1e7   :  { %2421 = vmatpush2.msra.mxu0 %v1746_v49 }
 0x1e8   :  { %2422 = vmatprep.subr.mxu0 %v1743_v53  ;;  %v2046_v53 = vld [vmem:[%s8087_s4 + $0xbf0] sm:$0xff] }
 0x1e9   :  { %2423 = vmatpush2.msra.mxu0 %v1742_v36 }
 0x1ea   :  { %2424 = vmatprep.subr.mxu0 %v1739_v16  ;;  %v2043_v16 = vld [vmem:[%s8087_s4 + $0xbd8] sm:$0xff] }
 0x1eb   :  { %2425 = vmatpush2.msra.mxu0 %v1738_v54 }
 0x1ec   :  { %2426 = vmatprep.subr.mxu0 %v1735_v55  ;;  %v2042_v55 = vld [vmem:[%s8087_s4 + $0xbd0] sm:$0xff] }
 0x1ed   :  { %2427 = vmatpush2.msra.mxu0 %v1734_v56  ;;  %v2039_v56 = vld [vmem:[%s8087_s4 + $0xbb8] sm:$0xff] }
 0x1ee   :  { %2428 = vmatprep.subr.mxu0 %v1731_v58 }
 0x1ef   :  { %2429 = vmatpush2.msra.mxu0 %v1730_v60 }
 0x1f0   :  { %2431 = vmatmul.mubr.f32.vlgmr.msra.gmra.mxu0 %v6393_v59  ;;  %2508 = vmatprep.subr.mxu0 %v1983_v61  ;;  %v1971_v59 = vld [vmem:[%s8087_s4 + $0x998] sm:$0xff]  ;;  %v2038_v61 = vld [vmem:[%s8087_s4 + $0xbb0] sm:$0xff] }
 0x1f1   :  { %2509 = vmatpush1.msra.mxu0 %v1982_v0  ;;  %v2035_v0 = vld [vmem:[%s8087_s4 + $0xb98] sm:$0xff] }
 0x1f2   :  { %2510 = vmatprep.subr.mxu0 %v1979_v43  ;;  %v2034_v43 = vld [vmem:[%s8087_s4 + $0xb90] sm:$0xff] }
 0x1f3   :  { %2511 = vmatpush1.msra.mxu0 %v1978_v1 }
 0x1f4   :  { %2512 = vmatprep.subr.mxu0 %v1975_v2  ;;  %v2031_v2 = vld [vmem:[%s8087_s4 + $0xb78] sm:$0xff] }
 0x1f5   :  { %2513 = vmatpush1.msra.mxu0 %v1974_v5  ;;  %v2052_v5 = vld [vmem:[%s8087_s4 + $0xc20] sm:$0xff] }
 0x1f6   :  { %2514 = vmatprep.subr.mxu0 %v1971_v59 }
 0x1f7   :  { %2515 = vmatpush1.msra.mxu0 %v1970_v6  ;;  %v2030_v6 = vld [vmem:[%s8087_s4 + $0xb70] sm:$0xff] }
 0x1f8   :  { %2516 = vmatprep.subr.mxu0 %v1967_v9  ;;  %v2049_v9 = vld [vmem:[%s8087_s4 + $0xc08] sm:$0xff] }
 0x1f9   :  { %2517 = vmatpush1.msra.mxu0 %v1966_v10  ;;  %v2027_v10 = vld [vmem:[%s8087_s4 + $0xb58] sm:$0xff] }
 0x1fa   :  { %2518 = vmatprep.subr.mxu0 %v1963_v8  ;;  %v2048_v8 = vld [vmem:[%s8087_s4 + $0xc00] sm:$0xff] }
 0x1fb   :  { %2519 = vmatpush1.msra.mxu0 %v1962_v12  ;;  %v2026_v12 = vld [vmem:[%s8087_s4 + $0xb50] sm:$0xff] }
 0x1fc   :  { %2520 = vmatprep.subr.mxu0 %v1959_v13  ;;  %v2023_v13 = vld [vmem:[%s8087_s4 + $0xb38] sm:$0xff] }
 0x1fd   :  { %2521 = vmatpush1.msra.mxu0 %v1958_v14  ;;  %v1855_v14 = vld [vmem:[%s8087_s4 + $0x5f8] sm:$0xff] }
 0x1fe   :  { %2522 = vmatprep.subr.mxu0 %v1955_v62  ;;  %v2022_v62 = vld [vmem:[%s8087_s4 + $0xb30] sm:$0xff] }
 0x1ff   :  { %2523 = vmatpush1.msra.mxu0 %v1954_v18  ;;  %v2019_v18 = vld [vmem:[%s8087_s4 + $0xb18] sm:$0xff] }
 0x200   :  { %2524 = vmatprep.subr.mxu0 %v1951_v19  ;;  %v3903_v19 = vmov 0.0  }
 0x201   :  { %2525 = vmatpush1.msra.mxu0 %v1950_v51  ;;  %v2018_v51 = vld [vmem:[%s8087_s4 + $0xb10] sm:$0xff] }
 0x202   :  { %2526 = vmatprep.subr.mxu0 %v1947_v21  ;;  %v2015_v21 = vld [vmem:[%s8087_s4 + $0xaf8] sm:$0xff] }
 0x203   :  { %2527 = vmatpush1.msra.mxu0 %v1946_v24  ;;  %v2014_v24 = vld [vmem:[%s8087_s4 + $0xaf0] sm:$0xff] }
 0x204   :  { %2528 = vmatprep.subr.mxu0 %v1943_v11  ;;  %v3810_v11 = vpop.f32.mrf.mxu1 }
 0x205   :  { %2529 = vmatpush1.msra.mxu0 %v1942_v39  ;;  %v2011_v39 = vld [vmem:[%s8087_s4 + $0xad8] sm:$0xff] }
 0x206   :  { %2530 = vmatprep.subr.mxu0 %v1939_v3  ;;  %v2007_v3 = vld [vmem:[%s8087_s4 + $0xab8] sm:$0xff] }
 0x207   :  { %2531 = vmatpush1.msra.mxu0 %v1938_v63  ;;  %v3811_v63 = vpop.f32.mrf.mxu1 }
 0x208   :  { %2532 = vmatprep.subr.mxu0 %v1935_v31  ;;  %v2003_v31 = vld [vmem:[%s8087_s4 + $0xa98] sm:$0xff]  ;;  %v3812_v38 = vadd.f32 %v3811_v63, %v3810_v11  ;;  %v1794_v63 = vld [vmem:[%s8087_s4 + $0x410] sm:$0xff] }
 0x209   :  { %2533 = vmatpush1.msra.mxu0 %v1934_v33  ;;  %v1999_v33 = vld [vmem:[%s8087_s4 + $0xa78] sm:$0xff] }
 0x20a   :  { %2534 = vmatprep.subr.mxu0 %v1931_v7  ;;  %v1803_v11 = vld [vmem:[%s8087_s4 + $0x458] sm:$0xff] }
 0x20b   :  { %2535 = vmatpush1.msra.mxu0 %v1930_v23  ;;  %v1994_v23 = vld [vmem:[%s8087_s4 + $0xa50] sm:$0xff] }
 0x20c   :  { %2536 = vmatprep.subr.mxu0 %v1927_v37  ;;  %v1428_v20 = vpop.f32.mrf.mxu0  ;;  %v753_v37 = vrot.slane %v6967_v29, %v752_v34  ;;  %v1914_v34 = vld [vmem:[%s8087_s4 + $0x7d0] sm:$0xff] }
 0x20d   :  { %2537 = vmatpush1.msra.mxu0 %v1926_v25  ;;  %v1429_v49 = vadd.f32 %v1428_v20, %v1358_v44  ;;  %v3845_v7 = vpop.f32.mrf.mxu1  ;;  %v1990_v25 = vld [vmem:[%s8087_s4 + $0xa30] sm:$0xff] }
 0x20e   :  { %2538 = vmatprep.subr.mxu0 %v1923_v42  ;;  %v1430_v36 = vpop.f32.mrf.mxu0  ;;  %v1987_v42 = vld [vmem:[%s8087_s4 + $0xa18] sm:$0xff]  ;;  %v1986_v44 = vld [vmem:[%s8087_s4 + $0xa10] sm:$0xff] }
 0x20f   :  { %2539 = vmatpush1.msra.mxu0 %v1922_v45  ;;  %v1431_v54 = vadd.f32 %v1430_v36, %v1360_v48  ;;  %v1654_v58 = vmul.f32 0.01, %v1429_v49  ;;  %vm1647_vm5 = vcmp.ge.f32.partialorder %v1429_v49, 0.0  ;;  %v3846_v40 = vpop.f32.mrf.mxu1  ;;  %v1500_v45 = vadd.f32 %v3812_v38, %v753_v37  ;;  %v1902_v37 = vld [vmem:[%s8087_s4 + $0x770] sm:$0xff]  ;;  %v1899_v38 = vld [vmem:[%s8087_s4 + $0x758] sm:$0xff] }
 0x210   :  { %2540 = vmatprep.subr.mxu0 %v2047_v46  ;;  %v3847_v29 = vadd.f32 %v3846_v40, %v3845_v7  ;;  %v1910_v7 = vld [vmem:[%s8087_s4 + $0x7b0] sm:$0xff]  ;;  %v1895_v40 = vld [vmem:[%s8087_s4 + $0x738] sm:$0xff] }
 0x211   :  { %2541 = vmatpush2.msra.mxu0 %v2046_v53  ;;  %v1655_v60 = vmul.f32 0.01, %v1431_v54  ;;  %vm1648_vm4 = vcmp.ge.f32.partialorder %v1431_v54, 0.0  ;;  %v7030_v59 = vsel %vm1647_vm5, %v1429_v49, %v1654_v58  ;;  %v1847_v58 = vld [vmem:[%s8087_s4 + $0x5b8] sm:$0xff] }
 0x212   :  { %2542 = vmatprep.subr.mxu0 %v2043_v16  ;;  %v1570_v48 = vadd.f32 %v3847_v29, %v1500_v45  ;;  %v1854_v16 = vld [vmem:[%s8087_s4 + $0x5f0] sm:$0xff]  ;;  %v1887_v29 = vld [vmem:[%s8087_s4 + $0x6f8] sm:$0xff] }
 0x213   :  { %2543 = vmatpush2.msra.mxu0 %v2042_v55  ;;  %v1662_v1 = vsel %vm1648_vm4, %v1431_v54, %v1655_v60  ;;  %v1851_v55 = vld [vmem:[%s8087_s4 + $0x5d8] sm:$0xff]  ;;  %v1846_v60 = vld [vmem:[%s8087_s4 + $0x5b0] sm:$0xff] }
 0x214   :  { %2544 = vmatprep.subr.mxu0 %v2039_v56  ;;  %2288 = vmatprep.mubr.f32.mxu1 %v1662_v1  ;;  %v1850_v56 = vld [vmem:[%s8087_s4 + $0x5d0] sm:$0xff] }
 0x215   :  { %2545 = vmatpush2.msra.mxu0 %v2038_v61  ;;  %2572 = vmatprep.mubr.f32.mxu0 %v1662_v1  ;;  %v1843_v61 = vld [vmem:[%s8087_s4 + $0x598] sm:$0xff]  ;;  %v1890_v45 = vld [vmem:[%s8087_s4 + $0x710] sm:$0xff] }
 0x216   :  { %2546 = vmatprep.subr.mxu0 %v2035_v0  ;;  %2289 = vmatmul.mubr.f32.vlgmr.msra.gmra.mxu1 %v7030_v59  ;;  %v1842_v0 = vld [vmem:[%s8087_s4 + $0x590] sm:$0xff]  ;;  %v1835_v1 = vld [vmem:[%s8087_s4 + $0x558] sm:$0xff] }
 0x217   :  { %2547 = vmatpush2.msra.mxu0 %v2034_v43  ;;  %2324 = vmatpush1.msra.mxu1 %v2052_v5  ;;  %v1838_v43 = vld [vmem:[%s8087_s4 + $0x570] sm:$0xff]  ;;  %v1831_v5 = vld [vmem:[%s8087_s4 + $0x538] sm:$0xff] }
 0x218   :  { %2548 = vmatprep.subr.mxu0 %v2031_v2  ;;  %2325 = vmatprep.subr.mxu1 %v2049_v9  ;;  %v1834_v2 = vld [vmem:[%s8087_s4 + $0x550] sm:$0xff] }
 0x219   :  { %2549 = vmatpush2.msra.mxu0 %v2030_v6  ;;  %2326 = vmatpush1.msra.mxu1 %v2048_v8  ;;  %v1827_v6 = vld [vmem:[%s8087_s4 + $0x518] sm:$0xff]  ;;  %v1826_v9 = vld [vmem:[%s8087_s4 + $0x510] sm:$0xff] }
 0x21a   :  { %2550 = vmatprep.subr.mxu0 %v2027_v10  ;;  %2359 = vmatprep.mubr.f32.mxu1 %v3903_v19  ;;  %v1823_v10 = vld [vmem:[%s8087_s4 + $0x4f8] sm:$0xff]  ;;  %v1822_v8 = vld [vmem:[%s8087_s4 + $0x4f0] sm:$0xff] }
 0x21b   :  { %2551 = vmatpush2.msra.mxu0 %v2026_v12  ;;  %2437 = vmatprep.subr.mxu1 %v1855_v14  ;;  %v1819_v12 = vld [vmem:[%s8087_s4 + $0x4d8] sm:$0xff] }
 0x21c   :  { %2552 = vmatprep.subr.mxu0 %v2023_v13  ;;  %v1818_v13 = vld [vmem:[%s8087_s4 + $0x4d0] sm:$0xff]  ;;  %v1815_v14 = vld [vmem:[%s8087_s4 + $0x4b8] sm:$0xff] }
 0x21d   :  { %2553 = vmatpush2.msra.mxu0 %v2022_v62  ;;  %v1814_v62 = vld [vmem:[%s8087_s4 + $0x4b0] sm:$0xff] }
 0x21e   :  { %2554 = vmatprep.subr.mxu0 %v2019_v18  ;;  %v1811_v18 = vld [vmem:[%s8087_s4 + $0x498] sm:$0xff] }
 0x21f   :  { %2555 = vmatpush2.msra.mxu0 %v2018_v51  ;;  %v1810_v51 = vld [vmem:[%s8087_s4 + $0x490] sm:$0xff] }
 0x220   :  { %2556 = vmatprep.subr.mxu0 %v2015_v21  ;;  %v1807_v21 = vld [vmem:[%s8087_s4 + $0x478] sm:$0xff] }
 0x221   :  { %2557 = vmatpush2.msra.mxu0 %v2014_v24  ;;  %v1806_v24 = vld [vmem:[%s8087_s4 + $0x470] sm:$0xff] }
 0x222   :  { %2558 = vmatprep.subr.mxu0 %v2011_v39  ;;  %v1802_v39 = vld [vmem:[%s8087_s4 + $0x450] sm:$0xff] }
 0x223   :  { %2559 = vmatpush2.msra.mxu0 %v2010_v28  ;;  %v1799_v28 = vld [vmem:[%s8087_s4 + $0x438] sm:$0xff] }
 0x224   :  { %2560 = vmatprep.subr.mxu0 %v2007_v3  ;;  %v1798_v3 = vld [vmem:[%s8087_s4 + $0x430] sm:$0xff] }
 0x225   :  { %2561 = vmatpush2.msra.mxu0 %v2006_v30  ;;  %v1795_v30 = vld [vmem:[%s8087_s4 + $0x418] sm:$0xff] }
 0x226   :  { %2562 = vmatprep.subr.mxu0 %v2003_v31  ;;  %v1919_v31 = vld [vmem:[%s8087_s4 + $0x7f8] sm:$0xff] }
 0x227   :  { %2563 = vmatpush2.msra.mxu0 %v2002_v32  ;;  %v1918_v32 = vld [vmem:[%s8087_s4 + $0x7f0] sm:$0xff] }
 0x228   :  { %2564 = vmatprep.subr.mxu0 %v1999_v33  ;;  %v1915_v33 = vld [vmem:[%s8087_s4 + $0x7d8] sm:$0xff] }
 0x229   :  { %2565 = vmatpush2.msra.mxu0 %v1998_v35  ;;  %v1911_v35 = vld [vmem:[%s8087_s4 + $0x7b8] sm:$0xff] }
 0x22a   :  { %2566 = vmatprep.subr.mxu0 %v1995_v50  ;;  %v1907_v50 = vld [vmem:[%s8087_s4 + $0x798] sm:$0xff] }
 0x22b   :  { %2567 = vmatpush2.msra.mxu0 %v1994_v23  ;;  %v1906_v23 = vld [vmem:[%s8087_s4 + $0x790] sm:$0xff] }
 0x22c   :  { %2568 = vmatprep.subr.mxu0 %v1991_v41  ;;  %v1903_v41 = vld [vmem:[%s8087_s4 + $0x778] sm:$0xff] }
 0x22d   :  { %2569 = vmatpush2.msra.mxu0 %v1990_v25  ;;  %v1898_v25 = vld [vmem:[%s8087_s4 + $0x750] sm:$0xff] }
 0x22e   :  { %2570 = vmatprep.subr.mxu0 %v1987_v42  ;;  %v3880_v20 = vpop.f32.mrf.mxu0  ;;  %v1894_v42 = vld [vmem:[%s8087_s4 + $0x730] sm:$0xff] }
 0x22f   :  { %2571 = vmatpush2.msra.mxu0 %v1986_v44  ;;  %v1891_v44 = vld [vmem:[%s8087_s4 + $0x718] sm:$0xff] }
 0x230   :  { %2573 = vmatmul.mubr.f32.vlgmr.msra.gmra.mxu0 %v7030_v59  ;;  %v3881_v46 = vpop.f32.mrf.mxu0  ;;  %v1830_v59 = vld [vmem:[%s8087_s4 + $0x530] sm:$0xff] }
 0x231   :  { %v3882_v49 = vadd.f32 %v3881_v46, %v3880_v20  ;;  %v1886_v20 = vld [vmem:[%s8087_s4 + $0x6f0] sm:$0xff]  ;;  %v1883_v46 = vld [vmem:[%s8087_s4 + $0x6d8] sm:$0xff] }
 0x233   :  { %v1640_v53 = vadd.f32 %v3882_v49, %v1570_v48  ;;  %v1882_v48 = vld [vmem:[%s8087_s4 + $0x6d0] sm:$0xff]  ;;  %v1879_v49 = vld [vmem:[%s8087_s4 + $0x6b8] sm:$0xff] }
 0x235   :  { %vm1649_vm6 = vcmp.ge.f32.partialorder %v1640_v53, 0.0  ;;  %v1656_v36 = vmul.f32 0.01, %v1640_v53 }
 0x237   :  { %v7118_v54 = vsel %vm1649_vm6, %v1640_v53, %v1656_v36  ;;  %v1878_v53 = vld [vmem:[%s8087_s4 + $0x6b0] sm:$0xff]  ;;  %v1875_v36 = vld [vmem:[%s8087_s4 + $0x698] sm:$0xff] }
 0x238   :  { %3769 = vmatmul.mubr.msk.f32.vlgmr.msra.gmra.mxu1 %vm2078_vm7, %v7118_v54 }
 0x239   :  { %2438 = vmatpush1.msra.mxu1 %v1854_v16  ;;  %2501 = vmatprep.mubr.f32.mxu1 %v6408_v4  ;;  %v1839_v4 = vld [vmem:[%s8087_s4 + $0x578] sm:$0xff]  ;;  %v1874_v16 = vld [vmem:[%s8087_s4 + $0x690] sm:$0xff] }
 0x23a   :  { %2439 = vmatprep.subr.mxu1 %v1851_v55  ;;  %v1871_v55 = vld [vmem:[%s8087_s4 + $0x678] sm:$0xff] }
 0x23b   :  { %2440 = vmatpush1.msra.mxu1 %v1850_v56  ;;  %v1870_v56 = vld [vmem:[%s8087_s4 + $0x670] sm:$0xff] }
 0x23c   :  { %2441 = vmatprep.subr.mxu1 %v1847_v58  ;;  %v1867_v58 = vld [vmem:[%s8087_s4 + $0x658] sm:$0xff] }
 0x23d   :  { %2442 = vmatpush1.msra.mxu1 %v1846_v60  ;;  %v1866_v60 = vld [vmem:[%s8087_s4 + $0x650] sm:$0xff] }
 0x23e   :  { %2443 = vmatprep.subr.mxu1 %v1843_v61  ;;  %v1863_v61 = vld [vmem:[%s8087_s4 + $0x638] sm:$0xff] }
 0x23f   :  { %2444 = vmatpush1.msra.mxu1 %v1842_v0  ;;  %v1862_v0 = vld [vmem:[%s8087_s4 + $0x630] sm:$0xff] }
 0x240   :  { %2445 = vmatprep.subr.mxu1 %v1839_v4  ;;  %v1859_v4 = vld [vmem:[%s8087_s4 + $0x618] sm:$0xff] }
 0x241   :  { %2446 = vmatpush1.msra.mxu1 %v1838_v43  ;;  %v1858_v43 = vld [vmem:[%s8087_s4 + $0x610] sm:$0xff] }
 0x242   :  { %2447 = vmatprep.subr.mxu1 %v1835_v1  ;;  %v2055_v1 = vld [vmem:[%s8087_s4 + $0xc38] sm:$0xff] }
 0x243   :  { %2448 = vmatpush1.msra.mxu1 %v1834_v2  ;;  %v2054_v2 = vld [vmem:[%s8087_s4 + $0xc30] sm:$0xff] }
 0x244   :  { %2449 = vmatprep.subr.mxu1 %v1831_v5  ;;  %v2051_v5 = vld [vmem:[%s8087_s4 + $0xc18] sm:$0xff] }
 0x245   :  { %2450 = vmatpush1.msra.mxu1 %v1830_v59  ;;  %v2050_v59 = vld [vmem:[%s8087_s4 + $0xc10] sm:$0xff] }
 0x246   :  { %2451 = vmatprep.subr.mxu1 %v1827_v6  ;;  %v2693_v6 = vld [vmem:[%s8088_s6 + $0xf8] sm:$0xff] }
 0x247   :  { %2452 = vmatpush1.msra.mxu1 %v1826_v9  ;;  %v2692_v9 = vld [vmem:[%s8088_s6 + $0xf0] sm:$0xff] }
 0x248   :  { %2453 = vmatprep.subr.mxu1 %v1823_v10  ;;  %v2690_v10 = vld [vmem:[%s8088_s6 + $0xe0] sm:$0xff] }
 0x249   :  { %2454 = vmatpush1.msra.mxu1 %v1822_v8  ;;  %v2689_v8 = vld [vmem:[%s8088_s6 + $0xd8] sm:$0xff] }
 0x24a   :  { %2455 = vmatprep.subr.mxu1 %v1819_v12  ;;  %v2688_v12 = vld [vmem:[%s8088_s6 + $0xd0] sm:$0xff] }
 0x24b   :  { %2456 = vmatpush1.msra.mxu1 %v1818_v13  ;;  %v2686_v13 = vld [vmem:[%s8088_s6 + $0xc0] sm:$0xff] }
 0x24c   :  { %2457 = vmatprep.subr.mxu1 %v1815_v14  ;;  %v2685_v14 = vld [vmem:[%s8088_s6 + $0xb8] sm:$0xff] }
 0x24d   :  { %2458 = vmatpush1.msra.mxu1 %v1814_v62  ;;  %v2757_v62 = vld [vmem:[%s8088_s6 + $0x2f8] sm:$0xff] }
 0x24e   :  { %2459 = vmatprep.subr.mxu1 %v1811_v18  ;;  %v2756_v18 = vld [vmem:[%s8088_s6 + $0x2f0] sm:$0xff]  ;;  %2848 = vmatprep.subr.mxu0 %v2757_v62  ;;  %v2715_v62 = vld [vmem:[%s8088_s6 + $0x1a8] sm:$0xff] }
 0x24f   :  { %2460 = vmatpush1.msra.mxu1 %v1810_v51  ;;  %v2755_v51 = vld [vmem:[%s8088_s6 + $0x2e8] sm:$0xff]  ;;  %2849 = vmatpush1.msra.mxu0 %v2756_v18  ;;  %v2714_v18 = vld [vmem:[%s8088_s6 + $0x1a0] sm:$0xff] }
 0x250   :  { %2461 = vmatprep.subr.mxu1 %v1807_v21  ;;  %v2684_v21 = vld [vmem:[%s8088_s6 + $0xb0] sm:$0xff]  ;;  %2850 = vmatprep.subr.mxu0 %v2755_v51  ;;  %v2713_v51 = vld [vmem:[%s8088_s6 + $0x198] sm:$0xff] }
 0x251   :  { %2462 = vmatpush1.msra.mxu1 %v1806_v24  ;;  %v2754_v24 = vld [vmem:[%s8088_s6 + $0x2e0] sm:$0xff] }
 0x252   :  { %2463 = vmatprep.subr.mxu1 %v1803_v11  ;;  %v2683_v11 = vld [vmem:[%s8088_s6 + $0xa8] sm:$0xff]  ;;  %2851 = vmatpush1.msra.mxu0 %v2754_v24 }
 0x253   :  { %2464 = vmatpush1.msra.mxu1 %v1802_v39  ;;  %v2753_v39 = vld [vmem:[%s8088_s6 + $0x2d8] sm:$0xff]  ;;  %v2711_v24 = vld [vmem:[%s8088_s6 + $0x188] sm:$0xff] }
 0x254   :  { %2465 = vmatprep.subr.mxu1 %v1799_v28  ;;  %v2682_v28 = vld [vmem:[%s8088_s6 + $0xa0] sm:$0xff]  ;;  %2852 = vmatprep.subr.mxu0 %v2753_v39  ;;  %v2709_v39 = vld [vmem:[%s8088_s6 + $0x178] sm:$0xff] }
 0x255   :  { %2466 = vmatpush1.msra.mxu1 %v1798_v3  ;;  %v2752_v3 = vld [vmem:[%s8088_s6 + $0x2d0] sm:$0xff] }
 0x256   :  { %2467 = vmatprep.subr.mxu1 %v1795_v30  ;;  %v2681_v30 = vld [vmem:[%s8088_s6 + $0x98] sm:$0xff]  ;;  %2853 = vmatpush1.msra.mxu0 %v2752_v3  ;;  %v2707_v3 = vld [vmem:[%s8088_s6 + $0x168] sm:$0xff] }
 0x257   :  { %2468 = vmatpush1.msra.mxu1 %v1794_v63  ;;  %v2751_v63 = vld [vmem:[%s8088_s6 + $0x2c8] sm:$0xff] }
 0x258   :  { %2469 = vmatprep.subr.mxu1 %v1919_v31  ;;  %v2680_v31 = vld [vmem:[%s8088_s6 + $0x90] sm:$0xff]  ;;  %2854 = vmatprep.subr.mxu0 %v2751_v63  ;;  %v2705_v63 = vld [vmem:[%s8088_s6 + $0x158] sm:$0xff] }
 0x259   :  { %2470 = vmatpush2.msra.mxu1 %v1918_v32  ;;  %v2750_v32 = vld [vmem:[%s8088_s6 + $0x2c0] sm:$0xff] }
 0x25a   :  { %2471 = vmatprep.subr.mxu1 %v1915_v33  ;;  %v2679_v33 = vld [vmem:[%s8088_s6 + $0x88] sm:$0xff]  ;;  %2855 = vmatpush1.msra.mxu0 %v2750_v32 }
 0x25b   :  { %2472 = vmatpush2.msra.mxu1 %v1914_v34  ;;  %v2749_v34 = vld [vmem:[%s8088_s6 + $0x2b8] sm:$0xff]  ;;  %v2703_v32 = vld [vmem:[%s8088_s6 + $0x148] sm:$0xff] }
 0x25c   :  { %2473 = vmatprep.subr.mxu1 %v1911_v35  ;;  %v2678_v35 = vld [vmem:[%s8088_s6 + $0x80] sm:$0xff]  ;;  %2856 = vmatprep.subr.mxu0 %v2749_v34  ;;  %v2701_v34 = vld [vmem:[%s8088_s6 + $0x138] sm:$0xff] }
 0x25d   :  { %2474 = vmatpush2.msra.mxu1 %v1910_v7  ;;  %v2748_v7 = vld [vmem:[%s8088_s6 + $0x2b0] sm:$0xff] }
 0x25e   :  { %2475 = vmatprep.subr.mxu1 %v1907_v50  ;;  %v2677_v50 = vld [vmem:[%s8088_s6 + $0x78] sm:$0xff]  ;;  %2857 = vmatpush1.msra.mxu0 %v2748_v7  ;;  %v2699_v7 = vld [vmem:[%s8088_s6 + $0x128] sm:$0xff] }
 0x25f   :  { %2476 = vmatpush2.msra.mxu1 %v1906_v23  ;;  %v2747_v23 = vld [vmem:[%s8088_s6 + $0x2a8] sm:$0xff] }
 0x260   :  { %2477 = vmatprep.subr.mxu1 %v1903_v41  ;;  %v2676_v41 = vld [vmem:[%s8088_s6 + $0x70] sm:$0xff]  ;;  %2858 = vmatprep.subr.mxu0 %v2747_v23  ;;  %v2697_v23 = vld [vmem:[%s8088_s6 + $0x118] sm:$0xff] }
 0x261   :  { %2478 = vmatpush2.msra.mxu1 %v1902_v37  ;;  %v2746_v37 = vld [vmem:[%s8088_s6 + $0x2a0] sm:$0xff] }
 0x262   :  { %2479 = vmatprep.subr.mxu1 %v1899_v38  ;;  %v2675_v38 = vld [vmem:[%s8088_s6 + $0x68] sm:$0xff]  ;;  %2859 = vmatpush1.msra.mxu0 %v2746_v37 }
 0x263   :  { %2480 = vmatpush2.msra.mxu1 %v1898_v25  ;;  %v2745_v25 = vld [vmem:[%s8088_s6 + $0x298] sm:$0xff]  ;;  %v2695_v37 = vld [vmem:[%s8088_s6 + $0x108] sm:$0xff] }
 0x264   :  { %2481 = vmatprep.subr.mxu1 %v1895_v40  ;;  %v2674_v40 = vld [vmem:[%s8088_s6 + $0x60] sm:$0xff]  ;;  %2860 = vmatprep.subr.mxu0 %v2745_v25 }
 0x265   :  { %2482 = vmatpush2.msra.mxu1 %v1894_v42  ;;  %v2744_v42 = vld [vmem:[%s8088_s6 + $0x290] sm:$0xff]  ;;  %v2694_v25 = vld [vmem:[%s8088_s6 + $0x100] sm:$0xff] }
 0x266   :  { %2483 = vmatprep.subr.mxu1 %v1891_v44  ;;  %v2673_v44 = vld [vmem:[%s8088_s6 + $0x58] sm:$0xff]  ;;  %2861 = vmatpush1.msra.mxu0 %v2744_v42  ;;  %v2732_v42 = vld [vmem:[%s8088_s6 + $0x230] sm:$0xff] }
 0x267   :  { %2484 = vmatpush2.msra.mxu1 %v1890_v45  ;;  %v2743_v45 = vld [vmem:[%s8088_s6 + $0x288] sm:$0xff] }
 0x268   :  { %2485 = vmatprep.subr.mxu1 %v1887_v29  ;;  %v2672_v29 = vld [vmem:[%s8088_s6 + $0x50] sm:$0xff]  ;;  %2862 = vmatprep.subr.mxu0 %v2743_v45  ;;  %v2730_v45 = vld [vmem:[%s8088_s6 + $0x220] sm:$0xff] }
 0x269   :  { %2486 = vmatpush2.msra.mxu1 %v1886_v20  ;;  %v2742_v20 = vld [vmem:[%s8088_s6 + $0x280] sm:$0xff] }
 0x26a   :  { %2487 = vmatprep.subr.mxu1 %v1883_v46  ;;  %v2671_v46 = vld [vmem:[%s8088_s6 + $0x48] sm:$0xff]  ;;  %2863 = vmatpush1.msra.mxu0 %v2742_v20  ;;  %v2728_v20 = vld [vmem:[%s8088_s6 + $0x210] sm:$0xff] }
 0x26b   :  { %2488 = vmatpush2.msra.mxu1 %v1882_v48  ;;  %v2741_v48 = vld [vmem:[%s8088_s6 + $0x278] sm:$0xff] }
 0x26c   :  { %2489 = vmatprep.subr.mxu1 %v1879_v49  ;;  %v2670_v49 = vld [vmem:[%s8088_s6 + $0x40] sm:$0xff]  ;;  %2864 = vmatprep.subr.mxu0 %v2741_v48 }
 0x26d   :  { %2490 = vmatpush2.msra.mxu1 %v1878_v53  ;;  %v2740_v53 = vld [vmem:[%s8088_s6 + $0x270] sm:$0xff]  ;;  %v2726_v48 = vld [vmem:[%s8088_s6 + $0x200] sm:$0xff] }
 0x26e   :  { %2491 = vmatprep.subr.mxu1 %v1875_v36  ;;  %v2669_v36 = vld [vmem:[%s8088_s6 + $0x38] sm:$0xff]  ;;  %2865 = vmatpush1.msra.mxu0 %v2740_v53  ;;  %v2760_v53 = vld [vmem:[%s8088_s6 + $0x310] sm:$0xff] }
 0x26f   :  { %2492 = vmatpush2.msra.mxu1 %v1874_v16  ;;  %v2739_v16 = vld [vmem:[%s8088_s6 + $0x268] sm:$0xff] }
 0x270   :  { %2493 = vmatprep.subr.mxu1 %v1871_v55  ;;  %v2668_v55 = vld [vmem:[%s8088_s6 + $0x30] sm:$0xff]  ;;  %2866 = vmatprep.subr.mxu0 %v2739_v16  ;;  %v2758_v16 = vld [vmem:[%s8088_s6 + $0x300] sm:$0xff] }
 0x271   :  { %2494 = vmatpush2.msra.mxu1 %v1870_v56  ;;  %v2738_v56 = vld [vmem:[%s8088_s6 + $0x260] sm:$0xff] }
 0x272   :  { %2495 = vmatprep.subr.mxu1 %v1867_v58  ;;  %v2667_v58 = vld [vmem:[%s8088_s6 + $0x28] sm:$0xff]  ;;  %2867 = vmatpush1.msra.mxu0 %v2738_v56  ;;  %v2148_v56 = vpop.f32.mrf.mxu1 }
 0x273   :  { %2496 = vmatpush2.msra.mxu1 %v1866_v60  ;;  %v2737_v60 = vld [vmem:[%s8088_s6 + $0x258] sm:$0xff] }
 0x274   :  { %2497 = vmatprep.subr.mxu1 %v1863_v61  ;;  %v2666_v61 = vld [vmem:[%s8088_s6 + $0x20] sm:$0xff]  ;;  %2868 = vmatprep.subr.mxu0 %v2737_v60  ;;  %v2150_v60 = vpop.f32.mrf.mxu1 }
 0x275   :  { %2498 = vmatpush2.msra.mxu1 %v1862_v0  ;;  %v2736_v0 = vld [vmem:[%s8088_s6 + $0x250] sm:$0xff] }
 0x276   :  { %2499 = vmatprep.subr.mxu1 %v1859_v4  ;;  %v2665_v4 = vld [vmem:[%s8088_s6 + $0x18] sm:$0xff]  ;;  %2869 = vmatpush1.msra.mxu0 %v2736_v0 }
 0x277   :  { %2500 = vmatpush2.msra.mxu1 %v1858_v43  ;;  %v2735_v43 = vld [vmem:[%s8088_s6 + $0x248] sm:$0xff] }
 0x278   :  { %2502 = vmatmul.mubr.f32.vlgmr.msra.gmra.mxu1 %v6596_v15  ;;  %2607 = vmatprep.subr.mxu1 %v2055_v1  ;;  %v2691_v15 = vld [vmem:[%s8088_s6 + $0xe8] sm:$0xff]  ;;  %v2664_v1 = vld [vmem:[%s8088_s6 + $0x10] sm:$0xff] }
 0x279   :  { %2608 = vmatpush1.msra.mxu1 %v2054_v2  ;;  %2643 = vmatprep.mubr.f32.mxu1 %v3903_v19  ;;  %v2663_v2 = vld [vmem:[%s8088_s6 + $0x8] sm:$0xff] }
 0x27a   :  { %2609 = vmatprep.subr.mxu1 %v2051_v5  ;;  %v2662_v5 = vld [vmem:[%s8088_s6] sm:$0xff]  ;;  %2870 = vmatprep.subr.mxu0 %v2735_v43 }
 0x27b   :  { %2610 = vmatpush1.msra.mxu1 %v2050_v59  ;;  %v2725_v59 = vld [vmem:[%s8088_s6 + $0x1f8] sm:$0xff] }
 0x27c   :  { %3770 = vmatmul.mubr.msk.f32.vlgmr.msra.gmra.mxu1 %vm2078_vm7, %v7118_v54  ;;  %2777 = vmatprep.subr.mxu1 %v2693_v6  ;;  %v2687_v54 = vld [vmem:[%s8088_s6 + $0xc8] sm:$0xff]  ;;  %v2724_v6 = vld [vmem:[%s8088_s6 + $0x1f0] sm:$0xff] }
 0x27d   :  { %2778 = vmatpush1.msra.mxu1 %v2692_v9  ;;  %v2723_v9 = vld [vmem:[%s8088_s6 + $0x1e8] sm:$0xff] }
 0x27e   :  { %2779 = vmatprep.subr.mxu1 %v2691_v15  ;;  %v2722_v15 = vld [vmem:[%s8088_s6 + $0x1e0] sm:$0xff] }
 0x27f   :  { %2780 = vmatpush1.msra.mxu1 %v2690_v10  ;;  %v2721_v10 = vld [vmem:[%s8088_s6 + $0x1d8] sm:$0xff] }
 0x280   :  { %2781 = vmatprep.subr.mxu1 %v2689_v8  ;;  %v2720_v8 = vld [vmem:[%s8088_s6 + $0x1d0] sm:$0xff] }
 0x281   :  { %2782 = vmatpush1.msra.mxu1 %v2688_v12  ;;  %v2719_v12 = vld [vmem:[%s8088_s6 + $0x1c8] sm:$0xff] }
 0x282   :  { %2783 = vmatprep.subr.mxu1 %v2687_v54  ;;  %v2718_v54 = vld [vmem:[%s8088_s6 + $0x1c0] sm:$0xff] }
 0x283   :  { %2784 = vmatpush1.msra.mxu1 %v2686_v13  ;;  %v2717_v13 = vld [vmem:[%s8088_s6 + $0x1b8] sm:$0xff] }
 0x284   :  { %2785 = vmatprep.subr.mxu1 %v2685_v14  ;;  %v2716_v14 = vld [vmem:[%s8088_s6 + $0x1b0] sm:$0xff] }
 0x285   :  { %2786 = vmatpush1.msra.mxu1 %v2684_v21  ;;  %v2712_v21 = vld [vmem:[%s8088_s6 + $0x190] sm:$0xff] }
 0x286   :  { %2787 = vmatprep.subr.mxu1 %v2683_v11  ;;  %v2710_v11 = vld [vmem:[%s8088_s6 + $0x180] sm:$0xff] }
 0x287   :  { %2788 = vmatpush1.msra.mxu1 %v2682_v28  ;;  %v2708_v28 = vld [vmem:[%s8088_s6 + $0x170] sm:$0xff] }
 0x288   :  { %2789 = vmatprep.subr.mxu1 %v2681_v30  ;;  %v2706_v30 = vld [vmem:[%s8088_s6 + $0x160] sm:$0xff] }
 0x289   :  { %2790 = vmatpush1.msra.mxu1 %v2680_v31  ;;  %v2704_v31 = vld [vmem:[%s8088_s6 + $0x150] sm:$0xff] }
 0x28a   :  { %2791 = vmatprep.subr.mxu1 %v2679_v33  ;;  %v2702_v33 = vld [vmem:[%s8088_s6 + $0x140] sm:$0xff] }
 0x28b   :  { %2792 = vmatpush1.msra.mxu1 %v2678_v35  ;;  %v2700_v35 = vld [vmem:[%s8088_s6 + $0x130] sm:$0xff] }
 0x28c   :  { %2793 = vmatprep.subr.mxu1 %v2677_v50  ;;  %v2698_v50 = vld [vmem:[%s8088_s6 + $0x120] sm:$0xff] }
 0x28d   :  { %2794 = vmatpush1.msra.mxu1 %v2676_v41  ;;  %v2696_v41 = vld [vmem:[%s8088_s6 + $0x110] sm:$0xff] }
 0x28e   :  { %2795 = vmatprep.subr.mxu1 %v2675_v38  ;;  %v2734_v38 = vld [vmem:[%s8088_s6 + $0x240] sm:$0xff] }
 0x28f   :  { %2796 = vmatpush1.msra.mxu1 %v2674_v40  ;;  %2871 = vmatpush1.msra.mxu0 %v2734_v38  ;;  %v2733_v40 = vld [vmem:[%s8088_s6 + $0x238] sm:$0xff] }
 0x290   :  { %2797 = vmatprep.subr.mxu1 %v2673_v44  ;;  %2872 = vmatprep.subr.mxu0 %v2733_v40  ;;  %v2731_v44 = vld [vmem:[%s8088_s6 + $0x228] sm:$0xff] }
 0x291   :  { %2798 = vmatpush1.msra.mxu1 %v2672_v29  ;;  %2873 = vmatpush1.msra.mxu0 %v2732_v42  ;;  %v2729_v29 = vld [vmem:[%s8088_s6 + $0x218] sm:$0xff] }
 0x292   :  { %2799 = vmatprep.subr.mxu1 %v2671_v46  ;;  %2874 = vmatprep.subr.mxu0 %v2731_v44  ;;  %v2727_v46 = vld [vmem:[%s8088_s6 + $0x208] sm:$0xff]  ;;  %v2940_v42 = vld [vmem:[%s8090_s8 + $0x78] sm:$0xff]  ;;  %v2939_v44 = vld [vmem:[%s8090_s8 + $0x70] sm:$0xff] }
 0x293   :  { %2800 = vmatpush1.msra.mxu1 %v2670_v49  ;;  %2875 = vmatpush1.msra.mxu0 %v2730_v45  ;;  %v2761_v49 = vld [vmem:[%s8088_s6 + $0x318] sm:$0xff]  ;;  %v2938_v45 = vld [vmem:[%s8090_s8 + $0x68] sm:$0xff] }
 0x294   :  { %2801 = vmatprep.subr.mxu1 %v2669_v36  ;;  %2876 = vmatprep.subr.mxu0 %v2729_v29  ;;  %v2759_v36 = vld [vmem:[%s8088_s6 + $0x308] sm:$0xff]  ;;  %v2937_v29 = vld [vmem:[%s8090_s8 + $0x60] sm:$0xff] }
 0x295   :  { %2802 = vmatpush1.msra.mxu1 %v2668_v55  ;;  %2877 = vmatpush1.msra.mxu0 %v2728_v20  ;;  %v2056_v55 = vld [vmem:[%s8089_s5] sm:$0xf]  ;;  %v2936_v20 = vld [vmem:[%s8090_s8 + $0x58] sm:$0xff] }
 0x296   :  { %2803 = vmatprep.subr.mxu1 %v2667_v58  ;;  %2878 = vmatprep.subr.mxu0 %v2727_v46  ;;  %v2061_v58 = vrot.slane %v2056_v55, %v6245_v57  ;;  %v2065_v0 = vrot.slane %v2056_v55, %v5888_v47  ;;  %v2935_v46 = vld [vmem:[%s8090_s8 + $0x50] sm:$0xff] }
 0x297   :  { %2804 = vmatpush1.msra.mxu1 %v2666_v61  ;;  %2879 = vmatpush1.msra.mxu0 %v2726_v48  ;;  %v2219_v61 = vpop.f32.mrf.mxu0  ;;  %v2934_v48 = vld [vmem:[%s8090_s8 + $0x48] sm:$0xff] }
 0x298   :  { %2805 = vmatprep.subr.mxu1 %v2665_v4  ;;  %2908 = vmatprep.subr.mxu0 %v2761_v49  ;;  %v2149_v43 = vadd.f32 %v2148_v56, %v2061_v58  ;;  %v2933_v49 = vld [vmem:[%s8090_s8 + $0x40] sm:$0xff]  ;;  %v2928_v56 = vld [vmem:[%s8090_s8 + $0x18] sm:$0xff]  ;;  %v2927_v58 = vld [vmem:[%s8090_s8 + $0x10] sm:$0xff] }
 0x299   :  { %2806 = vmatpush1.msra.mxu1 %v2664_v1  ;;  %2909 = vmatpush2.msra.mxu0 %v2760_v53  ;;  %v2221_v1 = vpop.f32.mrf.mxu0  ;;  %v2932_v53 = vld [vmem:[%s8090_s8 + $0x38] sm:$0xff] }
 0x29a   :  { %2807 = vmatprep.subr.mxu1 %v2663_v2  ;;  %2910 = vmatprep.subr.mxu0 %v2759_v36  ;;  %v2151_v2 = vadd.f32 %v2150_v60, %v2065_v0  ;;  %v2931_v36 = vld [vmem:[%s8090_s8 + $0x30] sm:$0xff]  ;;  %v2926_v60 = vld [vmem:[%s8090_s8 + $0x8] sm:$0xff] }
 0x29b   :  { %2808 = vmatpush1.msra.mxu1 %v2662_v5  ;;  %2911 = vmatpush2.msra.mxu0 %v2758_v16  ;;  %v2220_v5 = vadd.f32 %v2219_v61, %v2149_v43  ;;  %v2930_v16 = vld [vmem:[%s8090_s8 + $0x28] sm:$0xff]  ;;  %v2925_v61 = vld [vmem:[%s8090_s8] sm:$0xff] }
 0x29c   :  { %2809 = vmatprep.subr.mxu1 %v2725_v59  ;;  %v2942_v0 = vld [vmem:[%s8090_s8 + $0x88] sm:$0xff] }
 0x29d   :  { %2810 = vmatpush2.msra.mxu1 %v2724_v6  ;;  %v2222_v6 = vadd.f32 %v2221_v1, %v2151_v2  ;;  %v3124_v43 = vld [vmem:[%s8091_s11 + $0x8] sm:$0xff]  ;;  %v3123_v1 = vld [vmem:[%s8091_s11] sm:$0xff] }
 0x29e   :  { %2811 = vmatprep.subr.mxu1 %v2723_v9  ;;  %v3122_v2 = vld [vmem:[%s8092_s1] sm:$0x3]  ;;  %3163 = vmatprep.subr.mxu0 %v3124_v43  ;;  %v3100_v43 = vld [vmem:[%s8093_s10 + $0x250] sm:$0xff] }
 0x29f   :  { %2812 = vmatpush2.msra.mxu1 %v2722_v15 }
 0x2a0   :  { %2813 = vmatprep.subr.mxu1 %v2721_v10 }
 0x2a1   :  { %2814 = vmatpush2.msra.mxu1 %v2720_v8 }
 0x2a2   :  { %2815 = vmatprep.subr.mxu1 %v2719_v12 }
 0x2a3   :  { %2816 = vmatpush2.msra.mxu1 %v2718_v54 }
 0x2a4   :  { %2817 = vmatprep.subr.mxu1 %v2717_v13 }
 0x2a5   :  { %2818 = vmatpush2.msra.mxu1 %v2716_v14 }
 0x2a6   :  { %2819 = vmatprep.subr.mxu1 %v2715_v62 }
 0x2a7   :  { %2820 = vmatpush2.msra.mxu1 %v2714_v18 }
 0x2a8   :  { %2821 = vmatprep.subr.mxu1 %v2713_v51 }
 0x2a9   :  { %2822 = vmatpush2.msra.mxu1 %v2712_v21  ;;  %v2069_v21 = vrot.slane %v2056_v55, %v6463_v26 }
 0x2aa   :  { %2823 = vmatprep.subr.mxu1 %v2711_v24  ;;  %v2073_v24 = vrot.slane %v2056_v55, %v6299_v17  ;;  %v2929_v55 = vld [vmem:[%s8090_s8 + $0x20] sm:$0xff] }
 0x2ab   :  { %2824 = vmatpush2.msra.mxu1 %v2710_v11 }
 0x2ac   :  { %2825 = vmatprep.subr.mxu1 %v2709_v39 }
 0x2ad   :  { %2826 = vmatpush2.msra.mxu1 %v2708_v28 }
 0x2ae   :  { %2827 = vmatprep.subr.mxu1 %v2707_v3 }
 0x2af   :  { %2828 = vmatpush2.msra.mxu1 %v2706_v30 }
 0x2b0   :  { %2829 = vmatprep.subr.mxu1 %v2705_v63  ;;  %v2432_v51 = vpop.f32.mrf.mxu0 }
 0x2b1   :  { %2830 = vmatpush2.msra.mxu1 %v2704_v31  ;;  %v2433_v39 = vadd.f32 %v2432_v51, %v2069_v21  ;;  %v3093_v51 = vld [vmem:[%s8093_s10 + $0x218] sm:$0xff]  ;;  %v3092_v21 = vld [vmem:[%s8093_s10 + $0x210] sm:$0xff] }
 0x2b2   :  { %2831 = vmatprep.subr.mxu1 %v2703_v32  ;;  %v2434_v11 = vpop.f32.mrf.mxu0 }
 0x2b3   :  { %2832 = vmatpush2.msra.mxu1 %v2702_v33  ;;  %v2435_v30 = vadd.f32 %v2434_v11, %v2073_v24  ;;  %v3087_v24 = vld [vmem:[%s8093_s10 + $0x1e8] sm:$0xff]  ;;  %v3086_v11 = vld [vmem:[%s8093_s10 + $0x1e0] sm:$0xff] }
 0x2b4   :  { %2833 = vmatprep.subr.mxu1 %v2701_v34 }
 0x2b5   :  { %2834 = vmatpush2.msra.mxu1 %v2700_v35 }
 0x2b6   :  { %2835 = vmatprep.subr.mxu1 %v2699_v7 }
 0x2b7   :  { %2836 = vmatpush2.msra.mxu1 %v2698_v50 }
 0x2b8   :  { %2837 = vmatprep.subr.mxu1 %v2697_v23 }
 0x2b9   :  { %2838 = vmatpush2.msra.mxu1 %v2696_v41 }
 0x2ba   :  { %2839 = vmatprep.subr.mxu1 %v2695_v37 }
 0x2bb   :  { %2840 = vmatpush2.msra.mxu1 %v2694_v25 }
 0x2bc   :  { %2953 = vmatprep.subr.mxu1 %v3903_v19 }
 0x2d6   :  { %v2290_v4 = vpop.f32.mrf.mxu1 }
 0x2d7   :  { %v2291_v9 = vadd.f32 %v2290_v4, %v2220_v5  ;;  %v2941_v4 = vld [vmem:[%s8090_s8 + $0x80] sm:$0xff]  ;;  %v3126_v5 = vld [vmem:[%s8091_s11 + $0x18] sm:$0xff] }
 0x2d8   :  { %v2292_v59 = vpop.f32.mrf.mxu1 }
 0x2d9   :  { %v2293_v10 = vadd.f32 %v2292_v59, %v2222_v6  ;;  %v3125_v59 = vld [vmem:[%s8091_s11 + $0x10] sm:$0xff]  ;;  %v3128_v6 = vld [vmem:[%s8091_s11 + $0x28] sm:$0xff] }
 0x2f0   :  { %v2574_v28 = vpop.f32.mrf.mxu0 }
 0x2f2   :  { %v2576_v34 = vpop.f32.mrf.mxu0 }
 0x2f8   :  { %v2361_v15 = vpop.f32.mrf.mxu1 }
 0x2f9   :  { %v2362_v8 = vadd.f32 %v2361_v15, %v2291_v9  ;;  %v3119_v9 = vld [vmem:[%s8093_s10 + $0x2e8] sm:$0xff]  ;;  %v3127_v15 = vld [vmem:[%s8091_s11 + $0x20] sm:$0xff] }
 0x2fa   :  { %v2363_v12 = vpop.f32.mrf.mxu1 }
 0x2fb   :  { %v2364_v54 = vadd.f32 %v2363_v12, %v2293_v10  ;;  %v2654_v13 = vmul.f32 0.01, %v2362_v8  ;;  %vm2650_vm8 = vcmp.ge.f32.partialorder %v2362_v8, 0.0  ;;  %v3117_v10 = vld [vmem:[%s8093_s10 + $0x2d8] sm:$0xff]  ;;  %v3111_v12 = vld [vmem:[%s8093_s10 + $0x2a8] sm:$0xff] }
 0x2fd   :  { %v2655_v14 = vmul.f32 0.01, %v2364_v54  ;;  %vm2651_vm9 = vcmp.ge.f32.partialorder %v2364_v54, 0.0  ;;  %v2658_v18 = vsel %vm2650_vm8, %v2362_v8, %v2654_v13  ;;  %v3116_v8 = vld [vmem:[%s8093_s10 + $0x2d0] sm:$0xff]  ;;  %v3105_v13 = vld [vmem:[%s8093_s10 + $0x278] sm:$0xff] }
 0x2ff   :  { %v2659_v62 = vsel %vm2651_vm9, %v2364_v54, %v2655_v14  ;;  %v3110_v54 = vld [vmem:[%s8093_s10 + $0x2a0] sm:$0xff]  ;;  %v3104_v14 = vld [vmem:[%s8093_s10 + $0x270] sm:$0xff] }
 0x300   :  { %2841 = vmatprep.mubr.f32.mxu1 %v2659_v62  ;;  %v3099_v62 = vld [vmem:[%s8093_s10 + $0x248] sm:$0xff] }
 0x301   :  { %2842 = vmatmul.mubr.f32.vlgmr.msra.gmra.mxu1 %v2658_v18  ;;  %v3098_v18 = vld [vmem:[%s8093_s10 + $0x240] sm:$0xff] }
 0x302   :  { %2954 = vmatpush1.msra.mxu1 %v2940_v42 }
 0x303   :  { %2955 = vmatprep.subr.mxu1 %v3903_v19 }
 0x304   :  { %2956 = vmatpush1.msra.mxu1 %v2939_v44 }
 0x305   :  { %2957 = vmatprep.subr.mxu1 %v3903_v19 }
 0x306   :  { %2958 = vmatpush1.msra.mxu1 %v2938_v45 }
 0x307   :  { %2959 = vmatprep.subr.mxu1 %v3903_v19 }
 0x308   :  { %2960 = vmatpush1.msra.mxu1 %v2937_v29 }
 0x309   :  { %2961 = vmatprep.subr.mxu1 %v3903_v19 }
 0x30a   :  { %2962 = vmatpush1.msra.mxu1 %v2936_v20 }
 0x30b   :  { %2963 = vmatprep.subr.mxu1 %v3903_v19 }
 0x30c   :  { %2964 = vmatpush1.msra.mxu1 %v2935_v46 }
 0x30d   :  { %2965 = vmatprep.subr.mxu1 %v3903_v19 }
 0x30e   :  { %2966 = vmatpush1.msra.mxu1 %v2934_v48 }
 0x30f   :  { %2967 = vmatprep.subr.mxu1 %v3903_v19 }
 0x310   :  { %2968 = vmatpush1.msra.mxu1 %v2933_v49 }
 0x311   :  { %2969 = vmatprep.subr.mxu1 %v3903_v19 }
 0x312   :  { %2970 = vmatpush1.msra.mxu1 %v2932_v53 }
 0x313   :  { %2971 = vmatprep.subr.mxu1 %v3903_v19 }
 0x314   :  { %2972 = vmatpush1.msra.mxu1 %v2931_v36 }
 0x315   :  { %2973 = vmatprep.subr.mxu1 %v3903_v19 }
 0x316   :  { %2974 = vmatpush1.msra.mxu1 %v2930_v16 }
 0x317   :  { %2975 = vmatprep.subr.mxu1 %v3903_v19 }
 0x318   :  { %2976 = vmatpush1.msra.mxu1 %v2929_v55  ;;  %v3118_v55 = vld [vmem:[%s8093_s10 + $0x2e0] sm:$0xff] }
 0x319   :  { %2977 = vmatprep.subr.mxu1 %v3903_v19 }
 0x31a   :  { %2978 = vmatpush1.msra.mxu1 %v2928_v56 }
 0x31b   :  { %2979 = vmatprep.subr.mxu1 %v3903_v19 }
 0x31c   :  { %2980 = vmatpush1.msra.mxu1 %v2927_v58  ;;  %v3113_v58 = vld [vmem:[%s8093_s10 + $0x2b8] sm:$0xff] }
 0x31d   :  { %2981 = vmatprep.subr.mxu1 %v3903_v19 }
 0x31e   :  { %2982 = vmatpush1.msra.mxu1 %v2926_v60  ;;  %v3112_v60 = vld [vmem:[%s8093_s10 + $0x2b0] sm:$0xff] }
 0x31f   :  { %2983 = vmatprep.subr.mxu1 %v3903_v19 }
 0x320   :  { %2984 = vmatpush1.msra.mxu1 %v2925_v61  ;;  %v3107_v61 = vld [vmem:[%s8093_s10 + $0x288] sm:$0xff] }
 0x321   :  { %3013 = vmatprep.subr.mxu1 %v3903_v19 }
 0x322   :  { %3014 = vmatpush2.msra.mxu1 %v2942_v0  ;;  %v3106_v0 = vld [vmem:[%s8093_s10 + $0x280] sm:$0xff] }
 0x323   :  { %3015 = vmatprep.subr.mxu1 %v3903_v19 }
 0x324   :  { %3016 = vmatpush2.msra.mxu1 %v2941_v4  ;;  %v3101_v4 = vld [vmem:[%s8093_s10 + $0x258] sm:$0xff] }
 0x325   :  { %3417 = vmatprep.subr.mxu1 %v3119_v9  ;;  %v3082_v9 = vld [vmem:[%s8093_s10 + $0x1c0] sm:$0xff] }
 0x338   :  { %v2503_v3 = vpop.f32.mrf.mxu1 }
 0x339   :  { %v2504_v63 = vadd.f32 %v2503_v3, %v2433_v39  ;;  %v3081_v39 = vld [vmem:[%s8093_s10 + $0x1b8] sm:$0xff]  ;;  %v3075_v3 = vld [vmem:[%s8093_s10 + $0x188] sm:$0xff] }
 0x33a   :  { %v2505_v31 = vpop.f32.mrf.mxu1 }
 0x33b   :  { %v2506_v32 = vadd.f32 %v2505_v31, %v2435_v30  ;;  %v2575_v33 = vadd.f32 %v2574_v28, %v2504_v63  ;;  %v3080_v28 = vld [vmem:[%s8093_s10 + $0x1b0] sm:$0xff]  ;;  %v3074_v30 = vld [vmem:[%s8093_s10 + $0x180] sm:$0xff]  ;;  %v3069_v63 = vld [vmem:[%s8093_s10 + $0x158] sm:$0xff] }
 0x33c   :  { %v2645_v35 = vpop.f32.mrf.mxu1  ;;  %v3068_v31 = vld [vmem:[%s8093_s10 + $0x150] sm:$0xff] }
 0x33d   :  { %v2646_v7 = vadd.f32 %v2645_v35, %v2575_v33  ;;  %v2577_v50 = vadd.f32 %v2576_v34, %v2506_v32  ;;  %v3063_v32 = vld [vmem:[%s8093_s10 + $0x128] sm:$0xff]  ;;  %v3062_v33 = vld [vmem:[%s8093_s10 + $0x120] sm:$0xff]  ;;  %v3057_v34 = vld [vmem:[%s8093_s10 + $0xf8] sm:$0xff] }
 0x33e   :  { %v2647_v23 = vpop.f32.mrf.mxu1  ;;  %v3056_v35 = vld [vmem:[%s8093_s10 + $0xf0] sm:$0xff] }
 0x33f   :  { %v2648_v41 = vadd.f32 %v2647_v23, %v2577_v50  ;;  %v2656_v37 = vmul.f32 0.01, %v2646_v7  ;;  %vm2652_vm10 = vcmp.ge.f32.partialorder %v2646_v7, 0.0  ;;  %v3050_v50 = vld [vmem:[%s8093_s10 + $0xc0] sm:$0xff]  ;;  %v3045_v23 = vld [vmem:[%s8093_s10 + $0x98] sm:$0xff] }
 0x341   :  { %vm2653_vm11 = vcmp.ge.f32.partialorder %v2648_v41, 0.0  ;;  %v2657_v38 = vmul.f32 0.01, %v2648_v41  ;;  %v2660_v40 = vsel %vm2652_vm10, %v2646_v7, %v2656_v37  ;;  %v3051_v7 = vld [vmem:[%s8093_s10 + $0xc8] sm:$0xff] }
 0x342   :  { %v3039_v37 = vld [vmem:[%s8093_s10 + $0x68] sm:$0xff] }
 0x343   :  { %v2661_v25 = vsel %vm2653_vm11, %v2648_v41, %v2657_v38  ;;  %v3044_v41 = vld [vmem:[%s8093_s10 + $0x90] sm:$0xff]  ;;  %v2762_v38 = vld [vmem:[%s8094_s7] sm:$0x3] }
 0x344   :  { %3771 = vmatprep.mubr.msk.f32.mxu0 %vm2078_vm7, %v2661_v25  ;;  %v2771_v42 = vrot.slane %v2762_v38, %v5888_v47 }
 0x345   :  { %2913 = vmatmul.mubr.f32.vlgmr.msra.gmra.mxu0 %v2660_v40  ;;  %v2767_v40 = vrot.slane %v2762_v38, %v6245_v57 }
 0x346   :  { %3197 = vmatprep.mubr.f32.mxu0 %v3903_v19  ;;  %3164 = vmatpush1.msra.mxu0 %v3123_v1  ;;  %v3095_v1 = vld [vmem:[%s8093_s10 + $0x228] sm:$0xff] }
 0x347   :  { %3234 = vmatprep.subr.mxu0 %v3126_v5  ;;  %v3089_v5 = vld [vmem:[%s8093_s10 + $0x1f8] sm:$0xff] }
 0x349   :  { %3774 = vmatmul.mubr.msk.f32.vlgmr.msra.gmra.mxu0 %vm3129_vm12, %v3122_v2 }
 0x34a   :  { %3235 = vmatpush1.msra.mxu0 %v3125_v59  ;;  %3268 = vmatprep.mubr.f32.mxu0 %v3903_v19  ;;  %v3088_v59 = vld [vmem:[%s8093_s10 + $0x1f0] sm:$0xff] }
 0x34b   :  { %3305 = vmatprep.subr.mxu0 %v3128_v6  ;;  %v3083_v6 = vld [vmem:[%s8093_s10 + $0x1c8] sm:$0xff] }
 0x34d   :  { %3775 = vmatmul.mubr.msk.f32.vlgmr.msra.gmra.mxu0 %vm3129_vm12, %v3122_v2 }
 0x34e   :  { %3306 = vmatpush1.msra.mxu0 %v3127_v15  ;;  %3339 = vmatprep.mubr.f32.mxu0 %v3903_v19  ;;  %v3077_v15 = vld [vmem:[%s8093_s10 + $0x198] sm:$0xff] }
 0x34f   :  { %3346 = vmatprep.subr.mxu0 %v3117_v10  ;;  %v3076_v10 = vld [vmem:[%s8093_s10 + $0x190] sm:$0xff] }
 0x351   :  { %3776 = vmatmul.mubr.msk.f32.vlgmr.msra.gmra.mxu0 %vm3129_vm12, %v3122_v2  ;;  %v3094_v2 = vld [vmem:[%s8093_s10 + $0x220] sm:$0xff] }
 0x352   :  { %3347 = vmatpush1.msra.mxu0 %v3116_v8  ;;  %3410 = vmatprep.mubr.f32.mxu0 %v3903_v19  ;;  %v3071_v8 = vld [vmem:[%s8093_s10 + $0x168] sm:$0xff] }
 0x353   :  { %3348 = vmatprep.subr.mxu0 %v3111_v12  ;;  %v3070_v12 = vld [vmem:[%s8093_s10 + $0x160] sm:$0xff] }
 0x354   :  { %3349 = vmatpush1.msra.mxu0 %v3110_v54  ;;  %v3065_v54 = vld [vmem:[%s8093_s10 + $0x138] sm:$0xff] }
 0x355   :  { %3350 = vmatprep.subr.mxu0 %v3105_v13  ;;  %v3064_v13 = vld [vmem:[%s8093_s10 + $0x130] sm:$0xff] }
 0x356   :  { %3351 = vmatpush1.msra.mxu0 %v3104_v14  ;;  %v3059_v14 = vld [vmem:[%s8093_s10 + $0x108] sm:$0xff] }
 0x357   :  { %3352 = vmatprep.subr.mxu0 %v3099_v62  ;;  %v3058_v62 = vld [vmem:[%s8093_s10 + $0x100] sm:$0xff] }
 0x358   :  { %3353 = vmatpush1.msra.mxu0 %v3098_v18  ;;  %v3053_v18 = vld [vmem:[%s8093_s10 + $0xd8] sm:$0xff] }
 0x359   :  { %3354 = vmatprep.subr.mxu0 %v3093_v51  ;;  %v3052_v51 = vld [vmem:[%s8093_s10 + $0xd0] sm:$0xff] }
 0x35a   :  { %3355 = vmatpush1.msra.mxu0 %v3092_v21  ;;  %v3047_v21 = vld [vmem:[%s8093_s10 + $0xa8] sm:$0xff] }
 0x35b   :  { %3356 = vmatprep.subr.mxu0 %v3087_v24  ;;  %v3046_v24 = vld [vmem:[%s8093_s10 + $0xa0] sm:$0xff] }
 0x35c   :  { %3357 = vmatpush1.msra.mxu0 %v3086_v11  ;;  %v3038_v11 = vld [vmem:[%s8093_s10 + $0x60] sm:$0xff] }
 0x35d   :  { %3358 = vmatprep.subr.mxu0 %v3081_v39  ;;  %v3041_v39 = vld [vmem:[%s8093_s10 + $0x78] sm:$0xff] }
 0x35e   :  { %3359 = vmatpush1.msra.mxu0 %v3080_v28  ;;  %v3033_v28 = vld [vmem:[%s8093_s10 + $0x38] sm:$0xff] }
 0x35f   :  { %3360 = vmatprep.subr.mxu0 %v3075_v3  ;;  %v3040_v3 = vld [vmem:[%s8093_s10 + $0x70] sm:$0xff] }
 0x360   :  { %3361 = vmatpush1.msra.mxu0 %v3074_v30  ;;  %v3032_v30 = vld [vmem:[%s8093_s10 + $0x30] sm:$0xff] }
 0x361   :  { %3362 = vmatprep.subr.mxu0 %v3069_v63  ;;  %v3035_v63 = vld [vmem:[%s8093_s10 + $0x48] sm:$0xff] }
 0x362   :  { %3363 = vmatpush1.msra.mxu0 %v3068_v31  ;;  %v3027_v31 = vld [vmem:[%s8093_s10 + $0x8] sm:$0xff] }
 0x363   :  { %3364 = vmatprep.subr.mxu0 %v3063_v32  ;;  %v3034_v32 = vld [vmem:[%s8093_s10 + $0x40] sm:$0xff] }
 0x364   :  { %3365 = vmatpush1.msra.mxu0 %v3062_v33  ;;  %v3026_v33 = vld [vmem:[%s8093_s10] sm:$0xff] }
 0x365   :  { %3366 = vmatprep.subr.mxu0 %v3057_v34  ;;  %v3029_v34 = vld [vmem:[%s8093_s10 + $0x18] sm:$0xff] }
 0x366   :  { %3367 = vmatpush1.msra.mxu0 %v3056_v35  ;;  %v3028_v35 = vld [vmem:[%s8093_s10 + $0x10] sm:$0xff] }
 0x367   :  { %3368 = vmatprep.subr.mxu0 %v3051_v7  ;;  %v3121_v7 = vld [vmem:[%s8093_s10 + $0x2f8] sm:$0xff] }
 0x368   :  { %3369 = vmatpush1.msra.mxu0 %v3050_v50  ;;  %v3772_v50 = vld [vmem:[%s8095_s9] ss:$0 sm:$0xff] }
 0x369   :  { %3370 = vmatprep.subr.mxu0 %v3045_v23 }
 0x36a   :  { %3371 = vmatpush1.msra.mxu0 %v3044_v41 }
 0x36b   :  { %3372 = vmatprep.subr.mxu0 %v3039_v37 }
 0x36c   :  { %3373 = vmatpush1.msra.mxu0 %v3038_v11  ;;  %v3559_v11 = vld [vmem:[%s8096_s12] sm:$0x3f] }
 0x36d   :  { %3374 = vmatprep.subr.mxu0 %v3033_v28  ;;  %v3568_v28 = vrot.slane %v3559_v11, %v5888_v47 }
 0x36e   :  { %3375 = vmatpush1.msra.mxu0 %v3032_v30  ;;  %v3564_v30 = vrot.slane %v3559_v11, %v6245_v57 }
 0x36f   :  { %3376 = vmatprep.subr.mxu0 %v3027_v31 }
 0x370   :  { %3377 = vmatpush1.msra.mxu0 %v3026_v33 }
 0x371   :  { %3488 = vmatprep.subr.mxu0 %v3121_v7 }
 0x3c1   :  { %v2843_v25 = vpop.f32.mrf.mxu1 }
 0x3c2   :  { %v2844_v45 = vadd.f32 %v2843_v25, %v2767_v40  ;;  %v3120_v25 = vld [vmem:[%s8093_s10 + $0x2f0] sm:$0xff] }
 0x3c3   :  { %v2845_v44 = vpop.f32.mrf.mxu1 }
 0x3c4   :  { %v2846_v20 = vadd.f32 %v2845_v44, %v2771_v42  ;;  %v3115_v42 = vld [vmem:[%s8093_s10 + $0x2c8] sm:$0xff]  ;;  %v3114_v44 = vld [vmem:[%s8093_s10 + $0x2c0] sm:$0xff] }
 0x405   :  { %v2914_v29 = vpop.f32.mrf.mxu0 }
 0x406   :  { %v2915_v46 = vadd.f32 %v2914_v29, %v2844_v45  ;;  %v3109_v45 = vld [vmem:[%s8093_s10 + $0x298] sm:$0xff]  ;;  %v3108_v29 = vld [vmem:[%s8093_s10 + $0x290] sm:$0xff] }
 0x407   :  { %v2916_v48 = vpop.f32.mrf.mxu0 }
 0x408   :  { %v2917_v49 = vadd.f32 %v2916_v48, %v2846_v20  ;;  %v2921_v53 = vmul.f32 0.01, %v2915_v46  ;;  %vm2919_vm13 = vcmp.ge.f32.partialorder %v2915_v46, 0.0  ;;  %v3103_v20 = vld [vmem:[%s8093_s10 + $0x268] sm:$0xff]  ;;  %v3096_v48 = vld [vmem:[%s8093_s10 + $0x230] sm:$0xff] }
 0x40a   :  { %vm2920_vm14 = vcmp.ge.f32.partialorder %v2917_v49, 0.0  ;;  %v2922_v36 = vmul.f32 0.01, %v2917_v49  ;;  %v2923_v56 = vsel %vm2919_vm13, %v2915_v46, %v2921_v53  ;;  %v3102_v46 = vld [vmem:[%s8093_s10 + $0x260] sm:$0xff] }
 0x40b   :  { %v3090_v53 = vld [vmem:[%s8093_s10 + $0x200] sm:$0xff] }
 0x40c   :  { %v2924_v16 = vsel %vm2920_vm14, %v2917_v49, %v2922_v36  ;;  %v3091_v49 = vld [vmem:[%s8093_s10 + $0x208] sm:$0xff]  ;;  %v3085_v36 = vld [vmem:[%s8093_s10 + $0x1d8] sm:$0xff] }
 0x40d   :  { %3773 = vmatprep.mubr.msk.f32.mxu1 %vm2078_vm7, %v2924_v16  ;;  %v3084_v16 = vld [vmem:[%s8093_s10 + $0x1d0] sm:$0xff] }
 0x40e   :  { %3018 = vmatmul.mubr.f32.vlgmr.msra.gmra.mxu1 %v2923_v56  ;;  %v3078_v56 = vld [vmem:[%s8093_s10 + $0x1a0] sm:$0xff] }
 0x40f   :  { %3418 = vmatpush1.msra.mxu1 %v3118_v55  ;;  %3481 = vmatprep.mubr.f32.mxu1 %v3903_v19  ;;  %v3079_v55 = vld [vmem:[%s8093_s10 + $0x1a8] sm:$0xff] }
 0x410   :  { %3419 = vmatprep.subr.mxu1 %v3113_v58  ;;  %v3073_v58 = vld [vmem:[%s8093_s10 + $0x178] sm:$0xff] }
 0x411   :  { %3420 = vmatpush1.msra.mxu1 %v3112_v60  ;;  %v3072_v60 = vld [vmem:[%s8093_s10 + $0x170] sm:$0xff] }
 0x412   :  { %3421 = vmatprep.subr.mxu1 %v3107_v61  ;;  %v3067_v61 = vld [vmem:[%s8093_s10 + $0x148] sm:$0xff] }
 0x413   :  { %3422 = vmatpush1.msra.mxu1 %v3106_v0  ;;  %v3066_v0 = vld [vmem:[%s8093_s10 + $0x140] sm:$0xff] }
 0x414   :  { %3423 = vmatprep.subr.mxu1 %v3101_v4  ;;  %v3061_v4 = vld [vmem:[%s8093_s10 + $0x118] sm:$0xff] }
 0x415   :  { %3424 = vmatpush1.msra.mxu1 %v3100_v43  ;;  %v3060_v43 = vld [vmem:[%s8093_s10 + $0x110] sm:$0xff] }
 0x416   :  { %3425 = vmatprep.subr.mxu1 %v3095_v1  ;;  %v3055_v1 = vld [vmem:[%s8093_s10 + $0xe8] sm:$0xff] }
 0x417   :  { %3426 = vmatpush1.msra.mxu1 %v3094_v2  ;;  %v3054_v2 = vld [vmem:[%s8093_s10 + $0xe0] sm:$0xff] }
 0x418   :  { %3427 = vmatprep.subr.mxu1 %v3089_v5  ;;  %v3049_v5 = vld [vmem:[%s8093_s10 + $0xb8] sm:$0xff] }
 0x419   :  { %3428 = vmatpush1.msra.mxu1 %v3088_v59  ;;  %v3048_v59 = vld [vmem:[%s8093_s10 + $0xb0] sm:$0xff] }
 0x41a   :  { %3429 = vmatprep.subr.mxu1 %v3083_v6  ;;  %v3043_v6 = vld [vmem:[%s8093_s10 + $0x88] sm:$0xff] }
 0x41b   :  { %3430 = vmatpush1.msra.mxu1 %v3082_v9  ;;  %v3042_v9 = vld [vmem:[%s8093_s10 + $0x80] sm:$0xff] }
 0x41c   :  { %3431 = vmatprep.subr.mxu1 %v3077_v15  ;;  %v3037_v15 = vld [vmem:[%s8093_s10 + $0x58] sm:$0xff] }
 0x41d   :  { %3432 = vmatpush1.msra.mxu1 %v3076_v10  ;;  %v3036_v10 = vld [vmem:[%s8093_s10 + $0x50] sm:$0xff] }
 0x41e   :  { %3433 = vmatprep.subr.mxu1 %v3071_v8  ;;  %v3031_v8 = vld [vmem:[%s8093_s10 + $0x28] sm:$0xff] }
 0x41f   :  { %3434 = vmatpush1.msra.mxu1 %v3070_v12  ;;  %v3030_v12 = vld [vmem:[%s8093_s10 + $0x20] sm:$0xff] }
 0x420   :  { %3435 = vmatprep.subr.mxu1 %v3065_v54  ;;  %v3199_v54 = vpop.f32.mrf.mxu0 }
 0x421   :  { %3436 = vmatpush1.msra.mxu1 %v3064_v13 }
 0x422   :  { %3437 = vmatprep.subr.mxu1 %v3059_v14  ;;  %v3201_v13 = vpop.f32.mrf.mxu0 }
 0x423   :  { %3438 = vmatpush1.msra.mxu1 %v3058_v62 }
 0x424   :  { %3439 = vmatprep.subr.mxu1 %v3053_v18  ;;  %v3270_v14 = vpop.f32.mrf.mxu0 }
 0x425   :  { %3440 = vmatpush1.msra.mxu1 %v3052_v51 }
 0x426   :  { %3441 = vmatprep.subr.mxu1 %v3047_v21  ;;  %v3272_v62 = vpop.f32.mrf.mxu0 }
 0x427   :  { %3442 = vmatpush1.msra.mxu1 %v3046_v24 }
 0x428   :  { %3443 = vmatprep.subr.mxu1 %v3041_v39  ;;  %v3341_v18 = vpop.f32.mrf.mxu0 }
 0x429   :  { %3444 = vmatpush1.msra.mxu1 %v3040_v3 }
 0x42a   :  { %3445 = vmatprep.subr.mxu1 %v3035_v63  ;;  %v3343_v51 = vpop.f32.mrf.mxu0 }
 0x42b   :  { %3446 = vmatpush1.msra.mxu1 %v3034_v32 }
 0x42c   :  { %3447 = vmatprep.subr.mxu1 %v3029_v34  ;;  %v3572_v34 = vrot.slane %v3559_v11, %v6463_v26 }
 0x42d   :  { %3448 = vmatpush1.msra.mxu1 %v3028_v35 }
 0x4ce   :  { %v3019_v23 = vpop.f32.mrf.mxu1 }
 0x4cf   :  { %v3020_v41 = vadd.f32 %v3772_v50, %v3019_v23 }
 0x4d0   :  { %v3021_v37 = vpop.f32.mrf.mxu1 }
 0x4d1   :  { %vm3023_vm15 = vcmp.ge.f32.partialorder %v3020_v41, 0.0  ;;  %v3024_v38 = vmul.f32 0.01, %v3020_v41  ;;  %v3576_v37 = vrot.slane %v3559_v11, %v6299_v17 }
 0x4d3   :  { %v7941_v40 = vsel %vm3023_vm15, %v3020_v41, %v3024_v38 }
 0x4d4   :  { %3411 = vmatmul.mubr.f32.vlgmr.msra.gmra.mxu0 %v7941_v40  ;;  %3482 = vmatmul.mubr.f32.vlgmr.msra.gmra.mxu1 %v7941_v40 }
 0x4d5   :  { %3489 = vmatpush1.msra.mxu0 %v3120_v25  ;;  %3552 = vmatprep.mubr.f32.mxu0 %v3903_v19  ;;  %v3097_v19 = vld [vmem:[%s8093_s10 + $0x238] sm:$0xff] }
 0x4d6   :  { %3490 = vmatprep.subr.mxu0 %v3115_v42  ;;  %v3580_v42 = vrot.slane %v3559_v11, %v6947_v22 }
 0x4d7   :  { %3491 = vmatpush1.msra.mxu0 %v3114_v44 }
 0x4d8   :  { %3492 = vmatprep.subr.mxu0 %v3109_v45 }
 0x4d9   :  { %3493 = vmatpush1.msra.mxu0 %v3108_v29 }
 0x4da   :  { %3494 = vmatprep.subr.mxu0 %v3103_v20  ;;  %v3584_v20 = vrot.slane %v3559_v11, %v6956_v27 }
 0x4db   :  { %3495 = vmatpush1.msra.mxu0 %v3102_v46 }
 0x4dc   :  { %3496 = vmatprep.subr.mxu0 %v3097_v19 }
 0x4dd   :  { %3497 = vmatpush1.msra.mxu0 %v3096_v48 }
 0x4de   :  { %3498 = vmatprep.subr.mxu0 %v3091_v49 }
 0x4df   :  { %3499 = vmatpush1.msra.mxu0 %v3090_v53 }
 0x4e0   :  { %3500 = vmatprep.subr.mxu0 %v3085_v36 }
 0x4e1   :  { %3501 = vmatpush1.msra.mxu0 %v3084_v16 }
 0x4e2   :  { %3502 = vmatprep.subr.mxu0 %v3079_v55 }
 0x4e3   :  { %3503 = vmatpush1.msra.mxu0 %v3078_v56 }
 0x4e4   :  { %3504 = vmatprep.subr.mxu0 %v3073_v58 }
 0x4e5   :  { %3505 = vmatpush1.msra.mxu0 %v3072_v60 }
 0x4e6   :  { %3506 = vmatprep.subr.mxu0 %v3067_v61 }
 0x4e7   :  { %3507 = vmatpush1.msra.mxu0 %v3066_v0 }
 0x4e8   :  { %3508 = vmatprep.subr.mxu0 %v3061_v4 }
 0x4e9   :  { %3509 = vmatpush1.msra.mxu0 %v3060_v43 }
 0x4ea   :  { %3510 = vmatprep.subr.mxu0 %v3055_v1 }
 0x4eb   :  { %3511 = vmatpush1.msra.mxu0 %v3054_v2 }
 0x4ec   :  { %3512 = vmatprep.subr.mxu0 %v3049_v5 }
 0x4ed   :  { %3513 = vmatpush1.msra.mxu0 %v3048_v59 }
 0x4ee   :  { %3514 = vmatprep.subr.mxu0 %v3043_v6 }
 0x4ef   :  { %3515 = vmatpush1.msra.mxu0 %v3042_v9 }
 0x4f0   :  { %3516 = vmatprep.subr.mxu0 %v3037_v15 }
 0x4f1   :  { %3517 = vmatpush1.msra.mxu0 %v3036_v10 }
 0x4f2   :  { %3518 = vmatprep.subr.mxu0 %v3031_v8 }
 0x4f3   :  { %3519 = vmatpush1.msra.mxu0 %v3030_v12 }
 0x4f4   :  { %3553 = vmatmul.mubr.f32.vlgmr.msra.gmra.mxu0 %v7941_v40 }
 0x594   :  { %v3412_v21 = vpop.f32.mrf.mxu0  ;;  %v3483_v63 = vpop.f32.mrf.mxu1 }
 0x595   :  { %v3413_v3 = vadd.f32 %v3412_v21, %v3199_v54  ;;  %v3484_v33 = vadd.f32 %v3483_v63, %v3270_v14  ;;  %v3647_v63 = vld [vmem:[%s8097_s13] sm:$0x3f] }
 0x596   :  { %v3414_v24 = vpop.f32.mrf.mxu0  ;;  %v3485_v35 = vpop.f32.mrf.mxu1 }
 0x597   :  { %v3415_v39 = vadd.f32 %v3414_v24, %v3201_v13  ;;  %v3591_v32 = vadd.f32 %v3564_v30, %v3413_v3  ;;  %v3593_v23 = vadd.f32 %v3572_v34, %v3484_v33  ;;  %v3486_v41 = vadd.f32 %v3485_v35, %v3272_v62 }
 0x598   :  { %v3656_v33 = vrot.slane %v3647_v63, %v5888_v47  ;;  %v3660_v34 = vrot.slane %v3647_v63, %v6463_v26 }
 0x599   :  { %v3592_v31 = vadd.f32 %v3568_v28, %v3415_v39  ;;  %v3598_v50 = vsel %vm3597_vm0, %v3591_v32, 0.0  ;;  %v3601_v25 = vsel %vm3597_vm0, %v3593_v23, 0.0  ;;  %v3594_v40 = vadd.f32 %v3576_v37, %v3486_v41 }
 0x59a   :  { %v3668_v37 = vrot.slane %v3647_v63, %v6947_v22 }
 0x59b   :  { %v3599_v7 = vsel %vm3597_vm0, %v3592_v31, 0.0  ;;  %v3603_v19 = vsel %vm3597_vm0, %v3594_v40, 0.0 }
 0x59c   :  { %v3600_v38 = vadd.f32 %v3599_v7, %v3598_v50  ;;  %v3664_v7 = vrot.slane %v3647_v63, %v6299_v17 }
 0x59e   :  { %v3602_v45 = vadd.f32 %v3601_v25, %v3600_v38  ;;  %v3672_v38 = vrot.slane %v3647_v63, %v6956_v27 }
 0x5a0   :  { %v3604_v53 = vadd.f32 %v3603_v19, %v3602_v45 }
 0x5b4   :  { %v3554_v44 = vpop.f32.mrf.mxu0 }
 0x5b5   :  { %v3555_v29 = vadd.f32 %v3554_v44, %v3341_v18 }
 0x5b6   :  { %v3556_v46 = vpop.f32.mrf.mxu0 }
 0x5b7   :  { %v3595_v48 = vadd.f32 %v3580_v42, %v3555_v29  ;;  %v3557_v49 = vadd.f32 %v3556_v46, %v3343_v51 }
 0x5b9   :  { %v3596_v36 = vadd.f32 %v3584_v20, %v3557_v49  ;;  %v3605_v16 = vsel %vm3597_vm0, %v3595_v48, 0.0 }
 0x5ba   :  { %v3606_v55 = vadd.f32 %v3605_v16, %v3604_v53 }
 0x5bb   :  { %v3607_v56 = vsel %vm3597_vm0, %v3596_v36, 0.0 }
 0x5bc   :  { %v3608_v58 = vadd.f32 %v3607_v56, %v3606_v55 }
 0x5be   :  { %3609 = vadd.xlane.f32.xlu0 %v3608_v58 }
 0x647   :  { %v3610_v60 = vpop.xlane.xlu0 %3609 }
 0x648   :  { %v3612_v61 = vmul.f32 0.0013020834, %v3610_v60 }
 0x64a   :  { %v3613_v0 = vsub.f32 %v3591_v32, %v3612_v61  ;;  %v3614_v4 = vsub.f32 %v3592_v31, %v3612_v61  ;;  %v3615_v43 = vsub.f32 %v3593_v23, %v3612_v61  ;;  %v3616_v1 = vsub.f32 %v3594_v40, %v3612_v61  ;;  %v3685_v31 = vld [vmem:[%s8098_s14] sm:$0x3f] }
 0x64b   :  { %v3617_v2 = vsub.f32 %v3595_v48, %v3612_v61  ;;  %v3618_v9 = vsub.f32 %v3596_v36, %v3612_v61  ;;  %v3652_v32 = vrot.slane %v3647_v63, %v6245_v57  ;;  %v3690_v35 = vrot.slane %v3685_v31, %v6245_v57 }
 0x64c   :  { %v3619_v5 = vmul.f32 %v3613_v0, %v3613_v0  ;;  %v3620_v59 = vmul.f32 %v3614_v4, %v3614_v4  ;;  %v3621_v6 = vmul.f32 %v3615_v43, %v3615_v43  ;;  %v3622_v15 = vmul.f32 %v3616_v1, %v3616_v1 }
 0x64d   :  { %v3623_v54 = vmul.f32 %v3617_v2, %v3617_v2  ;;  %v3624_v62 = vmul.f32 %v3618_v9, %v3618_v9  ;;  %v3694_v23 = vrot.slane %v3685_v31, %v5888_v47  ;;  %v3698_v41 = vrot.slane %v3685_v31, %v6463_v26 }
 0x64e   :  { %v3625_v10 = vsel %vm3597_vm0, %v3619_v5, 0.0  ;;  %v3626_v8 = vsel %vm3597_vm0, %v3620_v59, 0.0  ;;  %v3628_v13 = vsel %vm3597_vm0, %v3621_v6, 0.0  ;;  %v3630_v18 = vsel %vm3597_vm0, %v3622_v15, 0.0 }
 0x64f   :  { %v3627_v12 = vadd.f32 %v3626_v8, %v3625_v10  ;;  %v3632_v21 = vsel %vm3597_vm0, %v3623_v54, 0.0  ;;  %v3634_v11 = vsel %vm3597_vm0, %v3624_v62, 0.0  ;;  %v3702_v45 = vrot.slane %v3685_v31, %v6299_v17 }
 0x650   :  { %v3706_v29 = vrot.slane %v3685_v31, %v6947_v22  ;;  %v3710_v26 = vrot.slane %v3685_v31, %v6956_v27 }
 0x651   :  { %v3629_v14 = vadd.f32 %v3628_v13, %v3627_v12 }
 0x653   :  { %v3631_v51 = vadd.f32 %v3630_v18, %v3629_v14 }
 0x655   :  { %v3633_v24 = vadd.f32 %v3632_v21, %v3631_v51 }
 0x657   :  { %v3635_v39 = vadd.f32 %v3634_v11, %v3633_v24 }
 0x659   :  { %3636 = vadd.xlane.f32.xlu0 %v3635_v39 }
 0x6e2   :  { %v3637_v28 = vpop.xlane.xlu0 %3636 }
 0x6e3   :  { %v3638_v3 = vmul.f32 0.0013020834, %v3637_v28 }
 0x6e5   :  { %v3639_v30 = vadd.f32 1e-05, %v3638_v3 }
 0x6e7   :  { %3886 = vrsqrt.f32 %v3639_v30 }
 0x6f4   :  { %v3887_v50 = vpop.eup %3886 }
 0x6f5   :  { %v3641_v25 = vmul.f32 %v3887_v50, %v3613_v0  ;;  %v3642_v40 = vmul.f32 %v3887_v50, %v3614_v4  ;;  %v3643_v42 = vmul.f32 %v3887_v50, %v3615_v43  ;;  %v3644_v44 = vmul.f32 %v3887_v50, %v3616_v1 }
 0x6f6   :  { %v3645_v57 = vmul.f32 %v3887_v50, %v3617_v2  ;;  %v3646_v20 = vmul.f32 %v3887_v50, %v3618_v9 }
 0x6f7   :  { %v3679_v46 = vmul.f32 %v3652_v32, %v3641_v25  ;;  %v3680_v19 = vmul.f32 %v3656_v33, %v3642_v40  ;;  %v3681_v48 = vmul.f32 %v3660_v34, %v3643_v42  ;;  %v3682_v47 = vmul.f32 %v3664_v7, %v3644_v44 }
 0x6f8   :  { %v3683_v49 = vmul.f32 %v3668_v37, %v3645_v57  ;;  %v3684_v53 = vmul.f32 %v3672_v38, %v3646_v20 }
 0x6f9   :  { %v3717_v36 = vadd.f32 %v3690_v35, %v3679_v46  ;;  %v3718_v16 = vadd.f32 %v3694_v23, %v3680_v19  ;;  %v3719_v55 = vadd.f32 %v3698_v41, %v3681_v48  ;;  %v3720_v56 = vadd.f32 %v3702_v45, %v3682_v47 }
 0x6fa   :  { %v3721_v58 = vadd.f32 %v3706_v29, %v3683_v49  ;;  %v3722_v60 = vadd.f32 %v3710_v26, %v3684_v53 }
 0x6fb   :  { %3888 = vtanh.f32 %v3717_v36 }
 0x6fc   :  { %3890 = vtanh.f32 %v3718_v16 }
 0x6fd   :  { %3892 = vtanh.f32 %v3719_v55 }
 0x6fe   :  { %3894 = vtanh.f32 %v3720_v56 }
 0x6ff   :  { %3896 = vtanh.f32 %v3721_v58 }
 0x700   :  { %3898 = vtanh.f32 %v3722_v60 }
 0x708   :  { %v3889_v17 = vpop.eup %3888 }
 0x709   :  { %v3891_v22 = vpop.eup %3890 }
 0x70a   :  { %v3893_v61 = vpop.eup %3892  ;;  %v3735_v0 = vcombine.low %v3889_v17, %v3891_v22 }
 0x70b   :  { %v3895_v4 = vpop.eup %3894 }
 0x70c   :  { %v3897_v27 = vpop.eup %3896  ;;  %v3736_v43 = vcombine.low %v3893_v61, %v3895_v4  ;;  %v3743_v1 = vrot.slane %v3735_v0, %v4320_v52 }
 0x70d   :  { %v3899_v2 = vpop.eup %3898 }
 0x70e   :  { %v3750_v5 = vrot.slane %v3736_v43, %v4320_v52  ;;  %v3752_v59 = vcombine.low %v3897_v27, %v3899_v2 }
 0x710   :  { %v3751_v6 = vcombine.low %v3743_v1, %v3750_v5  ;;  %3777 = vst.sshfl [vmem:[%s8099_s15 + $0x8] sm:$0x33 pattern:$0x76325410] %v3752_v59 }
 0x712   :  { %3762 = vst [vmem:[%s8099_s15] sm:$0xff] %v3751_v6 }

</bundles_post_ra>
